<compile_context>
chip_gen: v5e
topology: v5e:2x2
jax: 0.10.0
libtpu: 0.0.40
codegen_flags: <defaults>
</compile_context>

<pallas_src>
import jax
import jax.numpy as jnp
from jax.experimental import pallas as pl
from jax.experimental.pallas import tpu as pltpu

_BN_EPS = 1e-5
_MXU_DTYPE = jnp.bfloat16        # MXU operand dtype (accumulation stays f32)


# ---------------------------------------------------------------------------
# Kernels
# ---------------------------------------------------------------------------
def _accumulate_taps(tap_fn, w_ref, res_ref, o_ref):
    """o = sum_t tap(t) @ w[t]  (9 MXU matmuls, f32 accumulation) [+ res]."""
    Nb, Ho, Wo, tc = o_ref.shape
    Cin = w_ref.shape[1]
    M = Nb * Ho * Wo
    acc = jnp.zeros((M, tc), jnp.float32)
    for dy in range(3):
        for dx in range(3):
            lhs = tap_fn(dy, dx).reshape(M, Cin).astype(w_ref.dtype)  # bf16 lhs
            acc = acc + jnp.dot(lhs, w_ref[dy * 3 + dx],
                                preferred_element_type=jnp.float32)
    out = acc.reshape(Nb, Ho, Wo, tc)
    if res_ref is not None:
        out = out + res_ref[...].astype(jnp.float32)                 # x2.add_(r)
    o_ref[...] = out.astype(o_ref.dtype)


def _s1_body(x_ref, scale_ref, shift_ref, w_ref, res_ref, o_ref, pad_ref):
    """Stride-1: conv3x3(relu(bn(x))) [+ res] for one image block / Cout tile."""
    Nb, H, W, Cin = x_ref.shape
    j = pl.program_id(1)                         # Cout-tile axis (innermost)

    # Build the zero-haloed activation once per image block; the scratch
    # persists across the (inner) Cout-tile axis, so j > 0 reuses it.
    @pl.when(j == 0)
    def _build():
        zdt = pad_ref.dtype
        # Zero only the 1-wide halo (the interior is fully overwritten below).
        pad_ref[:, 0:1, :, :] = jnp.zeros((Nb, 1, W + 2, Cin), zdt)
        pad_ref[:, H + 1:H + 2, :, :] = jnp.zeros((Nb, 1, W + 2, Cin), zdt)
        pad_ref[:, :, 0:1, :] = jnp.zeros((Nb, H + 2, 1, Cin), zdt)
        pad_ref[:, :, W + 1:W + 2, :] = jnp.zeros((Nb, H + 2, 1, Cin), zdt)
        x = x_ref[...].astype(jnp.float32)
        act = jnp.maximum(x * scale_ref[...] + shift_ref[...], 0.0)  # f32 BN+ReLU
        pad_ref[:, 1:H + 1, 1:W + 1, :] = act.astype(zdt)

    _accumulate_taps(lambda dy, dx: pad_ref[:, dy:dy + H, dx:dx + W, :],
                     w_ref, res_ref, o_ref)


def _s1_kernel(x_ref, scale_ref, shift_ref, w_ref, o_ref, pad_ref):
    _s1_body(x_ref, scale_ref, shift_ref, w_ref, None, o_ref, pad_ref)


def _s1_add_kernel(x_ref, scale_ref, shift_ref, w_ref, res_ref, o_ref, pad_ref):
    _s1_body(x_ref, scale_ref, shift_ref, w_ref, res_ref, o_ref, pad_ref)


def _s2_kernel(u_ref, w_ref, o_ref):
    """Stride-2 conv on a pre-activated, padded, phase-gathered bf16 input.

    u_ref: (Nb, 4, Ho+1, Wo+1, Cin); phase p = py*2+px holds
    act_pad[:, 2a+py, 2b+px, :].  Tap (dy, dx) of the strided conv is then a
    plain window of phase (dy%2, dx%2) shifted by (dy//2, dx//2).
    """
    Ho, Wo = u_ref.shape[2] - 1, u_ref.shape[3] - 1

    def tap(dy, dx):
        p = (dy % 2) * 2 + (dx % 2)
        sy, sx = dy // 2, dx // 2
        return u_ref[:, p, sy:sy + Ho, sx:sx + Wo, :]

    _accumulate_taps(tap, w_ref, None, o_ref)


# ---------------------------------------------------------------------------
# Tiling helpers
# ---------------------------------------------------------------------------
def _cout_tile(cin, cout):
    """Whole Cout (weight stays VMEM-resident) when it fits; else 128-mults."""
    if cout < 128 or 9 * cin * cout * 2 <= (8 << 20):
        return cout
    for tcw in (512, 384, 256, 128):
        if cout % tcw == 0:
            return tcw
    return cout


def _batch_tile(N, Ho, Wo, Cin, tc, itemsize):
    """Images per grid step: fill the MXU M dim (>=256 rows) within a budget."""
    budget = 24 << 20
    per_img = (Ho * Wo * (Cin * itemsize + tc * itemsize + tc * 4 + Cin * 4)
               + (Ho + 2) * (Wo + 2) * Cin * 4)
    nb = 1
    for d in range(1, N + 1):
        if N % d != 0:
            continue
        if d * per_img > budget:
            break
        nb = d
        if d * Ho * Wo >= 256:
            break
    return nb


def _vmem_limit_bytes(block_bytes):
    cap = 128 << 20
    try:
        cap = int(pltpu.get_tpu_info().vmem_capacity_bytes)
    except Exception:
        pass
    want = int(block_bytes * 1.5) + (8 << 20)
    return int(max(32 << 20, min(want, int(cap * 0.85))))


# ---------------------------------------------------------------------------
# Wrapper around pallas_call
# ---------------------------------------------------------------------------
def bn_relu_conv3x3(x_nhwc, scale, shift, w_hwio, stride, residual=None):
    """y = conv3x3(relu(bn(x))) [+ residual]; NHWC, padding=1, stride in {1,2}."""
    N, H, W, Cin = x_nhwc.shape
    Cout = w_hwio.shape[-1]
    assert stride in (1, 2)
    assert residual is None or stride == 1

    w3 = w_hwio.reshape(9, Cin, Cout).astype(_MXU_DTYPE)   # tap-major (dy, dx)
    tc = _cout_tile(Cin, Cout)
    ct = Cout // tc
    itemsize = x_nhwc.dtype.itemsize

    if stride == 1:
        Ho, Wo = H, W
        Nb = _batch_tile(N, Ho, Wo, Cin, tc, itemsize)
        scale2 = scale.reshape(1, Cin).astype(jnp.float32)
        shift2 = shift.reshape(1, Cin).astype(jnp.float32)
        in_specs = [
            pl.BlockSpec((Nb, H, W, Cin), lambda n, j: (n, 0, 0, 0)),
            pl.BlockSpec((1, Cin), lambda n, j: (0, 0)),
            pl.BlockSpec((1, Cin), lambda n, j: (0, 0)),
            pl.BlockSpec((9, Cin, tc), lambda n, j: (0, 0, j)),
        ]
        args = [x_nhwc, scale2, shift2, w3]
        if residual is None:
            kernel = _s1_kernel
        else:
            in_specs.append(
                pl.BlockSpec((Nb, Ho, Wo, tc), lambda n, j: (n, 0, 0, j)))
            args.append(residual)
            kernel = _s1_add_kernel
        scratch = [pltpu.VMEM((Nb, H + 2, W + 2, Cin), jnp.float32)]
        blk_bytes = (Nb * H * W * Cin * itemsize * 2               # x (dbl buf)
                     + 9 * Cin * tc * 2 * 2                         # weights
                     + Nb * Ho * Wo * tc * itemsize * 2             # out
                     + (Nb * Ho * Wo * tc * itemsize * 2 if residual is not None else 0)
                     + Nb * (H + 2) * (W + 2) * Cin * 4             # pad scratch
                     + Nb * Ho * Wo * tc * 4                        # f32 acc
                     + Nb * H * W * Cin * 4)                        # f32 BN temp
    else:
        assert H % 2 == 0 and W % 2 == 0
        Ho, Wo = H // 2, W // 2
        # BN+ReLU (f32), zero-pad and stride-phase gather on the XLA side,
        # emitted in bf16; the kernel then computes exactly the strided outputs.
        # TODO(synk): build the phase-gathered layout in-kernel from the raw
        # (Nb, H, W, Cin) block to remove this extra HBM round trip entirely.
        a = jnp.maximum(
            x_nhwc.astype(jnp.float32) * scale.reshape(1, 1, 1, Cin)
            + shift.reshape(1, 1, 1, Cin), 0.0)
        a = jnp.pad(a, ((0, 0), (1, 1), (1, 1), (0, 0)))
        u = a.reshape(N, Ho + 1, 2, Wo + 1, 2, Cin)
        u = u.transpose(0, 2, 4, 1, 3, 5).reshape(N, 4, Ho + 1, Wo + 1, Cin)
        u = u.astype(_MXU_DTYPE)
        Nb = _batch_tile(N, Ho, Wo, Cin, tc, itemsize)
        in_specs = [
            pl.BlockSpec((Nb, 4, Ho + 1, Wo + 1, Cin),
                         lambda n, j: (n, 0, 0, 0, 0)),
            pl.BlockSpec((9, Cin, tc), lambda n, j: (0, 0, j)),
        ]
        args = [u, w3]
        kernel = _s2_kernel
        scratch = []
        blk_bytes = (Nb * 4 * (Ho + 1) * (Wo + 1) * Cin * 2 * 2
                     + 9 * Cin * tc * 2 * 2
                     + Nb * Ho * Wo * tc * itemsize * 2
                     + Nb * Ho * Wo * tc * 4)

    return pl.pallas_call(
        kernel,
        out_shape=jax.ShapeDtypeStruct((N, Ho, Wo, Cout), x_nhwc.dtype),
        grid_spec=pltpu.PrefetchScalarGridSpec(
            num_scalar_prefetch=0,
            grid=(N // Nb, ct),                  # image blocks x Cout tiles
            in_specs=in_specs,
            out_specs=pl.BlockSpec((Nb, Ho, Wo, tc), lambda n, j: (n, 0, 0, j)),
            scratch_shapes=scratch,
        ),
        compiler_params=pltpu.CompilerParams(
            dimension_semantics=("parallel", "arbitrary"),
            vmem_limit_bytes=_vmem_limit_bytes(blk_bytes)),
    )(*args)


# ---------------------------------------------------------------------------
# BasicBlock parameters / forward
# ---------------------------------------------------------------------------
def fold_bn(bn):
    scale = bn["gamma"] / jnp.sqrt(bn["var"] + _BN_EPS)
    shift = bn["beta"] - bn["mean"] * scale
    return scale, shift


def init_basic_block(key, inf, outf):
    ks = jax.random.split(key, 6)

    def bn(k, c):
        k1, k2, k3, k4 = jax.random.split(k, 4)
        return dict(gamma=1.0 + 0.1 * jax.random.normal(k1, (c,), jnp.float32),
                    beta=0.1 * jax.random.normal(k2, (c,), jnp.float32),
                    mean=0.1 * jax.random.normal(k3, (c,), jnp.float32),
                    var=jax.random.uniform(k4, (c,), jnp.float32, 0.5, 1.5))

    params = dict(
        bn1=bn(ks[0], inf),
        w1=0.1 * jax.random.normal(ks[1], (3, 3, inf, outf), jnp.float32),
        bn2=bn(ks[2], outf),
        w2=0.1 * jax.random.normal(ks[3], (3, 3, outf, outf), jnp.float32),
        shortcut=None,
    )
    if inf != outf:
        params["shortcut"] = dict(
            bn=bn(ks[4], inf),
            w=0.1 * jax.random.normal(ks[5], (3, 3, inf, outf), jnp.float32),
        )
    return params


def basic_block_forward(x_nchw, params, stride):
    x = jnp.transpose(x_nchw, (0, 2, 3, 1))                    # NCHW -> NHWC
    s1, b1 = fold_bn(params["bn1"])
    x2 = bn_relu_conv3x3(x, s1, b1, params["w1"], stride)      # conv1(relu(bn1))
    # TODO(synk): nn.Dropout applied in eval mode (identity); torch train-mode
    # RNG masks are not reproducible across frameworks.
    if params["shortcut"] is None:
        assert stride == 1, "identity shortcut requires stride == 1"
        r = x                                                  # identity
    else:
        ss, sb = fold_bn(params["shortcut"]["bn"])
        r = bn_relu_conv3x3(x, ss, sb, params["shortcut"]["w"], stride)
    s2, b2 = fold_bn(params["bn2"])
    out = bn_relu_conv3x3(x2, s2, b2, params["w2"], 1, residual=r)
    return jnp.transpose(out, (0, 3, 1, 2))                    # NHWC -> NCHW


# ---------------------------------------------------------------------------
# Pure-JAX reference (for validation)
# ---------------------------------------------------------------------------
def _ref_forward(x_nchw, params, stride):
    x = jnp.transpose(x_nchw, (0, 2, 3, 1))

    def bnrc(h, bn, w, s):
        sc, sh = fold_bn(bn)
        a = jnp.maximum(h * sc + sh, 0.0)
        return jax.lax.conv_general_dilated(
            a, w, (s, s), ((1, 1), (1, 1)),
            dimension_numbers=("NHWC", "HWIO", "NHWC"),
            precision=jax.lax.Precision.HIGHEST)

    x2 = bnrc(x, params["bn1"], params["w1"], stride)
    r = x if params["shortcut"] is None else bnrc(
        x, params["shortcut"]["bn"], params["shortcut"]["w"], stride)
    out = bnrc(x2, params["bn2"], params["w2"], 1) + r
    return jnp.transpose(out, (0, 3, 1, 2))


if __name__ == "__main__":
    key = jax.random.PRNGKey(0)
    kx, kp, kx2, kp2 = jax.random.split(key, 4)
    fwd = jax.jit(basic_block_forward, static_argnames=("stride",))

    # 1) projection shortcut + stride-2 conv path
    inf, outf, stride = 4, 8, 2
    x = jax.random.normal(kx, (2, inf, 16, 16), jnp.float32)   # NCHW like torch
    params = init_basic_block(kp, inf, outf)
    out = jax.block_until_ready(fwd(x, params, stride=stride))
    ref = jax.block_until_ready(_ref_forward(x, params, stride))
    assert out.shape == (2, outf, 8, 8), out.shape
    assert bool(jnp.allclose(out, ref, rtol=5e-2, atol=5e-2)), \
        float(jnp.max(jnp.abs(out - ref)))

    # 2) identity shortcut, stride-1 path
    x2 = jax.random.normal(kx2, (2, inf, 16, 16), jnp.float32)
    params2 = init_basic_block(kp2, inf, inf)
    out2 = jax.block_until_ready(fwd(x2, params2, stride=1))
    ref2 = jax.block_until_ready(_ref_forward(x2, params2, 1))
    assert out2.shape == (2, inf, 16, 16), out2.shape
    assert bool(jnp.allclose(out2, ref2, rtol=5e-2, atol=5e-2)), \
        float(jnp.max(jnp.abs(out2 - ref2)))

    print("KERNEL_OK")
</pallas_src>

<mosaic_0001>
module attributes {stable_mosaic.version = 11 : i64} {
  func.func @_s2_kernel(%arg0: i32, %arg1: i32, %arg2: memref<2x4x9x9x4xbf16, #tpu.memory_space<vmem>>, %arg3: memref<9x4x8xbf16, #tpu.memory_space<vmem>>, %arg4: memref<2x8x8x8xf32, #tpu.memory_space<vmem>>) attributes {dimension_semantics = [#tpu.dimension_semantics<parallel>, #tpu.dimension_semantics<arbitrary>], iteration_bounds = array<i64: 1, 1>, scalar_prefetch = 0 : i64, scratch_operands = 0 : i64, tpu.core_type = #tpu.core_type<tc>, window_params = [{transform_indices = @transform_0, window_bounds = array<i64: 2, 4, 9, 9, 4>}, {transform_indices = @transform_1, window_bounds = array<i64: 9, 4, 8>}, {transform_indices = @transform_2, window_bounds = array<i64: 2, 8, 8, 8>}]} {
    %cst = arith.constant 0.000000e+00 : f32
    %0 = vector.broadcast %cst : f32 to vector<128x8xf32>
    %c0 = arith.constant 0 : index
    %c0_0 = arith.constant 0 : index
    %c0_1 = arith.constant 0 : index
    %c0_2 = arith.constant 0 : index
    %c0_3 = arith.constant 0 : index
    %1 = vector.load %arg2[%c0, %c0_0, %c0_1, %c0_2, %c0_3] : memref<2x4x9x9x4xbf16, #tpu.memory_space<vmem>>, vector<2x1x8x8x4xbf16>
    %2 = vector.shape_cast %1 : vector<2x1x8x8x4xbf16> to vector<2x8x8x4xbf16>
    %3 = vector.shape_cast %2 : vector<2x8x8x4xbf16> to vector<128x4xbf16>
    %c0_4 = arith.constant 0 : index
    %c0_5 = arith.constant 0 : index
    %c0_6 = arith.constant 0 : index
    %4 = vector.load %arg3[%c0_4, %c0_5, %c0_6] : memref<9x4x8xbf16, #tpu.memory_space<vmem>>, vector<1x4x8xbf16>
    %5 = vector.shape_cast %4 : vector<1x4x8xbf16> to vector<4x8xbf16>
    %cst_7 = arith.constant dense<0.000000e+00> : vector<128x8xf32>
    %6 = tpu.matmul %3, %5, %cst_7 {dimension_numbers = #tpu.dot_dimension_numbers<[1], [0], [0], [1], [0, 0, 1, 1], [], []>} : vector<128x4xbf16>, vector<4x8xbf16>, vector<128x8xf32> -> vector<128x8xf32>
    %7 = arith.addf %0, %6 : vector<128x8xf32>
    %c0_8 = arith.constant 0 : index
    %c1 = arith.constant 1 : index
    %c0_9 = arith.constant 0 : index
    %c0_10 = arith.constant 0 : index
    %c0_11 = arith.constant 0 : index
    %8 = vector.load %arg2[%c0_8, %c1, %c0_9, %c0_10, %c0_11] : memref<2x4x9x9x4xbf16, #tpu.memory_space<vmem>>, vector<2x1x8x8x4xbf16>
    %9 = vector.shape_cast %8 : vector<2x1x8x8x4xbf16> to vector<2x8x8x4xbf16>
    %10 = vector.shape_cast %9 : vector<2x8x8x4xbf16> to vector<128x4xbf16>
    %c1_12 = arith.constant 1 : index
    %c0_13 = arith.constant 0 : index
    %c0_14 = arith.constant 0 : index
    %11 = vector.load %arg3[%c1_12, %c0_13, %c0_14] : memref<9x4x8xbf16, #tpu.memory_space<vmem>>, vector<1x4x8xbf16>
    %12 = vector.shape_cast %11 : vector<1x4x8xbf16> to vector<4x8xbf16>
    %cst_15 = arith.constant dense<0.000000e+00> : vector<128x8xf32>
    %13 = tpu.matmul %10, %12, %cst_15 {dimension_numbers = #tpu.dot_dimension_numbers<[1], [0], [0], [1], [0, 0, 1, 1], [], []>} : vector<128x4xbf16>, vector<4x8xbf16>, vector<128x8xf32> -> vector<128x8xf32>
    %14 = arith.addf %7, %13 : vector<128x8xf32>
    %c0_16 = arith.constant 0 : index
    %c0_17 = arith.constant 0 : index
    %c0_18 = arith.constant 0 : index
    %c1_19 = arith.constant 1 : index
    %c0_20 = arith.constant 0 : index
    %15 = vector.load %arg2[%c0_16, %c0_17, %c0_18, %c1_19, %c0_20] : memref<2x4x9x9x4xbf16, #tpu.memory_space<vmem>>, vector<2x1x8x8x4xbf16>
    %16 = vector.shape_cast %15 : vector<2x1x8x8x4xbf16> to vector<2x8x8x4xbf16>
    %17 = vector.shape_cast %16 : vector<2x8x8x4xbf16> to vector<128x4xbf16>
    %c2 = arith.constant 2 : index
    %c0_21 = arith.constant 0 : index
    %c0_22 = arith.constant 0 : index
    %18 = vector.load %arg3[%c2, %c0_21, %c0_22] : memref<9x4x8xbf16, #tpu.memory_space<vmem>>, vector<1x4x8xbf16>
    %19 = vector.shape_cast %18 : vector<1x4x8xbf16> to vector<4x8xbf16>
    %cst_23 = arith.constant dense<0.000000e+00> : vector<128x8xf32>
    %20 = tpu.matmul %17, %19, %cst_23 {dimension_numbers = #tpu.dot_dimension_numbers<[1], [0], [0], [1], [0, 0, 1, 1], [], []>} : vector<128x4xbf16>, vector<4x8xbf16>, vector<128x8xf32> -> vector<128x8xf32>
    %21 = arith.addf %14, %20 : vector<128x8xf32>
    %c0_24 = arith.constant 0 : index
    %c2_25 = arith.constant 2 : index
    %c0_26 = arith.constant 0 : index
    %c0_27 = arith.constant 0 : index
    %c0_28 = arith.constant 0 : index
    %22 = vector.load %arg2[%c0_24, %c2_25, %c0_26, %c0_27, %c0_28] : memref<2x4x9x9x4xbf16, #tpu.memory_space<vmem>>, vector<2x1x8x8x4xbf16>
    %23 = vector.shape_cast %22 : vector<2x1x8x8x4xbf16> to vector<2x8x8x4xbf16>
    %24 = vector.shape_cast %23 : vector<2x8x8x4xbf16> to vector<128x4xbf16>
    %c3 = arith.constant 3 : index
    %c0_29 = arith.constant 0 : index
    %c0_30 = arith.constant 0 : index
    %25 = vector.load %arg3[%c3, %c0_29, %c0_30] : memref<9x4x8xbf16, #tpu.memory_space<vmem>>, vector<1x4x8xbf16>
    %26 = vector.shape_cast %25 : vector<1x4x8xbf16> to vector<4x8xbf16>
    %cst_31 = arith.constant dense<0.000000e+00> : vector<128x8xf32>
    %27 = tpu.matmul %24, %26, %cst_31 {dimension_numbers = #tpu.dot_dimension_numbers<[1], [0], [0], [1], [0, 0, 1, 1], [], []>} : vector<128x4xbf16>, vector<4x8xbf16>, vector<128x8xf32> -> vector<128x8xf32>
    %28 = arith.addf %21, %27 : vector<128x8xf32>
    %c0_32 = arith.constant 0 : index
    %c3_33 = arith.constant 3 : index
    %c0_34 = arith.constant 0 : index
    %c0_35 = arith.constant 0 : index
    %c0_36 = arith.constant 0 : index
    %29 = vector.load %arg2[%c0_32, %c3_33, %c0_34, %c0_35, %c0_36] : memref<2x4x9x9x4xbf16, #tpu.memory_space<vmem>>, vector<2x1x8x8x4xbf16>
    %30 = vector.shape_cast %29 : vector<2x1x8x8x4xbf16> to vector<2x8x8x4xbf16>
    %31 = vector.shape_cast %30 : vector<2x8x8x4xbf16> to vector<128x4xbf16>
    %c4 = arith.constant 4 : index
    %c0_37 = arith.constant 0 : index
    %c0_38 = arith.constant 0 : index
    %32 = vector.load %arg3[%c4, %c0_37, %c0_38] : memref<9x4x8xbf16, #tpu.memory_space<vmem>>, vector<1x4x8xbf16>
    %33 = vector.shape_cast %32 : vector<1x4x8xbf16> to vector<4x8xbf16>
    %cst_39 = arith.constant dense<0.000000e+00> : vector<128x8xf32>
    %34 = tpu.matmul %31, %33, %cst_39 {dimension_numbers = #tpu.dot_dimension_numbers<[1], [0], [0], [1], [0, 0, 1, 1], [], []>} : vector<128x4xbf16>, vector<4x8xbf16>, vector<128x8xf32> -> vector<128x8xf32>
    %35 = arith.addf %28, %34 : vector<128x8xf32>
    %c0_40 = arith.constant 0 : index
    %c2_41 = arith.constant 2 : index
    %c0_42 = arith.constant 0 : index
    %c1_43 = arith.constant 1 : index
    %c0_44 = arith.constant 0 : index
    %36 = vector.load %arg2[%c0_40, %c2_41, %c0_42, %c1_43, %c0_44] : memref<2x4x9x9x4xbf16, #tpu.memory_space<vmem>>, vector<2x1x8x8x4xbf16>
    %37 = vector.shape_cast %36 : vector<2x1x8x8x4xbf16> to vector<2x8x8x4xbf16>
    %38 = vector.shape_cast %37 : vector<2x8x8x4xbf16> to vector<128x4xbf16>
    %c5 = arith.constant 5 : index
    %c0_45 = arith.constant 0 : index
    %c0_46 = arith.constant 0 : index
    %39 = vector.load %arg3[%c5, %c0_45, %c0_46] : memref<9x4x8xbf16, #tpu.memory_space<vmem>>, vector<1x4x8xbf16>
    %40 = vector.shape_cast %39 : vector<1x4x8xbf16> to vector<4x8xbf16>
    %cst_47 = arith.constant dense<0.000000e+00> : vector<128x8xf32>
    %41 = tpu.matmul %38, %40, %cst_47 {dimension_numbers = #tpu.dot_dimension_numbers<[1], [0], [0], [1], [0, 0, 1, 1], [], []>} : vector<128x4xbf16>, vector<4x8xbf16>, vector<128x8xf32> -> vector<128x8xf32>
    %42 = arith.addf %35, %41 : vector<128x8xf32>
    %c0_48 = arith.constant 0 : index
    %c0_49 = arith.constant 0 : index
    %c1_50 = arith.constant 1 : index
    %c0_51 = arith.constant 0 : index
    %c0_52 = arith.constant 0 : index
    %43 = vector.load %arg2[%c0_48, %c0_49, %c1_50, %c0_51, %c0_52] : memref<2x4x9x9x4xbf16, #tpu.memory_space<vmem>>, vector<2x1x8x8x4xbf16>
    %44 = vector.shape_cast %43 : vector<2x1x8x8x4xbf16> to vector<2x8x8x4xbf16>
    %45 = vector.shape_cast %44 : vector<2x8x8x4xbf16> to vector<128x4xbf16>
    %c6 = arith.constant 6 : index
    %c0_53 = arith.constant 0 : index
    %c0_54 = arith.constant 0 : index
    %46 = vector.load %arg3[%c6, %c0_53, %c0_54] : memref<9x4x8xbf16, #tpu.memory_space<vmem>>, vector<1x4x8xbf16>
    %47 = vector.shape_cast %46 : vector<1x4x8xbf16> to vector<4x8xbf16>
    %cst_55 = arith.constant dense<0.000000e+00> : vector<128x8xf32>
    %48 = tpu.matmul %45, %47, %cst_55 {dimension_numbers = #tpu.dot_dimension_numbers<[1], [0], [0], [1], [0, 0, 1, 1], [], []>} : vector<128x4xbf16>, vector<4x8xbf16>, vector<128x8xf32> -> vector<128x8xf32>
    %49 = arith.addf %42, %48 : vector<128x8xf32>
    %c0_56 = arith.constant 0 : index
    %c1_57 = arith.constant 1 : index
    %c1_58 = arith.constant 1 : index
    %c0_59 = arith.constant 0 : index
    %c0_60 = arith.constant 0 : index
    %50 = vector.load %arg2[%c0_56, %c1_57, %c1_58, %c0_59, %c0_60] : memref<2x4x9x9x4xbf16, #tpu.memory_space<vmem>>, vector<2x1x8x8x4xbf16>
    %51 = vector.shape_cast %50 : vector<2x1x8x8x4xbf16> to vector<2x8x8x4xbf16>
    %52 = vector.shape_cast %51 : vector<2x8x8x4xbf16> to vector<128x4xbf16>
    %c7 = arith.constant 7 : index
    %c0_61 = arith.constant 0 : index
    %c0_62 = arith.constant 0 : index
    %53 = vector.load %arg3[%c7, %c0_61, %c0_62] : memref<9x4x8xbf16, #tpu.memory_space<vmem>>, vector<1x4x8xbf16>
    %54 = vector.shape_cast %53 : vector<1x4x8xbf16> to vector<4x8xbf16>
    %cst_63 = arith.constant dense<0.000000e+00> : vector<128x8xf32>
    %55 = tpu.matmul %52, %54, %cst_63 {dimension_numbers = #tpu.dot_dimension_numbers<[1], [0], [0], [1], [0, 0, 1, 1], [], []>} : vector<128x4xbf16>, vector<4x8xbf16>, vector<128x8xf32> -> vector<128x8xf32>
    %56 = arith.addf %49, %55 : vector<128x8xf32>
    %c0_64 = arith.constant 0 : index
    %c0_65 = arith.constant 0 : index
    %c1_66 = arith.constant 1 : index
    %c1_67 = arith.constant 1 : index
    %c0_68 = arith.constant 0 : index
    %57 = vector.load %arg2[%c0_64, %c0_65, %c1_66, %c1_67, %c0_68] : memref<2x4x9x9x4xbf16, #tpu.memory_space<vmem>>, vector<2x1x8x8x4xbf16>
    %58 = vector.shape_cast %57 : vector<2x1x8x8x4xbf16> to vector<2x8x8x4xbf16>
    %59 = vector.shape_cast %58 : vector<2x8x8x4xbf16> to vector<128x4xbf16>
    %c8 = arith.constant 8 : index
    %c0_69 = arith.constant 0 : index
    %c0_70 = arith.constant 0 : index
    %60 = vector.load %arg3[%c8, %c0_69, %c0_70] : memref<9x4x8xbf16, #tpu.memory_space<vmem>>, vector<1x4x8xbf16>
    %61 = vector.shape_cast %60 : vector<1x4x8xbf16> to vector<4x8xbf16>
    %cst_71 = arith.constant dense<0.000000e+00> : vector<128x8xf32>
    %62 = tpu.matmul %59, %61, %cst_71 {dimension_numbers = #tpu.dot_dimension_numbers<[1], [0], [0], [1], [0, 0, 1, 1], [], []>} : vector<128x4xbf16>, vector<4x8xbf16>, vector<128x8xf32> -> vector<128x8xf32>
    %63 = arith.addf %56, %62 : vector<128x8xf32>
    %64 = vector.shape_cast %63 : vector<128x8xf32> to vector<2x8x8x8xf32>
    %c0_72 = arith.constant 0 : index
    %c0_73 = arith.constant 0 : index
    %c0_74 = arith.constant 0 : index
    %c0_75 = arith.constant 0 : index
    %65 = vector.load %arg4[%c0_72, %c0_73, %c0_74, %c0_75] : memref<2x8x8x8xf32, #tpu.memory_space<vmem>>, vector<2x8x8x8xf32>
    tpu.vector_store %arg4[%c0_72, %c0_73, %c0_74, %c0_75], %64 {strides = array<i32>} : memref<2x8x8x8xf32, #tpu.memory_space<vmem>>, vector<2x8x8x8xf32>,
    return
  }
  func.func @transform_0(%arg0: i32, %arg1: i32) -> (i32, i32, i32, i32, i32) {
    %c0_i32 = arith.constant 0 : i32
    %c0_i32_0 = arith.constant 0 : i32
    %c0_i32_1 = arith.constant 0 : i32
    %c0_i32_2 = arith.constant 0 : i32
    %c0_i32_3 = arith.constant 0 : i32
    return %arg0, %c0_i32, %c0_i32_0, %c0_i32_1, %c0_i32_2 : i32, i32, i32, i32, i32
  }
  func.func @transform_1(%arg0: i32, %arg1: i32) -> (i32, i32, i32) {
    %c0_i32 = arith.constant 0 : i32
    %c0_i32_0 = arith.constant 0 : i32
    %c0_i32_1 = arith.constant 0 : i32
    return %c0_i32, %c0_i32_0, %arg1 : i32, i32, i32
  }
  func.func @transform_2(%arg0: i32, %arg1: i32) -> (i32, i32, i32, i32) {
    %c0_i32 = arith.constant 0 : i32
    %c0_i32_0 = arith.constant 0 : i32
    %c0_i32_1 = arith.constant 0 : i32
    return %arg0, %c0_i32, %c0_i32_0, %arg1 : i32, i32, i32, i32
  }
}

module attributes {stable_mosaic.version = 11 : i64} {
  func.func @_s1_add_kernel(%arg0: i32, %arg1: i32, %arg2: memref<2x8x8x8xf32, #tpu.memory_space<vmem>>, %arg3: memref<1x8xf32, #tpu.memory_space<vmem>>, %arg4: memref<1x8xf32, #tpu.memory_space<vmem>>, %arg5: memref<9x8x8xbf16, #tpu.memory_space<vmem>>, %arg6: memref<2x8x8x8xf32, #tpu.memory_space<vmem>>, %arg7: memref<2x8x8x8xf32, #tpu.memory_space<vmem>>, %arg8: memref<2x10x10x8xf32, #tpu.memory_space<vmem>>) attributes {dimension_semantics = [#tpu.dimension_semantics<parallel>, #tpu.dimension_semantics<arbitrary>], iteration_bounds = array<i64: 1, 1>, scalar_prefetch = 0 : i64, scratch_operands = 1 : i64, tpu.core_type = #tpu.core_type<tc>, window_params = [{transform_indices = @transform_0, window_bounds = array<i64: 2, 8, 8, 8>}, {pipeline_mode = #tpu.pipeline_mode<synchronous>, transform_indices = @transform_1, window_bounds = array<i64: 1, 8>}, {pipeline_mode = #tpu.pipeline_mode<synchronous>, transform_indices = @transform_2, window_bounds = array<i64: 1, 8>}, {transform_indices = @transform_3, window_bounds = array<i64: 9, 8, 8>}, {transform_indices = @transform_4, window_bounds = array<i64: 2, 8, 8, 8>}, {transform_indices = @transform_5, window_bounds = array<i64: 2, 8, 8, 8>}]} {
    %c0_i32 = arith.constant 0 : i32
    %0 = arith.cmpi eq, %arg1, %c0_i32 : i32
    %1 = arith.extui %0 : i1 to i32
    %c0_i32_0 = arith.constant 0 : i32
    %2 = arith.cmpi ne, %1, %c0_i32_0 : i32
    scf.if %2 {
      %cst_72 = arith.constant 0.000000e+00 : f32
      %71 = vector.broadcast %cst_72 : f32 to vector<2x1x10x8xf32>
      %c0_73 = arith.constant 0 : index
      %c0_74 = arith.constant 0 : index
      %c0_75 = arith.constant 0 : index
      %c0_76 = arith.constant 0 : index
      %72 = vector.load %arg8[%c0_73, %c0_74, %c0_75, %c0_76] : memref<2x10x10x8xf32, #tpu.memory_space<vmem>>, vector<2x1x10x8xf32>
      tpu.vector_store %arg8[%c0_73, %c0_74, %c0_75, %c0_76], %71 {strides = array<i32>} : memref<2x10x10x8xf32, #tpu.memory_space<vmem>>, vector<2x1x10x8xf32>,
      %cst_77 = arith.constant 0.000000e+00 : f32
      %73 = vector.broadcast %cst_77 : f32 to vector<2x1x10x8xf32>
      %c0_78 = arith.constant 0 : index
      %c9 = arith.constant 9 : index
      %c0_79 = arith.constant 0 : index
      %c0_80 = arith.constant 0 : index
      %74 = vector.load %arg8[%c0_78, %c9, %c0_79, %c0_80] : memref<2x10x10x8xf32, #tpu.memory_space<vmem>>, vector<2x1x10x8xf32>
      tpu.vector_store %arg8[%c0_78, %c9, %c0_79, %c0_80], %73 {strides = array<i32>} : memref<2x10x10x8xf32, #tpu.memory_space<vmem>>, vector<2x1x10x8xf32>,
      %cst_81 = arith.constant 0.000000e+00 : f32
      %75 = vector.broadcast %cst_81 : f32 to vector<2x10x1x8xf32>
      %c0_82 = arith.constant 0 : index
      %c0_83 = arith.constant 0 : index
      %c0_84 = arith.constant 0 : index
      %c0_85 = arith.constant 0 : index
      %76 = vector.load %arg8[%c0_82, %c0_83, %c0_84, %c0_85] : memref<2x10x10x8xf32, #tpu.memory_space<vmem>>, vector<2x10x1x8xf32>
      tpu.vector_store %arg8[%c0_82, %c0_83, %c0_84, %c0_85], %75 {strides = array<i32>} : memref<2x10x10x8xf32, #tpu.memory_space<vmem>>, vector<2x10x1x8xf32>,
      %cst_86 = arith.constant 0.000000e+00 : f32
      %77 = vector.broadcast %cst_86 : f32 to vector<2x10x1x8xf32>
      %c0_87 = arith.constant 0 : index
      %c0_88 = arith.constant 0 : index
      %c9_89 = arith.constant 9 : index
      %c0_90 = arith.constant 0 : index
      %78 = vector.load %arg8[%c0_87, %c0_88, %c9_89, %c0_90] : memref<2x10x10x8xf32, #tpu.memory_space<vmem>>, vector<2x10x1x8xf32>
      tpu.vector_store %arg8[%c0_87, %c0_88, %c9_89, %c0_90], %77 {strides = array<i32>} : memref<2x10x10x8xf32, #tpu.memory_space<vmem>>, vector<2x10x1x8xf32>,
      %c0_91 = arith.constant 0 : index
      %c0_92 = arith.constant 0 : index
      %c0_93 = arith.constant 0 : index
      %c0_94 = arith.constant 0 : index
      %79 = vector.load %arg2[%c0_91, %c0_92, %c0_93, %c0_94] : memref<2x8x8x8xf32, #tpu.memory_space<vmem>>, vector<2x8x8x8xf32>
      %c0_95 = arith.constant 0 : index
      %c0_96 = arith.constant 0 : index
      %80 = vector.load %arg3[%c0_95, %c0_96] : memref<1x8xf32, #tpu.memory_space<vmem>>, vector<1x8xf32>
      %81 = vector.shape_cast %80 : vector<1x8xf32> to vector<1x1x1x8xf32>
      %82 = vector.broadcast %81 : vector<1x1x1x8xf32> to vector<2x8x8x8xf32>
      %83 = arith.mulf %79, %82 : vector<2x8x8x8xf32>
      %c0_97 = arith.constant 0 : index
      %c0_98 = arith.constant 0 : index
      %84 = vector.load %arg4[%c0_97, %c0_98] : memref<1x8xf32, #tpu.memory_space<vmem>>, vector<1x8xf32>
      %85 = vector.shape_cast %84 : vector<1x8xf32> to vector<1x1x1x8xf32>
      %86 = vector.broadcast %85 : vector<1x1x1x8xf32> to vector<2x8x8x8xf32>
      %87 = arith.addf %83, %86 : vector<2x8x8x8xf32>
      %cst_99 = arith.constant 0.000000e+00 : f32
      %88 = vector.broadcast %cst_99 : f32 to vector<2x8x8x8xf32>
      %89 = arith.maximumf %87, %88 : vector<2x8x8x8xf32>
      %c0_100 = arith.constant 0 : index
      %c1_101 = arith.constant 1 : index
      %c1_102 = arith.constant 1 : index
      %c0_103 = arith.constant 0 : index
      %90 = vector.load %arg8[%c0_100, %c1_101, %c1_102, %c0_103] : memref<2x10x10x8xf32, #tpu.memory_space<vmem>>, vector<2x8x8x8xf32>
      tpu.vector_store %arg8[%c0_100, %c1_101, %c1_102, %c0_103], %89 {strides = array<i32>} : memref<2x10x10x8xf32, #tpu.memory_space<vmem>>, vector<2x8x8x8xf32>,
    } else {
    }
    %cst = arith.constant 0.000000e+00 : f32
    %3 = vector.broadcast %cst : f32 to vector<128x8xf32>
    %c0 = arith.constant 0 : index
    %c0_1 = arith.constant 0 : index
    %c0_2 = arith.constant 0 : index
    %c0_3 = arith.constant 0 : index
    %4 = vector.load %arg8[%c0, %c0_1, %c0_2, %c0_3] : memref<2x10x10x8xf32, #tpu.memory_space<vmem>>, vector<2x8x8x8xf32>
    %5 = vector.shape_cast %4 : vector<2x8x8x8xf32> to vector<128x8xf32>
    %6 = arith.truncf %5 : vector<128x8xf32> to vector<128x8xbf16>
    %c0_4 = arith.constant 0 : index
    %c0_5 = arith.constant 0 : index
    %c0_6 = arith.constant 0 : index
    %7 = vector.load %arg5[%c0_4, %c0_5, %c0_6] : memref<9x8x8xbf16, #tpu.memory_space<vmem>>, vector<1x8x8xbf16>
    %8 = vector.shape_cast %7 : vector<1x8x8xbf16> to vector<8x8xbf16>
    %cst_7 = arith.constant dense<0.000000e+00> : vector<128x8xf32>
    %9 = tpu.matmul %6, %8, %cst_7 {dimension_numbers = #tpu.dot_dimension_numbers<[1], [0], [0], [1], [0, 0, 1, 1], [], []>} : vector<128x8xbf16>, vector<8x8xbf16>, vector<128x8xf32> -> vector<128x8xf32>
    %10 = arith.addf %3, %9 : vector<128x8xf32>
    %c0_8 = arith.constant 0 : index
    %c0_9 = arith.constant 0 : index
    %c1 = arith.constant 1 : index
    %c0_10 = arith.constant 0 : index
    %11 = vector.load %arg8[%c0_8, %c0_9, %c1, %c0_10] : memref<2x10x10x8xf32, #tpu.memory_space<vmem>>, vector<2x8x8x8xf32>
    %12 = vector.shape_cast %11 : vector<2x8x8x8xf32> to vector<128x8xf32>
    %13 = arith.truncf %12 : vector<128x8xf32> to vector<128x8xbf16>
    %c1_11 = arith.constant 1 : index
    %c0_12 = arith.constant 0 : index
    %c0_13 = arith.constant 0 : index
    %14 = vector.load %arg5[%c1_11, %c0_12, %c0_13] : memref<9x8x8xbf16, #tpu.memory_space<vmem>>, vector<1x8x8xbf16>
    %15 = vector.shape_cast %14 : vector<1x8x8xbf16> to vector<8x8xbf16>
    %cst_14 = arith.constant dense<0.000000e+00> : vector<128x8xf32>
    %16 = tpu.matmul %13, %15, %cst_14 {dimension_numbers = #tpu.dot_dimension_numbers<[1], [0], [0], [1], [0, 0, 1, 1], [], []>} : vector<128x8xbf16>, vector<8x8xbf16>, vector<128x8xf32> -> vector<128x8xf32>
    %17 = arith.addf %10, %16 : vector<128x8xf32>
    %c0_15 = arith.constant 0 : index
    %c0_16 = arith.constant 0 : index
    %c2 = arith.constant 2 : index
    %c0_17 = arith.constant 0 : index
    %18 = vector.load %arg8[%c0_15, %c0_16, %c2, %c0_17] : memref<2x10x10x8xf32, #tpu.memory_space<vmem>>, vector<2x8x8x8xf32>
    %19 = vector.shape_cast %18 : vector<2x8x8x8xf32> to vector<128x8xf32>
    %20 = arith.truncf %19 : vector<128x8xf32> to vector<128x8xbf16>
    %c2_18 = arith.constant 2 : index
    %c0_19 = arith.constant 0 : index
    %c0_20 = arith.constant 0 : index
    %21 = vector.load %arg5[%c2_18, %c0_19, %c0_20] : memref<9x8x8xbf16, #tpu.memory_space<vmem>>, vector<1x8x8xbf16>
    %22 = vector.shape_cast %21 : vector<1x8x8xbf16> to vector<8x8xbf16>
    %cst_21 = arith.constant dense<0.000000e+00> : vector<128x8xf32>
    %23 = tpu.matmul %20, %22, %cst_21 {dimension_numbers = #tpu.dot_dimension_numbers<[1], [0], [0], [1], [0, 0, 1, 1], [], []>} : vector<128x8xbf16>, vector<8x8xbf16>, vector<128x8xf32> -> vector<128x8xf32>
    %24 = arith.addf %17, %23 : vector<128x8xf32>
    %c0_22 = arith.constant 0 : index
    %c1_23 = arith.constant 1 : index
    %c0_24 = arith.constant 0 : index
    %c0_25 = arith.constant 0 : index
    %25 = vector.load %arg8[%c0_22, %c1_23, %c0_24, %c0_25] : memref<2x10x10x8xf32, #tpu.memory_space<vmem>>, vector<2x8x8x8xf32>
    %26 = vector.shape_cast %25 : vector<2x8x8x8xf32> to vector<128x8xf32>
    %27 = arith.truncf %26 : vector<128x8xf32> to vector<128x8xbf16>
    %c3 = arith.constant 3 : index
    %c0_26 = arith.constant 0 : index
    %c0_27 = arith.constant 0 : index
    %28 = vector.load %arg5[%c3, %c0_26, %c0_27] : memref<9x8x8xbf16, #tpu.memory_space<vmem>>, vector<1x8x8xbf16>
    %29 = vector.shape_cast %28 : vector<1x8x8xbf16> to vector<8x8xbf16>
    %cst_28 = arith.constant dense<0.000000e+00> : vector<128x8xf32>
    %30 = tpu.matmul %27, %29, %cst_28 {dimension_numbers = #tpu.dot_dimension_numbers<[1], [0], [0], [1], [0, 0, 1, 1], [], []>} : vector<128x8xbf16>, vector<8x8xbf16>, vector<128x8xf32> -> vector<128x8xf32>
    %31 = arith.addf %24, %30 : vector<128x8xf32>
    %c0_29 = arith.constant 0 : index
    %c1_30 = arith.constant 1 : index
    %c1_31 = arith.constant 1 : index
    %c0_32 = arith.constant 0 : index
    %32 = vector.load %arg8[%c0_29, %c1_30, %c1_31, %c0_32] : memref<2x10x10x8xf32, #tpu.memory_space<vmem>>, vector<2x8x8x8xf32>
    %33 = vector.shape_cast %32 : vector<2x8x8x8xf32> to vector<128x8xf32>
    %34 = arith.truncf %33 : vector<128x8xf32> to vector<128x8xbf16>
    %c4 = arith.constant 4 : index
    %c0_33 = arith.constant 0 : index
    %c0_34 = arith.constant 0 : index
    %35 = vector.load %arg5[%c4, %c0_33, %c0_34] : memref<9x8x8xbf16, #tpu.memory_space<vmem>>, vector<1x8x8xbf16>
    %36 = vector.shape_cast %35 : vector<1x8x8xbf16> to vector<8x8xbf16>
    %cst_35 = arith.constant dense<0.000000e+00> : vector<128x8xf32>
    %37 = tpu.matmul %34, %36, %cst_35 {dimension_numbers = #tpu.dot_dimension_numbers<[1], [0], [0], [1], [0, 0, 1, 1], [], []>} : vector<128x8xbf16>, vector<8x8xbf16>, vector<128x8xf32> -> vector<128x8xf32>
    %38 = arith.addf %31, %37 : vector<128x8xf32>
    %c0_36 = arith.constant 0 : index
    %c1_37 = arith.constant 1 : index
    %c2_38 = arith.constant 2 : index
    %c0_39 = arith.constant 0 : index
    %39 = vector.load %arg8[%c0_36, %c1_37, %c2_38, %c0_39] : memref<2x10x10x8xf32, #tpu.memory_space<vmem>>, vector<2x8x8x8xf32>
    %40 = vector.shape_cast %39 : vector<2x8x8x8xf32> to vector<128x8xf32>
    %41 = arith.truncf %40 : vector<128x8xf32> to vector<128x8xbf16>
    %c5 = arith.constant 5 : index
    %c0_40 = arith.constant 0 : index
    %c0_41 = arith.constant 0 : index
    %42 = vector.load %arg5[%c5, %c0_40, %c0_41] : memref<9x8x8xbf16, #tpu.memory_space<vmem>>, vector<1x8x8xbf16>
    %43 = vector.shape_cast %42 : vector<1x8x8xbf16> to vector<8x8xbf16>
    %cst_42 = arith.constant dense<0.000000e+00> : vector<128x8xf32>
    %44 = tpu.matmul %41, %43, %cst_42 {dimension_numbers = #tpu.dot_dimension_numbers<[1], [0], [0], [1], [0, 0, 1, 1], [], []>} : vector<128x8xbf16>, vector<8x8xbf16>, vector<128x8xf32> -> vector<128x8xf32>
    %45 = arith.addf %38, %44 : vector<128x8xf32>
    %c0_43 = arith.constant 0 : index
    %c2_44 = arith.constant 2 : index
    %c0_45 = arith.constant 0 : index
    %c0_46 = arith.constant 0 : index
    %46 = vector.load %arg8[%c0_43, %c2_44, %c0_45, %c0_46] : memref<2x10x10x8xf32, #tpu.memory_space<vmem>>, vector<2x8x8x8xf32>
    %47 = vector.shape_cast %46 : vector<2x8x8x8xf32> to vector<128x8xf32>
    %48 = arith.truncf %47 : vector<128x8xf32> to vector<128x8xbf16>
    %c6 = arith.constant 6 : index
    %c0_47 = arith.constant 0 : index
    %c0_48 = arith.constant 0 : index
    %49 = vector.load %arg5[%c6, %c0_47, %c0_48] : memref<9x8x8xbf16, #tpu.memory_space<vmem>>, vector<1x8x8xbf16>
    %50 = vector.shape_cast %49 : vector<1x8x8xbf16> to vector<8x8xbf16>
    %cst_49 = arith.constant dense<0.000000e+00> : vector<128x8xf32>
    %51 = tpu.matmul %48, %50, %cst_49 {dimension_numbers = #tpu.dot_dimension_numbers<[1], [0], [0], [1], [0, 0, 1, 1], [], []>} : vector<128x8xbf16>, vector<8x8xbf16>, vector<128x8xf32> -> vector<128x8xf32>
    %52 = arith.addf %45, %51 : vector<128x8xf32>
    %c0_50 = arith.constant 0 : index
    %c2_51 = arith.constant 2 : index
    %c1_52 = arith.constant 1 : index
    %c0_53 = arith.constant 0 : index
    %53 = vector.load %arg8[%c0_50, %c2_51, %c1_52, %c0_53] : memref<2x10x10x8xf32, #tpu.memory_space<vmem>>, vector<2x8x8x8xf32>
    %54 = vector.shape_cast %53 : vector<2x8x8x8xf32> to vector<128x8xf32>
    %55 = arith.truncf %54 : vector<128x8xf32> to vector<128x8xbf16>
    %c7 = arith.constant 7 : index
    %c0_54 = arith.constant 0 : index
    %c0_55 = arith.constant 0 : index
    %56 = vector.load %arg5[%c7, %c0_54, %c0_55] : memref<9x8x8xbf16, #tpu.memory_space<vmem>>, vector<1x8x8xbf16>
    %57 = vector.shape_cast %56 : vector<1x8x8xbf16> to vector<8x8xbf16>
    %cst_56 = arith.constant dense<0.000000e+00> : vector<128x8xf32>
    %58 = tpu.matmul %55, %57, %cst_56 {dimension_numbers = #tpu.dot_dimension_numbers<[1], [0], [0], [1], [0, 0, 1, 1], [], []>} : vector<128x8xbf16>, vector<8x8xbf16>, vector<128x8xf32> -> vector<128x8xf32>
    %59 = arith.addf %52, %58 : vector<128x8xf32>
    %c0_57 = arith.constant 0 : index
    %c2_58 = arith.constant 2 : index
    %c2_59 = arith.constant 2 : index
    %c0_60 = arith.constant 0 : index
    %60 = vector.load %arg8[%c0_57, %c2_58, %c2_59, %c0_60] : memref<2x10x10x8xf32, #tpu.memory_space<vmem>>, vector<2x8x8x8xf32>
    %61 = vector.shape_cast %60 : vector<2x8x8x8xf32> to vector<128x8xf32>
    %62 = arith.truncf %61 : vector<128x8xf32> to vector<128x8xbf16>
    %c8 = arith.constant 8 : index
    %c0_61 = arith.constant 0 : index
    %c0_62 = arith.constant 0 : index
    %63 = vector.load %arg5[%c8, %c0_61, %c0_62] : memref<9x8x8xbf16, #tpu.memory_space<vmem>>, vector<1x8x8xbf16>
    %64 = vector.shape_cast %63 : vector<1x8x8xbf16> to vector<8x8xbf16>
    %cst_63 = arith.constant dense<0.000000e+00> : vector<128x8xf32>
    %65 = tpu.matmul %62, %64, %cst_63 {dimension_numbers = #tpu.dot_dimension_numbers<[1], [0], [0], [1], [0, 0, 1, 1], [], []>} : vector<128x8xbf16>, vector<8x8xbf16>, vector<128x8xf32> -> vector<128x8xf32>
    %66 = arith.addf %59, %65 : vector<128x8xf32>
    %67 = vector.shape_cast %66 : vector<128x8xf32> to vector<2x8x8x8xf32>
    %c0_64 = arith.constant 0 : index
    %c0_65 = arith.constant 0 : index
    %c0_66 = arith.constant 0 : index
    %c0_67 = arith.constant 0 : index
    %68 = vector.load %arg6[%c0_64, %c0_65, %c0_66, %c0_67] : memref<2x8x8x8xf32, #tpu.memory_space<vmem>>, vector<2x8x8x8xf32>
    %69 = arith.addf %67, %68 : vector<2x8x8x8xf32>
    %c0_68 = arith.constant 0 : index
    %c0_69 = arith.constant 0 : index
    %c0_70 = arith.constant 0 : index
    %c0_71 = arith.constant 0 : index
    %70 = vector.load %arg7[%c0_68, %c0_69, %c0_70, %c0_71] : memref<2x8x8x8xf32, #tpu.memory_space<vmem>>, vector<2x8x8x8xf32>
    tpu.vector_store %arg7[%c0_68, %c0_69, %c0_70, %c0_71], %69 {strides = array<i32>} : memref<2x8x8x8xf32, #tpu.memory_space<vmem>>, vector<2x8x8x8xf32>,
    return
  }
  func.func @transform_0(%arg0: i32, %arg1: i32) -> (i32, i32, i32, i32) {
    %c0_i32 = arith.constant 0 : i32
    %c0_i32_0 = arith.constant 0 : i32
    %c0_i32_1 = arith.constant 0 : i32
    %c0_i32_2 = arith.constant 0 : i32
    return %arg0, %c0_i32, %c0_i32_0, %c0_i32_1 : i32, i32, i32, i32
  }
  func.func @transform_1(%arg0: i32, %arg1: i32) -> (i32, i32) {
    %c0_i32 = arith.constant 0 : i32
    %c0_i32_0 = arith.constant 0 : i32
    %c0_i32_1 = arith.constant 0 : i32
    return %c0_i32, %c0_i32_0 : i32, i32
  }
  func.func @transform_2(%arg0: i32, %arg1: i32) -> (i32, i32) {
    %c0_i32 = arith.constant 0 : i32
    %c0_i32_0 = arith.constant 0 : i32
    %c0_i32_1 = arith.constant 0 : i32
    return %c0_i32, %c0_i32_0 : i32, i32
  }
  func.func @transform_3(%arg0: i32, %arg1: i32) -> (i32, i32, i32) {
    %c0_i32 = arith.constant 0 : i32
    %c0_i32_0 = arith.constant 0 : i32
    %c0_i32_1 = arith.constant 0 : i32
    return %c0_i32, %c0_i32_0, %arg1 : i32, i32, i32
  }
  func.func @transform_4(%arg0: i32, %arg1: i32) -> (i32, i32, i32, i32) {
    %c0_i32 = arith.constant 0 : i32
    %c0_i32_0 = arith.constant 0 : i32
    %c0_i32_1 = arith.constant 0 : i32
    return %arg0, %c0_i32, %c0_i32_0, %arg1 : i32, i32, i32, i32
  }
  func.func @transform_5(%arg0: i32, %arg1: i32) -> (i32, i32, i32, i32) {
    %c0_i32 = arith.constant 0 : i32
    %c0_i32_0 = arith.constant 0 : i32
    %c0_i32_1 = arith.constant 0 : i32
    return %arg0, %c0_i32, %c0_i32_0, %arg1 : i32, i32, i32, i32
  }
}

</mosaic_0001>

<bundles_post_ra>
// kernel: basic_block_forward.5
= control target key start
LH: loop header
LB: loop body
LE: loop exit
PB: predicated region body
PF: predicated region fallthrough
CT: control target
= control target key end

     0   :  { %vm242_vm0 = vcmask 1043456   ;;  %vm25_vm1 = vcmask 64512   ;;  %vm27_vm2 = vcmask 58368   ;;  %v1337_v3 = vmov 0.0   ;;  %s2062_s3 = inlined_call_operand.vmem [shape: bf16[9,8,8], index: 3, kind: input, shape index: {}]   ;;  %s2063_s0 = inlined_call_operand.vmem [shape: f32[2,8,8,8], index: 0, kind: input, shape index: {}]   ;;  %s2064_s1 = inlined_call_operand.vmem [shape: f32[1,8], index: 1, kind: input, shape index: {}]   ;;  %s2065_s2 = inlined_call_operand.vmem [shape: f32[1,8], index: 2, kind: input, shape index: {}]   ;;  %s2066_s4 = inlined_call_operand.vmem [shape: f32[2,8,8,8], index: 4, kind: input, shape index: {}]   ;;  %s2067_s5 = inlined_call_operand.vmem [shape: f32[2,8,8,8], index: 5, kind: output, shape index: {}]  }
   0x1   :  { %v1251_v0 = vld [vmem:[%s2062_s3 + $0x4] sm:$0xf]  ;;  %v80_v1 = vld [vmem:[%s2063_s0 + $0x18] sm:$0xff]  ;;  %29 = vst.msk [vmem:[#allocation2 + $0xa0] sm:$0xff] %vm25_vm1, %v1337_v3  ;;  %v1383_v5 = vld [vmem:[%s2064_s1] ss:$0 sm:$0xff] }
   0x2   :  { %v81_v2 = vld [vmem:[%s2063_s0 + $0x20] sm:$0xff]  ;;  %v244_v4 = vsel %vm242_vm0, %v1251_v0, 0  ;;  %30 = vst.msk [vmem:[#allocation2 + $0xa8] sm:$0x3] %vm27_vm2, %v1337_v3  ;;  %v100_v8 = vmul.f32 %v1383_v5, %v80_v1  ;;  %v88_v11 = vld [vmem:[%s2063_s0 + $0x58] sm:$0xff]  ;;  %vm36_vm3 = vcmask 57344  }
   0x3   :  { %v85_v6 = vld [vmem:[%s2063_s0 + $0x40] sm:$0xff]  ;;  %1331 = vmatpush.bf16.msra.mxu1 %v244_v4  ;;  %1332 = vmatpush.bf16.msra.mxu2 %v244_v4  ;;  %v101_v9 = vmul.f32 %v1383_v5, %v81_v2  ;;  %26 = vst.msk [vmem:[#allocation2] sm:$0xff] %vm25_vm1, %v1337_v3  ;;  %v1268_v13 = vld [vmem:[%s2062_s3 + $0x8] sm:$0xf]  ;;  %v108_v14 = vmul.f32 %v1383_v5, %v88_v11  ;;  %v1277_v37 = vld [vmem:[%s2062_s3 + $0xc] sm:$0xf] }
   0x4   :  { %v1391_v7 = vld [vmem:[%s2065_s2] ss:$0 sm:$0xff]  ;;  %1333 = vmatpush.bf16.msra.mxu3 %v244_v4  ;;  %253 = vmatpush.bf16.msra.mxu0 %v244_v4  ;;  %v105_v10 = vmul.f32 %v1383_v5, %v85_v6  ;;  %28 = vst.msk [vmem:[#allocation2 + $0x8] sm:$0x3] %vm27_vm2, %v1337_v3  ;;  %v422_v16 = vsel %vm242_vm0, %v1268_v13, 0  ;;  %v541_v40 = vsel %vm242_vm0, %v1277_v37, 0 }
   0x5   :  { %v89_v12 = vld [vmem:[%s2063_s0 + $0x60] sm:$0xff]  ;;  %v120_v18 = vadd.f32 %v1391_v7, %v100_v8  ;;  %v121_v19 = vadd.f32 %v1391_v7, %v101_v9  ;;  %32 = vst.msk [vmem:[#allocation2 + $0x90] sm:$0xff] %vm25_vm1, %v1337_v3  ;;  %v128_v21 = vadd.f32 %v1391_v7, %v108_v14  ;;  %v1286_v44 = vld [vmem:[%s2062_s3 + $0x10] sm:$0xf]  ;;  %v82_v49 = vld [vmem:[%s2063_s0 + $0x28] sm:$0xff] }
   0x6   :  { %v109_v15 = vmul.f32 %v1383_v5, %v89_v12  ;;  %v77_v17 = vld [vmem:[%s2063_s0] sm:$0xff]  ;;  %v125_v20 = vadd.f32 %v1391_v7, %v105_v10  ;;  %33 = vst.msk [vmem:[#allocation2 + $0x98] sm:$0x3] %vm27_vm2, %v1337_v3  ;;  %v659_v46 = vsel %vm242_vm0, %v1286_v44, 0  ;;  %v83_v50 = vld [vmem:[%s2063_s0 + $0x30] sm:$0xff]  ;;  %v86_v51 = vld [vmem:[%s2063_s0 + $0x48] sm:$0xff]  ;;  %v102_v52 = vmul.f32 %v1383_v5, %v82_v49 }
   0x7   :  { %431 = vmatpush.bf16.msrb.mxu2 %v422_v16  ;;  %v97_v23 = vmul.f32 %v1383_v5, %v77_v17  ;;  %v136_v24 = vmax.f32 %v120_v18, 0.0  ;;  %v137_v25 = vmax.f32 %v121_v19, 0.0  ;;  %34 = vst.msk [vmem:[#allocation2 + $0x130] sm:$0xff] %vm25_vm1, %v1337_v3  ;;  %v144_v27 = vmax.f32 %v128_v21, 0.0  ;;  %v190_v41 = vld [vmem:[%s2062_s3] sm:$0xf] }
   0x8   :  { %v129_v22 = vadd.f32 %v1391_v7, %v109_v15  ;;  %v141_v26 = vmax.f32 %v125_v20, 0.0  ;;  %35 = vst.msk [vmem:[#allocation2 + $0x138] sm:$0x3] %vm27_vm2, %v1337_v3  ;;  %550 = vmatpush.bf16.msrb.mxu3 %v541_v40  ;;  %v320_v43 = vsel %vm242_vm0, %v190_v41, 0  ;;  %668 = vmatpush.bf16.msrb.mxu0 %v659_v46  ;;  %v87_v53 = vld [vmem:[%s2063_s0 + $0x50] sm:$0xff]  ;;  %v103_v54 = vmul.f32 %v1383_v5, %v83_v50  ;;  %v90_v55 = vld [vmem:[%s2063_s0 + $0x68] sm:$0xff] }
   0x9   :  { %v117_v28 = vadd.f32 %v1391_v7, %v97_v23  ;;  %153 = vst.msk [vmem:[#allocation2 + $0x41] sm:$0xff] %vm25_vm1, %v136_v24  ;;  %v199_v32 = vld [vmem:[#allocation2 + $0xa1] sm:$0xff]  ;;  %329 = vmatpush.bf16.msrb.mxu1 %v320_v43  ;;  %v106_v56 = vmul.f32 %v1383_v5, %v86_v51  ;;  %v91_v57 = vld [vmem:[%s2063_s0 + $0x70] sm:$0xff]  ;;  %v107_v58 = vmul.f32 %v1383_v5, %v87_v53  ;;  %v1304_v16 = vld [vmem:[%s2062_s3 + $0x18] sm:$0xf] }
   0xa   :  { %v145_v29 = vmax.f32 %v129_v22, 0.0  ;;  %154 = vst.msk [vmem:[#allocation2 + $0x51] sm:$0xff] %vm25_vm1, %v137_v25  ;;  %v78_v59 = vld [vmem:[%s2063_s0 + $0x8] sm:$0xff]  ;;  %v122_v60 = vadd.f32 %v1391_v7, %v102_v52  ;;  %v110_v61 = vmul.f32 %v1383_v5, %v90_v55  ;;  %v79_v62 = vld [vmem:[%s2063_s0 + $0x10] sm:$0xff]  ;;  %v123_v63 = vadd.f32 %v1391_v7, %v103_v54  ;;  %v1322_v24 = vld [vmem:[%s2062_s3 + $0x20] sm:$0xf] }
   0xb   :  { %158 = vst.msk [vmem:[#allocation2 + $0xb1] sm:$0xff] %vm25_vm1, %v141_v26  ;;  %v133_v30 = vmax.f32 %v117_v28, 0.0  ;;  %v191_v36 = vld [vmem:[#allocation2 + $0x1] sm:$0xff]  ;;  %v111_v0 = vmul.f32 %v1383_v5, %v91_v57  ;;  %v126_v1 = vadd.f32 %v1391_v7, %v106_v56  ;;  %v98_v2 = vmul.f32 %v1383_v5, %v78_v59  ;;  %v1295_v20 = vld [vmem:[%s2062_s3 + $0x14] sm:$0xf]  ;;  %v84_v56 = vld [vmem:[%s2063_s0 + $0x38] sm:$0xff] }
   0xc   :  { %161 = vst.msk [vmem:[#allocation2 + $0xe1] sm:$0xff] %vm25_vm1, %v144_v27  ;;  %v127_v4 = vadd.f32 %v1391_v7, %v107_v58  ;;  %v99_v6 = vmul.f32 %v1383_v5, %v79_v62  ;;  %v138_v8 = vmax.f32 %v122_v60, 0.0  ;;  %v130_v9 = vadd.f32 %v1391_v7, %v110_v61 }
   0xd   :  { %162 = vst.msk [vmem:[#allocation2 + $0xf1] sm:$0xff] %vm25_vm1, %v145_v29  ;;  %v139_v10 = vmax.f32 %v123_v63, 0.0  ;;  %v131_v11 = vadd.f32 %v1391_v7, %v111_v0  ;;  %v142_v12 = vmax.f32 %v126_v1, 0.0  ;;  %v118_v13 = vadd.f32 %v1391_v7, %v98_v2 }
   0xe   :  { %57 = vst.msk [vmem:[#allocation2 + $0x9] sm:$0x1] %vm36_vm3, %v1337_v3  ;;  %v143_v14 = vmax.f32 %v127_v4, 0.0  ;;  %v119_v15 = vadd.f32 %v1391_v7, %v99_v6  ;;  %v146_v17 = vmax.f32 %v130_v9, 0.0  ;;  %v896_v18 = vsel %vm242_vm0, %v1304_v16, 0 }
   0xf   :  { %150 = vst.msk [vmem:[#allocation2 + $0x11] sm:$0xff] %vm25_vm1, %v133_v30  ;;  %v147_v19 = vmax.f32 %v131_v11, 0.0  ;;  %v134_v21 = vmax.f32 %v118_v13, 0.0  ;;  %v777_v23 = vsel %vm242_vm0, %v1295_v20, 0  ;;  %v1132_v26 = vsel %vm242_vm0, %v1322_v24, 0 }
  0x10   :  { %v1440_v31 = vld [vmem:[#allocation2 + $0x41] sm:$0xff]  ;;  %37 = vst.msk [vmem:[#allocation2] sm:$0x1] %vm36_vm3, %v1337_v3  ;;  %v135_v25 = vmax.f32 %v119_v15, 0.0  ;;  %v104_v57 = vmul.f32 %v1383_v5, %v84_v56 }
  0x11   :  { %v1444_v33 = vld [vmem:[#allocation2 + $0x51] sm:$0xff]  ;;  %38 = vst.msk [vmem:[#allocation2 + $0x10] sm:$0x1] %vm36_vm3, %v1337_v3 }
  0x12   :  { %v1450_v34 = vpack.c.bf16 %v1444_v33, %v1440_v31  ;;  %v1452_v35 = vld [vmem:[#allocation2 + $0xb1] sm:$0xff]  ;;  %39 = vst.msk [vmem:[#allocation2 + $0x20] sm:$0x1] %vm36_vm3, %v1337_v3  ;;  %v124_v58 = vadd.f32 %v1391_v7, %v104_v57 }
  0x13   :  { %v211_v38 = vpack.c.bf16 %v1452_v35, %v199_v32  ;;  %v1460_v39 = vld [vmem:[#allocation2 + $0xe1] sm:$0xff]  ;;  %40 = vst.msk [vmem:[#allocation2 + $0x30] sm:$0x1] %vm36_vm3, %v1337_v3 }
  0x14   :  { %1254 = vmatmul.msk.bf16.vlgmr.msra.gmra.mxu1 %vm25_vm1, %v1450_v34  ;;  %v1470_v42 = vld [vmem:[#allocation2 + $0xf1] sm:$0xff]  ;;  %41 = vst.msk [vmem:[#allocation2 + $0x40] sm:$0x1] %vm36_vm3, %v1337_v3  ;;  %v140_v59 = vmax.f32 %v124_v58, 0.0 }
  0x15   :  { %1256 = vmatmul.msk.bf16.vlgmr.msra.gmra.mxu2 %vm25_vm1, %v211_v38  ;;  %v1481_v45 = vpack.c.bf16 %v1470_v42, %v1460_v39  ;;  %42 = vst.msk [vmem:[#allocation2 + $0x50] sm:$0x1] %vm36_vm3, %v1337_v3  ;;  %786 = vmatpush.bf16.msra.mxu1 %v777_v23  ;;  %v371_v49 = vld [vmem:[#allocation2 + $0x2] sm:$0xff] }
  0x16   :  { %v1486_v47 = vld [vmem:[#allocation2 + $0x11] sm:$0xff]  ;;  %43 = vst.msk [vmem:[#allocation2 + $0x60] sm:$0x1] %vm36_vm3, %v1337_v3  ;;  %905 = vmatpush.bf16.msra.mxu2 %v896_v18 }
  0x17   :  { %1258 = vmatmul.msk.bf16.vlgmr.msra.gmra.mxu3 %vm25_vm1, %v1481_v45  ;;  %v207_v48 = vpack.c.bf16 %v1486_v47, %v191_v36  ;;  %44 = vst.msk [vmem:[#allocation2 + $0x70] sm:$0x1] %vm36_vm3, %v1337_v3  ;;  %v166_v46 = vld [vmem:[#allocation2] sm:$0xff] }
  0x18   :  { %45 = vst.msk [vmem:[#allocation2 + $0x80] sm:$0x1] %vm36_vm3, %v1337_v3 }
  0x19   :  { %1252 = vmatmul.msk.bf16.vlgmr.msra.gmra.mxu0 %vm25_vm1, %v207_v48  ;;  %46 = vst.msk [vmem:[#allocation2 + $0x90] sm:$0x1] %vm36_vm3, %v1337_v3  ;;  %v167_v48 = vld [vmem:[#allocation2 + $0x10] sm:$0xff] }
  0x1a   :  { %47 = vst.msk [vmem:[#allocation2 + $0xa0] sm:$0x1] %vm36_vm3, %v1337_v3  ;;  %1141 = vmatpush.bf16.msra.mxu0 %v1132_v26  ;;  %v182_v51 = vpack.c.bf16 %v167_v48, %v166_v46 }
  0x1b   :  { %48 = vst.msk [vmem:[#allocation2 + $0xb0] sm:$0x1] %vm36_vm3, %v1337_v3  ;;  %v493_v63 = vld [vmem:[#allocation2 + $0x40] sm:$0xff] }
  0x1c   :  { %49 = vst.msk [vmem:[#allocation2 + $0xc0] sm:$0x1] %vm36_vm3, %v1337_v3  ;;  %v171_v4 = vld [vmem:[#allocation2 + $0x50] sm:$0xff] }
  0x1d   :  { %50 = vst.msk [vmem:[#allocation2 + $0xd0] sm:$0x1] %vm36_vm3, %v1337_v3  ;;  %v1688_v9 = vpack.c.bf16 %v171_v4, %v493_v63 }
  0x1e   :  { %51 = vst.msk [vmem:[#allocation2 + $0xe0] sm:$0x1] %vm36_vm3, %v1337_v3 }
  0x1f   :  { %52 = vst.msk [vmem:[#allocation2 + $0xf0] sm:$0x1] %vm36_vm3, %v1337_v3 }
  0x20   :  { %53 = vst.msk [vmem:[#allocation2 + $0x100] sm:$0x1] %vm36_vm3, %v1337_v3 }
  0x21   :  { %54 = vst.msk [vmem:[#allocation2 + $0x110] sm:$0x1] %vm36_vm3, %v1337_v3  ;;  %v174_v20 = vld [vmem:[#allocation2 + $0xa0] sm:$0xff] }
  0x22   :  { %55 = vst.msk [vmem:[#allocation2 + $0x120] sm:$0x1] %vm36_vm3, %v1337_v3 }
  0x23   :  { %56 = vst.msk [vmem:[#allocation2 + $0x130] sm:$0x1] %vm36_vm3, %v1337_v3 }
  0x24   :  { %58 = vst.msk [vmem:[#allocation2 + $0x19] sm:$0x1] %vm36_vm3, %v1337_v3 }
  0x25   :  { %59 = vst.msk [vmem:[#allocation2 + $0x29] sm:$0x1] %vm36_vm3, %v1337_v3 }
  0x26   :  { %60 = vst.msk [vmem:[#allocation2 + $0x39] sm:$0x1] %vm36_vm3, %v1337_v3 }
  0x27   :  { %61 = vst.msk [vmem:[#allocation2 + $0x49] sm:$0x1] %vm36_vm3, %v1337_v3 }
  0x28   :  { %62 = vst.msk [vmem:[#allocation2 + $0x59] sm:$0x1] %vm36_vm3, %v1337_v3 }
  0x29   :  { %63 = vst.msk [vmem:[#allocation2 + $0x69] sm:$0x1] %vm36_vm3, %v1337_v3 }
  0x2a   :  { %64 = vst.msk [vmem:[#allocation2 + $0x79] sm:$0x1] %vm36_vm3, %v1337_v3 }
  0x2b   :  { %65 = vst.msk [vmem:[#allocation2 + $0x89] sm:$0x1] %vm36_vm3, %v1337_v3  ;;  %v1653_v50 = vld [vmem:[#allocation2 + $0x12] sm:$0xff] }
  0x2c   :  { %66 = vst.msk [vmem:[#allocation2 + $0x99] sm:$0x1] %vm36_vm3, %v1337_v3  ;;  %v387_v53 = vpack.c.bf16 %v1653_v50, %v371_v49 }
  0x2d   :  { %67 = vst.msk [vmem:[#allocation2 + $0xa9] sm:$0x1] %vm36_vm3, %v1337_v3 }
  0x2e   :  { %68 = vst.msk [vmem:[#allocation2 + $0xb9] sm:$0x1] %vm36_vm3, %v1337_v3  ;;  %v1684_v6 = vld [vmem:[#allocation2 + $0x42] sm:$0xff] }
  0x2f   :  { %69 = vst.msk [vmem:[#allocation2 + $0xc9] sm:$0x1] %vm36_vm3, %v1337_v3 }
  0x30   :  { %70 = vst.msk [vmem:[#allocation2 + $0xd9] sm:$0x1] %vm36_vm3, %v1337_v3 }
  0x31   :  { %71 = vst.msk [vmem:[#allocation2 + $0xe9] sm:$0x1] %vm36_vm3, %v1337_v3 }
  0x32   :  { %72 = vst.msk [vmem:[#allocation2 + $0xf9] sm:$0x1] %vm36_vm3, %v1337_v3 }
  0x33   :  { %73 = vst.msk [vmem:[#allocation2 + $0x109] sm:$0x1] %vm36_vm3, %v1337_v3 }
  0x34   :  { %74 = vst.msk [vmem:[#allocation2 + $0x119] sm:$0x1] %vm36_vm3, %v1337_v3 }
  0x35   :  { %75 = vst.msk [vmem:[#allocation2 + $0x129] sm:$0x1] %vm36_vm3, %v1337_v3  ;;  %v1724_v23 = vld [vmem:[#allocation2 + $0xb2] sm:$0xff] }
  0x36   :  { %76 = vst.msk [vmem:[#allocation2 + $0x139] sm:$0x1] %vm36_vm3, %v1337_v3  ;;  %v1313_v3 = vld [vmem:[%s2062_s3 + $0x1c] sm:$0xf] }
  0x37   :  { %155 = vst.msk [vmem:[#allocation2 + $0x61] sm:$0xff] %vm25_vm1, %v138_v8  ;;  %v1014_v22 = vsel %vm242_vm0, %v1313_v3, 0  ;;  %v1686_v8 = vld [vmem:[#allocation2 + $0x52] sm:$0xff] }
  0x38   :  { %156 = vst.msk [vmem:[#allocation2 + $0x71] sm:$0xff] %vm25_vm1, %v139_v10  ;;  %1023 = vmatpush.bf16.msra.mxu3 %v1014_v22  ;;  %v1692_v11 = vpack.c.bf16 %v1686_v8, %v1684_v6  ;;  %v379_v22 = vld [vmem:[#allocation2 + $0xa2] sm:$0xff] }
  0x39   :  { %159 = vst.msk [vmem:[#allocation2 + $0xc1] sm:$0xff] %vm25_vm1, %v142_v12  ;;  %v391_v26 = vpack.c.bf16 %v1724_v23, %v379_v22  ;;  %v1759_v56 = vld [vmem:[#allocation2 + $0xe2] sm:$0xff]  ;;  %v1761_v57 = vld [vmem:[#allocation2 + $0xf2] sm:$0xff] }
  0x3a   :  { %160 = vst.msk [vmem:[#allocation2 + $0xd1] sm:$0xff] %vm25_vm1, %v143_v14 }
  0x3b   :  { %163 = vst.msk [vmem:[#allocation2 + $0x101] sm:$0xff] %vm25_vm1, %v146_v17 }
  0x3c   :  { %164 = vst.msk [vmem:[#allocation2 + $0x111] sm:$0xff] %vm25_vm1, %v147_v19 }
  0x3d   :  { %151 = vst.msk [vmem:[#allocation2 + $0x21] sm:$0xff] %vm25_vm1, %v134_v21  ;;  %v175_v21 = vld [vmem:[#allocation2 + $0xb0] sm:$0xff] }
  0x3e   :  { %v197_v27 = vld [vmem:[#allocation2 + $0x61] sm:$0xff]  ;;  %152 = vst.msk [vmem:[#allocation2 + $0x31] sm:$0xff] %vm25_vm1, %v135_v25  ;;  %v186_v24 = vpack.c.bf16 %v175_v21, %v174_v20 }
  0x3f   :  { %v1622_v28 = vld [vmem:[#allocation2 + $0x71] sm:$0xff]  ;;  %157 = vst.msk [vmem:[#allocation2 + $0x81] sm:$0xff] %vm25_vm1, %v140_v59  ;;  %v495_v10 = vld [vmem:[#allocation2 + $0x60] sm:$0xff]  ;;  %v626_v12 = vpack.c.bf16 %v197_v27, %v1444_v33 }
  0x40   :  { %v1625_v29 = vpack.c.bf16 %v1622_v28, %v197_v27  ;;  %v1627_v30 = vld [vmem:[#allocation2 + $0xc1] sm:$0xff]  ;;  %v173_v13 = vld [vmem:[#allocation2 + $0x70] sm:$0xff] }
  0x41   :  { %v1629_v32 = vld [vmem:[#allocation2 + $0xd1] sm:$0xff]  ;;  %v1701_v14 = vld [vmem:[#allocation2 + $0x62] sm:$0xff]  ;;  %v1705_v16 = vpack.c.bf16 %v173_v13, %v495_v10 }
  0x42   :  { %1255 = vmatmul.msk.bf16.gmra.mxu1 %vm25_vm1, %v1625_v29  ;;  %v1635_v36 = vpack.c.bf16 %v1629_v32, %v1627_v30  ;;  %v1637_v37 = vld [vmem:[#allocation2 + $0x101] sm:$0xff]  ;;  %v1703_v15 = vld [vmem:[#allocation2 + $0x72] sm:$0xff] }
  0x43   :  { %v1639_v38 = vld [vmem:[#allocation2 + $0x111] sm:$0xff]  ;;  %v1711_v18 = vpack.c.bf16 %v1703_v15, %v1701_v14  ;;  %v499_v25 = vld [vmem:[#allocation2 + $0xc0] sm:$0xff] }
  0x44   :  { %1257 = vmatmul.msk.bf16.gmra.mxu2 %vm25_vm1, %v1635_v36  ;;  %v1645_v40 = vpack.c.bf16 %v1639_v38, %v1637_v37  ;;  %v193_v41 = vld [vmem:[#allocation2 + $0x21] sm:$0xff]  ;;  %v510_v27 = vpack.c.bf16 %v499_v25, %v175_v21  ;;  %v177_v49 = vld [vmem:[#allocation2 + $0xd0] sm:$0xff] }
  0x45   :  { %v194_v43 = vld [vmem:[#allocation2 + $0x31] sm:$0xff]  ;;  %v491_v52 = vld [vmem:[#allocation2 + $0x20] sm:$0xff]  ;;  %v624_v55 = vpack.c.bf16 %v193_v41, %v1486_v47 }
  0x46   :  { %1259 = vmatmul.msk.bf16.gmra.mxu3 %vm25_vm1, %v1645_v40  ;;  %v1649_v44 = vpack.c.bf16 %v194_v43, %v193_v41  ;;  %v506_v54 = vpack.c.bf16 %v491_v52, %v167_v48  ;;  %v169_v60 = vld [vmem:[#allocation2 + $0x30] sm:$0xff]  ;;  %v1667_v61 = vld [vmem:[#allocation2 + $0x22] sm:$0xff]  ;;  %v625_v2 = vpack.c.bf16 %v1440_v31, %v194_v43  ;;  %v508_v31 = vpack.c.bf16 %v495_v10, %v171_v4  ;;  %v92_v41 = vld [vmem:[%s2063_s0 + $0x78] sm:$0xff] }
  0x47   :  { %v1669_v62 = vld [vmem:[#allocation2 + $0x32] sm:$0xff]  ;;  %v1671_v47 = vpack.c.bf16 %v169_v60, %v491_v52  ;;  %v507_v1 = vpack.c.bf16 %v493_v63, %v169_v60  ;;  %v1707_v17 = vld [vmem:[#allocation2 + $0x80] sm:$0xff]  ;;  %v112_v43 = vmul.f32 %v1383_v5, %v92_v41  ;;  %v1767_v60 = vpack.c.bf16 %v1761_v57, %v1759_v56 }
  0x48   :  { %1253 = vmatmul.msk.bf16.gmra.mxu0 %vm25_vm1, %v1649_v44  ;;  %v1675_v0 = vpack.c.bf16 %v1669_v62, %v1667_v61  ;;  %v1713_v19 = vld [vmem:[#allocation2 + $0x81] sm:$0xff]  ;;  %v509_v33 = vpack.c.bf16 %v1707_v17, %v173_v13  ;;  %v1741_v52 = vld [vmem:[#allocation2 + $0xd2] sm:$0xff] }
  0x49   :  { %v627_v3 = vpack.c.bf16 %v1713_v19, %v1622_v28  ;;  %v628_v28 = vpack.c.bf16 %v1627_v30, %v1452_v35  ;;  %v132_v46 = vadd.f32 %v1391_v7, %v112_v43  ;;  %v1743_v35 = vpack.c.bf16 %v177_v49, %v499_v25  ;;  %v501_v30 = vld [vmem:[#allocation2 + $0xe0] sm:$0xff] }
  0x4a   :  { %v511_v5 = vpack.c.bf16 %v501_v30, %v177_v49  ;;  %v629_v7 = vpack.c.bf16 %v1460_v39, %v1629_v32  ;;  %v503_v59 = vld [vmem:[#allocation2 + $0x100] sm:$0xff] }
  0x4b   :  { %v148_v48 = vmax.f32 %v132_v46, 0.0  ;;  %v1785_v13 = vld [vmem:[#allocation2 + $0x102] sm:$0xff]  ;;  %v742_v46 = vpack.c.bf16 %v1667_v61, %v1653_v50 }
  0x4d   :  { %165 = vst.msk [vmem:[#allocation2 + $0x121] sm:$0xff] %vm25_vm1, %v148_v48 }
  0x52   :  { %1260 = vmatmul.msk.bf16.vlgmr.msrb.gmra.mxu1 %vm25_vm1, %v182_v51  ;;  %v1739_v51 = vld [vmem:[#allocation2 + $0xc2] sm:$0xff] }
  0x54   :  { %1269 = vmatmul.msk.bf16.vlgmr.msrb.gmra.mxu2 %vm25_vm1, %v387_v53  ;;  %v1747_v53 = vpack.c.bf16 %v1741_v52, %v1739_v51  ;;  %v1801_v22 = vld [vmem:[#allocation2 + $0x121] sm:$0xff] }
  0x55   :  { %v631_v25 = vpack.c.bf16 %v1801_v22, %v1639_v38 }
  0x56   :  { %1278 = vmatmul.msk.bf16.vlgmr.msrb.gmra.mxu3 %vm25_vm1, %v506_v54 }
  0x58   :  { %1287 = vmatmul.msk.bf16.vlgmr.msrb.gmra.mxu0 %vm25_vm1, %v624_v55  ;;  %v179_v55 = vld [vmem:[#allocation2 + $0xf0] sm:$0xff] }
  0x59   :  { %v1763_v58 = vpack.c.bf16 %v179_v55, %v501_v30  ;;  %v512_v39 = vpack.c.bf16 %v503_v59, %v179_v55 }
  0x62   :  { %1261 = vmatmul.msk.bf16.gmra.mxu1 %vm25_vm1, %v1671_v47 }
  0x64   :  { %1270 = vmatmul.msk.bf16.gmra.mxu2 %vm25_vm1, %v1675_v0 }
  0x66   :  { %1279 = vmatmul.msk.bf16.gmra.mxu3 %vm25_vm1, %v507_v1  ;;  %v630_v1 = vpack.c.bf16 %v1637_v37, %v1470_v42  ;;  %v1795_v37 = vld [vmem:[#allocation2 + $0x120] sm:$0xff] }
  0x68   :  { %1288 = vmatmul.msk.bf16.gmra.mxu0 %vm25_vm1, %v625_v2 }
  0x72   :  { %1262 = vmatmul.msk.bf16.gmra.mxu1 %vm25_vm1, %v1688_v9 }
  0x74   :  { %1271 = vmatmul.msk.bf16.gmra.mxu2 %vm25_vm1, %v1692_v11 }
  0x76   :  { %1280 = vmatmul.msk.bf16.gmra.mxu3 %vm25_vm1, %v508_v31  ;;  %v181_v31 = vld [vmem:[#allocation2 + $0x110] sm:$0xff] }
  0x78   :  { %1289 = vmatmul.msk.bf16.gmra.mxu0 %vm25_vm1, %v626_v12 }
  0x82   :  { %1263 = vmatmul.msk.bf16.gmra.mxu1 %vm25_vm1, %v1705_v16 }
  0x84   :  { %1272 = vmatmul.msk.bf16.gmra.mxu2 %vm25_vm1, %v1711_v18 }
  0x86   :  { %1281 = vmatmul.msk.bf16.gmra.mxu3 %vm25_vm1, %v509_v33  ;;  %v1787_v33 = vld [vmem:[#allocation2 + $0x112] sm:$0xff] }
  0x87   :  { %v1799_v21 = vpack.c.bf16 %v1787_v33, %v1785_v13 }
  0x88   :  { %1290 = vmatmul.msk.bf16.gmra.mxu0 %vm25_vm1, %v627_v3  ;;  %v1789_v3 = vpack.c.bf16 %v181_v31, %v503_v59 }
  0x91   :  { %v1757_v54 = vpop.f32.mrf.mxu1 }
  0x92   :  { %1264 = vmatmul.msk.bf16.gmra.mxu1 %vm25_vm1, %v186_v24  ;;  %v513_v24 = vpack.c.bf16 %v1795_v37, %v181_v31  ;;  %v743_v31 = vpack.c.bf16 %v1684_v6, %v1669_v62 }
  0x94   :  { %1273 = vmatmul.msk.bf16.gmra.mxu2 %vm25_vm1, %v391_v26 }
  0x96   :  { %1282 = vmatmul.msk.bf16.gmra.mxu3 %vm25_vm1, %v510_v27  ;;  %v255_v63 = vpop.f32.mrf.mxu0 }
  0x98   :  { %1291 = vmatmul.msk.bf16.gmra.mxu0 %vm25_vm1, %v628_v28  ;;  %v1771_v32 = vpop.f32.mrf.mxu2 }
  0x99   :  { %v1779_v4 = vpop.f32.mrf.mxu1 }
  0x9a   :  { %v1777_v2 = vpop.f32.mrf.mxu3 }
  0x9e   :  { %v257_v10 = vpop.f32.mrf.mxu0 }
  0xa0   :  { %v1783_v12 = vpop.f32.mrf.mxu2 }
  0xa2   :  { %1265 = vmatmul.msk.bf16.gmra.mxu1 %vm25_vm1, %v1743_v35  ;;  %v1791_v20 = vpop.f32.mrf.mxu3 }
  0xa4   :  { %1274 = vmatmul.msk.bf16.gmra.mxu2 %vm25_vm1, %v1747_v53 }
  0xa6   :  { %1283 = vmatmul.msk.bf16.gmra.mxu3 %vm25_vm1, %v511_v5 }
  0xa8   :  { %1292 = vmatmul.msk.bf16.gmra.mxu0 %vm25_vm1, %v629_v7 }
  0xb2   :  { %1266 = vmatmul.msk.bf16.gmra.mxu1 %vm25_vm1, %v1763_v58 }
  0xb4   :  { %1275 = vmatmul.msk.bf16.gmra.mxu2 %vm25_vm1, %v1767_v60 }
  0xb6   :  { %1284 = vmatmul.msk.bf16.gmra.mxu3 %vm25_vm1, %v512_v39 }
  0xb8   :  { %1293 = vmatmul.msk.bf16.gmra.mxu0 %vm25_vm1, %v630_v1 }
  0xbf   :  { %v1793_v42 = vpop.f32.mrf.mxu1 }
  0xc2   :  { %1267 = vmatmul.msk.bf16.gmra.mxu1 %vm25_vm1, %v1789_v3 }
  0xc4   :  { %1276 = vmatmul.msk.bf16.gmra.mxu2 %vm25_vm1, %v1799_v21 }
  0xc5   :  { %v260_v26 = vpop.f32.mrf.mxu0 }
  0xc6   :  { %1285 = vmatmul.msk.bf16.gmra.mxu3 %vm25_vm1, %v513_v24 }
  0xc7   :  { %v1811_v27 = vpop.f32.mrf.mxu2  ;;  %v1813_v28 = vpop.f32.mrf.mxu1 }
  0xc8   :  { %1294 = vmatmul.msk.bf16.gmra.mxu0 %vm25_vm1, %v631_v25 }
  0xc9   :  { %v1816_v41 = vpop.f32.mrf.mxu3 }
  0xcd   :  { %v262_v43 = vpop.f32.mrf.mxu0 }
  0xcf   :  { %v1820_v48 = vpop.f32.mrf.mxu2  ;;  %v331_v49 = vpop.f32.mrf.mxu1 }
  0xd0   :  { %v332_v30 = vadd.f32 %v331_v49, %v255_v63 }
  0xd1   :  { %v1822_v38 = vpop.f32.mrf.mxu3 }
  0xd2   :  { %1296 = vmatmul.msk.bf16.vlgmr.msra.gmra.mxu1 %vm25_vm1, %v742_v46 }
  0xd4   :  { %1305 = vmatmul.msk.bf16.vlgmr.msra.gmra.mxu2 %vm25_vm1, %v1671_v47 }
  0xd5   :  { %v670_v5 = vpop.f32.mrf.mxu0 }
  0xd6   :  { %1314 = vmatmul.msk.bf16.vlgmr.msra.gmra.mxu3 %vm25_vm1, %v1649_v44 }
  0xd7   :  { %v433_v7 = vpop.f32.mrf.mxu2  ;;  %v333_v55 = vpop.f32.mrf.mxu1 }
  0xd8   :  { %1323 = vmatmul.msk.bf16.vlgmr.msra.gmra.mxu0 %vm25_vm1, %v1675_v0  ;;  %v473_v50 = vadd.f32 %v433_v7, %v332_v30  ;;  %v334_v61 = vadd.f32 %v333_v55, %v257_v10 }
  0xd9   :  { %v552_v59 = vpop.f32.mrf.mxu3 }
  0xda   :  { %v592_v63 = vadd.f32 %v552_v59, %v473_v50 }
  0xdc   :  { %v1831_v39 = vadd.f32 %v670_v5, %v592_v63 }
  0xdd   :  { %v672_v1 = vpop.f32.mrf.mxu0 }
  0xdf   :  { %v435_v47 = vpop.f32.mrf.mxu2  ;;  %v336_v24 = vpop.f32.mrf.mxu1 }
  0xe0   :  { %v474_v25 = vadd.f32 %v435_v47, %v334_v61  ;;  %v337_v46 = vadd.f32 %v336_v24, %v260_v26 }
  0xe1   :  { %v554_v44 = vpop.f32.mrf.mxu3 }
  0xe2   :  { %v593_v49 = vadd.f32 %v554_v44, %v474_v25  ;;  %1297 = vmatmul.msk.bf16.gmra.mxu1 %vm25_vm1, %v743_v31  ;;  %v733_v44 = vld [vmem:[#allocation2 + $0x82] sm:$0xff] }
  0xe4   :  { %1306 = vmatmul.msk.bf16.gmra.mxu2 %vm25_vm1, %v1688_v9  ;;  %v1838_v0 = vadd.f32 %v672_v1, %v593_v49  ;;  %v744_v9 = vpack.c.bf16 %v1701_v14, %v1686_v8 }
  0xe5   :  { %v675_v10 = vpop.f32.mrf.mxu0 }
  0xe6   :  { %1315 = vmatmul.msk.bf16.gmra.mxu3 %vm25_vm1, %v1450_v34 }
  0xe7   :  { %v438_v30 = vpop.f32.mrf.mxu2  ;;  %v338_v5 = vpop.f32.mrf.mxu1 }
  0xe8   :  { %1324 = vmatmul.msk.bf16.gmra.mxu0 %vm25_vm1, %v1692_v11  ;;  %v475_v62 = vadd.f32 %v438_v30, %v337_v46  ;;  %v339_v6 = vadd.f32 %v338_v5, %v262_v43 }
  0xe9   :  { %v557_v26 = vpop.f32.mrf.mxu3 }
  0xea   :  { %v594_v7 = vadd.f32 %v557_v26, %v475_v62 }
  0xec   :  { %v1844_v55 = vadd.f32 %v675_v10, %v594_v7  ;;  %v852_v10 = vld [vmem:[#allocation2 + $0x90] sm:$0xff] }
  0xed   :  { %v677_v50 = vpop.f32.mrf.mxu0  ;;  %v1088_v7 = vld [vmem:[#allocation2 + $0x92] sm:$0xff] }
  0xef   :  { %v440_v61 = vpop.f32.mrf.mxu2  ;;  %v341_v59 = vpop.f32.mrf.mxu1 }
  0xf0   :  { %v476_v63 = vadd.f32 %v440_v61, %v339_v6  ;;  %v342_v31 = vadd.f32 %v341_v59, %v1757_v54  ;;  %v745_v54 = vpack.c.bf16 %v733_v44, %v1703_v15 }
  0xf1   :  { %v559_v1 = vpop.f32.mrf.mxu3 }
  0xf2   :  { %v595_v34 = vadd.f32 %v559_v1, %v476_v63  ;;  %1298 = vmatmul.msk.bf16.gmra.mxu1 %vm25_vm1, %v744_v9  ;;  %v1100_v9 = vpack.c.bf16 %v1088_v7, %v733_v44 }
  0xf4   :  { %1307 = vmatmul.msk.bf16.gmra.mxu2 %vm25_vm1, %v1705_v16  ;;  %v1851_v11 = vadd.f32 %v677_v50, %v595_v34 }
  0xf5   :  { %v680_v43 = vpop.f32.mrf.mxu0 }
  0xf6   :  { %1316 = vmatmul.msk.bf16.gmra.mxu3 %vm25_vm1, %v1625_v29  ;;  %v970_v29 = vld [vmem:[#allocation2 + $0x91] sm:$0xff] }
  0xf7   :  { %v443_v47 = vpop.f32.mrf.mxu2  ;;  %v343_v8 = vpop.f32.mrf.mxu1  ;;  %v982_v50 = vpack.c.bf16 %v970_v29, %v1713_v19  ;;  %v747_v29 = vpack.c.bf16 %v1759_v56, %v1741_v52 }
  0xf8   :  { %1325 = vmatmul.msk.bf16.gmra.mxu0 %vm25_vm1, %v1711_v18  ;;  %v477_v14 = vadd.f32 %v443_v47, %v342_v31  ;;  %v344_v24 = vadd.f32 %v343_v8, %v1779_v4  ;;  %v864_v18 = vpack.c.bf16 %v852_v10, %v1707_v17  ;;  %v746_v31 = vpack.c.bf16 %v1739_v51, %v1724_v23 }
  0xf9   :  { %v562_v25 = vpop.f32.mrf.mxu3 }
  0xfa   :  { %v596_v46 = vadd.f32 %v562_v25, %v477_v14 }
  0xfc   :  { %v1859_v16 = vadd.f32 %v680_v43, %v596_v46 }
  0xfd   :  { %v682_v49 = vpop.f32.mrf.mxu0 }
  0xff   :  { %v445_v30 = vpop.f32.mrf.mxu2  ;;  %v346_v5 = vpop.f32.mrf.mxu1 }
 0x100   :  { %v478_v62 = vadd.f32 %v445_v30, %v344_v24  ;;  %v347_v6 = vadd.f32 %v346_v5, %v1793_v42 }
 0x101   :  { %v564_v26 = vpop.f32.mrf.mxu3 }
 0x102   :  { %v597_v4 = vadd.f32 %v564_v26, %v478_v62  ;;  %1299 = vmatmul.msk.bf16.gmra.mxu1 %vm25_vm1, %v745_v54 }
 0x104   :  { %1308 = vmatmul.msk.bf16.gmra.mxu2 %vm25_vm1, %v864_v18  ;;  %v1867_v61 = vadd.f32 %v682_v49, %v597_v4 }
 0x105   :  { %v685_v15 = vpop.f32.mrf.mxu0 }
 0x106   :  { %1317 = vmatmul.msk.bf16.gmra.mxu3 %vm25_vm1, %v982_v50 }
 0x107   :  { %v448_v59 = vpop.f32.mrf.mxu2  ;;  %v348_v63 = vpop.f32.mrf.mxu1 }
 0x108   :  { %1326 = vmatmul.msk.bf16.gmra.mxu0 %vm25_vm1, %v1100_v9  ;;  %v479_v17 = vadd.f32 %v448_v59, %v347_v6  ;;  %v349_v42 = vadd.f32 %v348_v63, %v1813_v28  ;;  %v748_v59 = vpack.c.bf16 %v1785_v13, %v1761_v57 }
 0x109   :  { %v567_v1 = vpop.f32.mrf.mxu3 }
 0x10a   :  { %v598_v34 = vadd.f32 %v567_v1, %v479_v17 }
 0x10c   :  { %v1872_v43 = vadd.f32 %v685_v15, %v598_v34 }
 0x10d   :  { %v687_v19 = vpop.f32.mrf.mxu0 }
 0x10f   :  { %v450_v47 = vpop.f32.mrf.mxu2  ;;  %v351_v8 = vpop.f32.mrf.mxu1 }
 0x110   :  { %v480_v14 = vadd.f32 %v450_v47, %v349_v42  ;;  %v352_v44 = vadd.f32 %v351_v8, %v1771_v32  ;;  %v741_v47 = vld [vmem:[#allocation2 + $0x122] sm:$0xff] }
 0x111   :  { %v569_v24 = vpop.f32.mrf.mxu3 }
 0x112   :  { %v599_v25 = vadd.f32 %v569_v24, %v480_v14  ;;  %1300 = vmatmul.msk.bf16.gmra.mxu1 %vm25_vm1, %v746_v31  ;;  %v860_v14 = vld [vmem:[#allocation2 + $0x130] sm:$0xff] }
 0x114   :  { %1309 = vmatmul.msk.bf16.gmra.mxu2 %vm25_vm1, %v1743_v35  ;;  %v1879_v46 = vadd.f32 %v687_v19, %v599_v25 }
 0x115   :  { %v690_v28 = vpop.f32.mrf.mxu0 }
 0x116   :  { %1318 = vmatmul.msk.bf16.gmra.mxu3 %vm25_vm1, %v1635_v36 }
 0x117   :  { %v453_v49 = vpop.f32.mrf.mxu2  ;;  %v353_v23 = vpop.f32.mrf.mxu1 }
 0x118   :  { %1327 = vmatmul.msk.bf16.gmra.mxu0 %vm25_vm1, %v1747_v53  ;;  %v481_v51 = vadd.f32 %v453_v49, %v352_v44  ;;  %v354_v35 = vadd.f32 %v353_v23, %v1783_v12  ;;  %v868_v49 = vpack.c.bf16 %v860_v14, %v1795_v37 }
 0x119   :  { %v572_v10 = vpop.f32.mrf.mxu3 }
 0x11a   :  { %v600_v54 = vadd.f32 %v572_v10, %v481_v51 }
 0x11c   :  { %v1886_v30 = vadd.f32 %v690_v28, %v600_v54 }
 0x11d   :  { %v692_v5 = vpop.f32.mrf.mxu0 }
 0x11f   :  { %v455_v32 = vpop.f32.mrf.mxu2  ;;  %v356_v62 = vpop.f32.mrf.mxu1 }
 0x120   :  { %v482_v6 = vadd.f32 %v455_v32, %v354_v35  ;;  %v357_v7 = vadd.f32 %v356_v62, %v1811_v27 }
 0x121   :  { %v574_v36 = vpop.f32.mrf.mxu3 }
 0x122   :  { %v601_v18 = vadd.f32 %v574_v36, %v482_v6  ;;  %1301 = vmatmul.msk.bf16.gmra.mxu1 %vm25_vm1, %v747_v29 }
 0x124   :  { %1310 = vmatmul.msk.bf16.gmra.mxu2 %vm25_vm1, %v1763_v58  ;;  %v1894_v53 = vadd.f32 %v692_v5, %v601_v18 }
 0x125   :  { %v695_v26 = vpop.f32.mrf.mxu0 }
 0x126   :  { %1319 = vmatmul.msk.bf16.gmra.mxu3 %vm25_vm1, %v1481_v45 }
 0x127   :  { %v458_v12 = vpop.f32.mrf.mxu2  ;;  %v358_v52 = vpop.f32.mrf.mxu1 }
 0x128   :  { %1328 = vmatmul.msk.bf16.gmra.mxu0 %vm25_vm1, %v1767_v60  ;;  %v483_v56 = vadd.f32 %v458_v12, %v357_v7  ;;  %v359_v58 = vadd.f32 %v358_v52, %v1820_v48 }
 0x129   :  { %v577_v4 = vpop.f32.mrf.mxu3 }
 0x12a   :  { %v602_v50 = vadd.f32 %v577_v4, %v483_v56 }
 0x12c   :  { %v1901_v9 = vadd.f32 %v695_v26, %v602_v50 }
 0x12d   :  { %v697_v15 = vpop.f32.mrf.mxu0 }
 0x12f   :  { %v460_v27 = vpop.f32.mrf.mxu2  ;;  %v361_v63 = vpop.f32.mrf.mxu1 }
 0x130   :  { %v484_v17 = vadd.f32 %v460_v27, %v359_v58  ;;  %v362_v34 = vadd.f32 %v361_v63, %v1777_v2  ;;  %v749_v2 = vpack.c.bf16 %v741_v47, %v1787_v33  ;;  %v1199_v63 = vld [vmem:[%s2066_s4] sm:$0xff] }
 0x131   :  { %v579_v45 = vpop.f32.mrf.mxu3 }
 0x132   :  { %v603_v42 = vadd.f32 %v579_v45, %v484_v17  ;;  %1302 = vmatmul.msk.bf16.gmra.mxu1 %vm25_vm1, %v748_v59 }
 0x134   :  { %1311 = vmatmul.msk.bf16.gmra.mxu2 %vm25_vm1, %v1789_v3  ;;  %v1909_v60 = vadd.f32 %v697_v15, %v603_v42 }
 0x135   :  { %v700_v1 = vpop.f32.mrf.mxu0 }
 0x136   :  { %1320 = vmatmul.msk.bf16.gmra.mxu3 %vm25_vm1, %v1645_v40  ;;  %v978_v40 = vld [vmem:[#allocation2 + $0x131] sm:$0xff] }
 0x137   :  { %v463_v48 = vpop.f32.mrf.mxu2  ;;  %v363_v57 = vpop.f32.mrf.mxu1  ;;  %v986_v10 = vpack.c.bf16 %v978_v40, %v1801_v22 }
 0x138   :  { %1329 = vmatmul.msk.bf16.gmra.mxu0 %vm25_vm1, %v1799_v21  ;;  %v485_v13 = vadd.f32 %v463_v48, %v362_v34  ;;  %v364_v24 = vadd.f32 %v363_v57, %v1791_v20  ;;  %v1096_v21 = vld [vmem:[#allocation2 + $0x132] sm:$0xff] }
 0x139   :  { %v582_v19 = vpop.f32.mrf.mxu3  ;;  %v1104_v54 = vpack.c.bf16 %v1096_v21, %v741_v47 }
 0x13a   :  { %v604_v31 = vadd.f32 %v582_v19, %v485_v13  ;;  %v1200_v13 = vld [vmem:[%s2066_s4 + $0x8] sm:$0xff] }
 0x13c   :  { %v1916_v8 = vadd.f32 %v700_v1, %v604_v31 }
 0x13d   :  { %v702_v3 = vpop.f32.mrf.mxu0 }
 0x13f   :  { %v465_v25 = vpop.f32.mrf.mxu2  ;;  %v366_v28 = vpop.f32.mrf.mxu1 }
 0x140   :  { %v486_v44 = vadd.f32 %v465_v25, %v364_v24  ;;  %v367_v33 = vadd.f32 %v366_v28, %v1816_v41  ;;  %v1201_v28 = vld [vmem:[%s2066_s4 + $0x10] sm:$0xff] }
 0x141   :  { %v584_v23 = vpop.f32.mrf.mxu3 }
 0x142   :  { %v605_v51 = vadd.f32 %v584_v23, %v486_v44  ;;  %1303 = vmatmul.msk.bf16.gmra.mxu1 %vm25_vm1, %v749_v2 }
 0x144   :  { %1312 = vmatmul.msk.bf16.gmra.mxu2 %vm25_vm1, %v868_v49  ;;  %v1924_v5 = vadd.f32 %v702_v3, %v605_v51 }
 0x145   :  { %v705_v20 = vpop.f32.mrf.mxu0 }
 0x146   :  { %1321 = vmatmul.msk.bf16.gmra.mxu3 %vm25_vm1, %v986_v10 }
 0x147   :  { %v468_v35 = vpop.f32.mrf.mxu2  ;;  %v368_v29 = vpop.f32.mrf.mxu1 }
 0x148   :  { %1330 = vmatmul.msk.bf16.gmra.mxu0 %vm25_vm1, %v1104_v54  ;;  %v487_v37 = vadd.f32 %v468_v35, %v367_v33  ;;  %v369_v36 = vadd.f32 %v368_v29, %v1822_v38 }
 0x149   :  { %v587_v32 = vpop.f32.mrf.mxu3 }
 0x14a   :  { %v606_v62 = vadd.f32 %v587_v32, %v487_v37 }
 0x14c   :  { %v1929_v6 = vadd.f32 %v705_v20, %v606_v62  ;;  %v1202_v20 = vld [vmem:[%s2066_s4 + $0x18] sm:$0xff] }
 0x14d   :  { %v707_v22 = vpop.f32.mrf.mxu0 }
 0x14f   :  { %v470_v18 = vpop.f32.mrf.mxu2  ;;  %v788_v26 = vpop.f32.mrf.mxu1 }
 0x150   :  { %v488_v7 = vadd.f32 %v470_v18, %v369_v36  ;;  %v828_v4 = vadd.f32 %v788_v26, %v1831_v39  ;;  %v1203_v18 = vld [vmem:[%s2066_s4 + $0x20] sm:$0xff] }
 0x151   :  { %v589_v12 = vpop.f32.mrf.mxu3 }
 0x152   :  { %v607_v52 = vadd.f32 %v589_v12, %v488_v7 }
 0x154   :  { %v1932_v41 = vadd.f32 %v707_v22, %v607_v52 }
 0x155   :  { %v1143_v56 = vpop.f32.mrf.mxu0 }
 0x157   :  { %v907_v50 = vpop.f32.mrf.mxu2  ;;  %v790_v15 = vpop.f32.mrf.mxu1 }
 0x158   :  { %v947_v58 = vadd.f32 %v907_v50, %v828_v4  ;;  %v829_v42 = vadd.f32 %v790_v15, %v1838_v0 }
 0x159   :  { %v1025_v59 = vpop.f32.mrf.mxu3 }
 0x15a   :  { %v1065_v27 = vadd.f32 %v1025_v59, %v947_v58  ;;  %v1204_v58 = vld [vmem:[%s2066_s4 + $0x28] sm:$0xff] }
 0x15c   :  { %v1183_v38 = vadd.f32 %v1143_v56, %v1065_v27 }
 0x15d   :  { %v1145_v17 = vpop.f32.mrf.mxu0 }
 0x15e   :  { %v1215_v45 = vadd.f32 %v1199_v63, %v1183_v38 }
 0x15f   :  { %v909_v1 = vpop.f32.mrf.mxu2  ;;  %v793_v34 = vpop.f32.mrf.mxu1 }
 0x160   :  { %1231 = vst.msk [vmem:[%s2067_s5] sm:$0xff] %vm25_vm1, %v1215_v45  ;;  %v948_v39 = vadd.f32 %v909_v1, %v829_v42  ;;  %v830_v3 = vadd.f32 %v793_v34, %v1844_v55  ;;  %v1205_v34 = vld [vmem:[%s2066_s4 + $0x30] sm:$0xff] }
 0x161   :  { %v1027_v48 = vpop.f32.mrf.mxu3 }
 0x162   :  { %v1066_v57 = vadd.f32 %v1027_v48, %v948_v39 }
 0x164   :  { %v1184_v19 = vadd.f32 %v1145_v17, %v1066_v57 }
 0x165   :  { %v1148_v31 = vpop.f32.mrf.mxu0 }
 0x166   :  { %v1216_v47 = vadd.f32 %v1200_v13, %v1184_v19 }
 0x167   :  { %v912_v0 = vpop.f32.mrf.mxu2  ;;  %v795_v14 = vpop.f32.mrf.mxu1 }
 0x168   :  { %1232 = vst.msk [vmem:[%s2067_s5 + $0x8] sm:$0xff] %vm25_vm1, %v1216_v47  ;;  %v949_v24 = vadd.f32 %v912_v0, %v830_v3  ;;  %v831_v23 = vadd.f32 %v795_v14, %v1851_v11  ;;  %v1206_v0 = vld [vmem:[%s2066_s4 + $0x38] sm:$0xff] }
 0x169   :  { %v1030_v2 = vpop.f32.mrf.mxu3 }
 0x16a   :  { %v1067_v25 = vadd.f32 %v1030_v2, %v949_v24 }
 0x16c   :  { %v1185_v40 = vadd.f32 %v1148_v31, %v1067_v25 }
 0x16d   :  { %v1150_v44 = vpop.f32.mrf.mxu0 }
 0x16e   :  { %v1217_v49 = vadd.f32 %v1201_v28, %v1185_v40 }
 0x16f   :  { %v914_v55 = vpop.f32.mrf.mxu2  ;;  %v798_v21 = vpop.f32.mrf.mxu1 }
 0x170   :  { %1233 = vst.msk [vmem:[%s2067_s5 + $0x10] sm:$0xff] %vm25_vm1, %v1217_v49  ;;  %v950_v51 = vadd.f32 %v914_v55, %v831_v23  ;;  %v832_v37 = vadd.f32 %v798_v21, %v1859_v16  ;;  %v1207_v23 = vld [vmem:[%s2066_s4 + $0x40] sm:$0xff] }
 0x171   :  { %v1032_v10 = vpop.f32.mrf.mxu3 }
 0x172   :  { %v1068_v54 = vadd.f32 %v1032_v10, %v950_v51 }
 0x174   :  { %v1186_v33 = vadd.f32 %v1150_v44, %v1068_v54 }
 0x175   :  { %v1153_v35 = vpop.f32.mrf.mxu0 }
 0x176   :  { %v1218_v29 = vadd.f32 %v1202_v20, %v1186_v33 }
 0x177   :  { %v917_v11 = vpop.f32.mrf.mxu2  ;;  %v800_v32 = vpop.f32.mrf.mxu1 }
 0x178   :  { %1234 = vst.msk [vmem:[%s2067_s5 + $0x18] sm:$0xff] %vm25_vm1, %v1218_v29  ;;  %v951_v62 = vadd.f32 %v917_v11, %v832_v37  ;;  %v833_v52 = vadd.f32 %v800_v32, %v1867_v61  ;;  %v1208_v29 = vld [vmem:[%s2066_s4 + $0x48] sm:$0xff] }
 0x179   :  { %v1035_v22 = vpop.f32.mrf.mxu3 }
 0x17a   :  { %v1069_v36 = vadd.f32 %v1035_v22, %v951_v62 }
 0x17c   :  { %v1187_v26 = vadd.f32 %v1153_v35, %v1069_v36 }
 0x17d   :  { %v1155_v7 = vpop.f32.mrf.mxu0 }
 0x17e   :  { %v1219_v12 = vadd.f32 %v1203_v18, %v1187_v26 }
 0x17f   :  { %v919_v16 = vpop.f32.mrf.mxu2  ;;  %v803_v56 = vpop.f32.mrf.mxu1 }
 0x180   :  { %1235 = vst.msk [vmem:[%s2067_s5 + $0x20] sm:$0xff] %vm25_vm1, %v1219_v12  ;;  %v952_v4 = vadd.f32 %v919_v16, %v833_v52  ;;  %v834_v38 = vadd.f32 %v803_v56, %v1872_v43 }
 0x181   :  { %v1037_v50 = vpop.f32.mrf.mxu3 }
 0x182   :  { %v1070_v15 = vadd.f32 %v1037_v50, %v952_v4 }
 0x184   :  { %v1188_v59 = vadd.f32 %v1155_v7, %v1070_v15  ;;  %v1209_v7 = vld [vmem:[%s2066_s4 + $0x50] sm:$0xff] }
 0x185   :  { %v1158_v27 = vpop.f32.mrf.mxu0 }
 0x186   :  { %v1220_v63 = vadd.f32 %v1204_v58, %v1188_v59  ;;  %v1210_v59 = vld [vmem:[%s2066_s4 + $0x58] sm:$0xff] }
 0x187   :  { %v922_v61 = vpop.f32.mrf.mxu2  ;;  %v805_v17 = vpop.f32.mrf.mxu1 }
 0x188   :  { %1236 = vst.msk [vmem:[%s2067_s5 + $0x28] sm:$0xff] %vm25_vm1, %v1220_v63  ;;  %v953_v45 = vadd.f32 %v922_v61, %v834_v38  ;;  %v835_v13 = vadd.f32 %v805_v17, %v1879_v46 }
 0x189   :  { %v1040_v42 = vpop.f32.mrf.mxu3 }
 0x18a   :  { %v1071_v1 = vadd.f32 %v1040_v42, %v953_v45 }
 0x18c   :  { %v1189_v39 = vadd.f32 %v1158_v27, %v1071_v1 }
 0x18d   :  { %v1160_v48 = vpop.f32.mrf.mxu0 }
 0x18e   :  { %v1221_v57 = vadd.f32 %v1205_v34, %v1189_v39  ;;  %v1211_v34 = vld [vmem:[%s2066_s4 + $0x60] sm:$0xff] }
 0x18f   :  { %v924_v43 = vpop.f32.mrf.mxu2  ;;  %v808_v19 = vpop.f32.mrf.mxu1 }
 0x190   :  { %1237 = vst.msk [vmem:[%s2067_s5 + $0x30] sm:$0xff] %vm25_vm1, %v1221_v57  ;;  %v954_v31 = vadd.f32 %v924_v43, %v835_v13  ;;  %v836_v25 = vadd.f32 %v808_v19, %v1886_v30 }
 0x191   :  { %v1042_v47 = vpop.f32.mrf.mxu3 }
 0x192   :  { %v1072_v3 = vadd.f32 %v1042_v47, %v954_v31 }
 0x194   :  { %v1190_v14 = vadd.f32 %v1160_v48, %v1072_v3  ;;  %v1212_v3 = vld [vmem:[%s2066_s4 + $0x68] sm:$0xff] }
 0x195   :  { %v1163_v24 = vpop.f32.mrf.mxu0 }
 0x196   :  { %v1222_v2 = vadd.f32 %v1206_v0, %v1190_v14 }
 0x197   :  { %v927_v46 = vpop.f32.mrf.mxu2  ;;  %v810_v28 = vpop.f32.mrf.mxu1 }
 0x198   :  { %1238 = vst.msk [vmem:[%s2067_s5 + $0x38] sm:$0xff] %vm25_vm1, %v1222_v2  ;;  %v955_v40 = vadd.f32 %v927_v46, %v836_v25  ;;  %v837_v10 = vadd.f32 %v810_v28, %v1894_v53 }
 0x199   :  { %v1045_v44 = vpop.f32.mrf.mxu3 }
 0x19a   :  { %v1073_v49 = vadd.f32 %v1045_v44, %v955_v40  ;;  %v1213_v40 = vld [vmem:[%s2066_s4 + $0x70] sm:$0xff] }
 0x19c   :  { %v1191_v55 = vadd.f32 %v1163_v24, %v1073_v49 }
 0x19d   :  { %v1165_v21 = vpop.f32.mrf.mxu0 }
 0x19e   :  { %v1223_v51 = vadd.f32 %v1207_v23, %v1191_v55 }
 0x19f   :  { %v929_v30 = vpop.f32.mrf.mxu2  ;;  %v813_v54 = vpop.f32.mrf.mxu1 }
 0x1a0   :  { %1239 = vst.msk [vmem:[%s2067_s5 + $0x40] sm:$0xff] %vm25_vm1, %v1223_v51  ;;  %v956_v20 = vadd.f32 %v929_v30, %v837_v10  ;;  %v838_v62 = vadd.f32 %v813_v54, %v1901_v9  ;;  %v1214_v54 = vld [vmem:[%s2066_s4 + $0x78] sm:$0xff] }
 0x1a1   :  { %v1047_v33 = vpop.f32.mrf.mxu3 }
 0x1a2   :  { %v1074_v35 = vadd.f32 %v1047_v33, %v956_v20 }
 0x1a4   :  { %v1192_v37 = vadd.f32 %v1165_v21, %v1074_v35 }
 0x1a5   :  { %v1168_v11 = vpop.f32.mrf.mxu0 }
 0x1a6   :  { %v1224_v32 = vadd.f32 %v1208_v29, %v1192_v37 }
 0x1a7   :  { %v932_v53 = vpop.f32.mrf.mxu2  ;;  %v815_v22 = vpop.f32.mrf.mxu1 }
 0x1a8   :  { %1240 = vst.msk [vmem:[%s2067_s5 + $0x48] sm:$0xff] %vm25_vm1, %v1224_v32  ;;  %v957_v36 = vadd.f32 %v932_v53, %v838_v62  ;;  %v839_v56 = vadd.f32 %v815_v22, %v1909_v60 }
 0x1a9   :  { %v1050_v18 = vpop.f32.mrf.mxu3 }
 0x1aa   :  { %v1075_v26 = vadd.f32 %v1050_v18, %v957_v36 }
 0x1ac   :  { %v1193_v12 = vadd.f32 %v1168_v11, %v1075_v26 }
 0x1ad   :  { %v1170_v52 = vpop.f32.mrf.mxu0 }
 0x1ae   :  { %v1225_v16 = vadd.f32 %v1209_v7, %v1193_v12 }
 0x1af   :  { %v934_v9 = vpop.f32.mrf.mxu2  ;;  %v818_v4 = vpop.f32.mrf.mxu1 }
 0x1b0   :  { %1241 = vst.msk [vmem:[%s2067_s5 + $0x50] sm:$0xff] %vm25_vm1, %v1225_v16  ;;  %v958_v50 = vadd.f32 %v934_v9, %v839_v56  ;;  %v840_v61 = vadd.f32 %v818_v4, %v1916_v8 }
 0x1b1   :  { %v1052_v15 = vpop.f32.mrf.mxu3 }
 0x1b2   :  { %v1076_v58 = vadd.f32 %v1052_v15, %v958_v50 }
 0x1b4   :  { %v1194_v27 = vadd.f32 %v1170_v52, %v1076_v58 }
 0x1b5   :  { %v1173_v63 = vpop.f32.mrf.mxu0 }
 0x1b6   :  { %v1226_v38 = vadd.f32 %v1210_v59, %v1194_v27 }
 0x1b7   :  { %v937_v60 = vpop.f32.mrf.mxu2  ;;  %v820_v17 = vpop.f32.mrf.mxu1 }
 0x1b8   :  { %1242 = vst.msk [vmem:[%s2067_s5 + $0x58] sm:$0xff] %vm25_vm1, %v1226_v38  ;;  %v959_v45 = vadd.f32 %v937_v60, %v840_v61  ;;  %v841_v57 = vadd.f32 %v820_v17, %v1924_v5 }
 0x1b9   :  { %v1055_v42 = vpop.f32.mrf.mxu3 }
 0x1ba   :  { %v1077_v1 = vadd.f32 %v1055_v42, %v959_v45 }
 0x1bc   :  { %v1195_v39 = vadd.f32 %v1173_v63, %v1077_v1 }
 0x1bd   :  { %v1175_v13 = vpop.f32.mrf.mxu0 }
 0x1be   :  { %v1227_v48 = vadd.f32 %v1211_v34, %v1195_v39 }
 0x1bf   :  { %v939_v8 = vpop.f32.mrf.mxu2  ;;  %v823_v31 = vpop.f32.mrf.mxu1 }
 0x1c0   :  { %1243 = vst.msk [vmem:[%s2067_s5 + $0x60] sm:$0xff] %vm25_vm1, %v1227_v48  ;;  %v960_v43 = vadd.f32 %v939_v8, %v841_v57  ;;  %v842_v24 = vadd.f32 %v823_v31, %v1929_v6 }
 0x1c1   :  { %v1057_v19 = vpop.f32.mrf.mxu3 }
 0x1c2   :  { %v1078_v47 = vadd.f32 %v1057_v19, %v960_v43 }
 0x1c4   :  { %v1196_v0 = vadd.f32 %v1175_v13, %v1078_v47 }
 0x1c5   :  { %v1178_v25 = vpop.f32.mrf.mxu0 }
 0x1c6   :  { %v1228_v14 = vadd.f32 %v1212_v3, %v1196_v0 }
 0x1c7   :  { %v942_v5 = vpop.f32.mrf.mxu2  ;;  %v825_v44 = vpop.f32.mrf.mxu1 }
 0x1c8   :  { %1244 = vst.msk [vmem:[%s2067_s5 + $0x68] sm:$0xff] %vm25_vm1, %v1228_v14  ;;  %v961_v2 = vadd.f32 %v942_v5, %v842_v24  ;;  %v843_v55 = vadd.f32 %v825_v44, %v1932_v41 }
 0x1c9   :  { %v1060_v46 = vpop.f32.mrf.mxu3 }
 0x1ca   :  { %v1079_v28 = vadd.f32 %v1060_v46, %v961_v2 }
 0x1cc   :  { %v1197_v49 = vadd.f32 %v1178_v25, %v1079_v28 }
 0x1cd   :  { %v1180_v30 = vpop.f32.mrf.mxu0 }
 0x1ce   :  { %v1229_v23 = vadd.f32 %v1213_v40, %v1197_v49 }
 0x1cf   :  { %v944_v6 = vpop.f32.mrf.mxu2 }
 0x1d0   :  { %1245 = vst.msk [vmem:[%s2067_s5 + $0x70] sm:$0xff] %vm25_vm1, %v1229_v23  ;;  %v962_v21 = vadd.f32 %v944_v6, %v843_v55 }
 0x1d1   :  { %v1062_v51 = vpop.f32.mrf.mxu3 }
 0x1d2   :  { %v1080_v10 = vadd.f32 %v1062_v51, %v962_v21 }
 0x1d4   :  { %v1198_v20 = vadd.f32 %v1180_v30, %v1080_v10 }
 0x1d6   :  { %v1230_v33 = vadd.f32 %v1214_v54, %v1198_v20 }
 0x1d8   :  { %1246 = vst.msk [vmem:[%s2067_s5 + $0x78] sm:$0xff] %vm25_vm1, %v1230_v33 }

// kernel: basic_block_forward.3
= control target key start
LH: loop header
LB: loop body
LE: loop exit
PB: predicated region body
PF: predicated region fallthrough
CT: control target
= control target key end

     0   :  { %vm113_vm0 = vcmask 1041408   ;;  %vm88_vm1 = vcmask 31744   ;;  %vm314_vm2 = vsmask.f32 3328  ;;  %vm315_vm3 = vsmask.f32 7440  ;;  %s3458_s1 = inlined_call_operand.vmem [shape: bf16[9,4,8], index: 1, kind: input, shape index: {}]   ;;  %s3459_s0 = inlined_call_operand.vmem [shape: bf16[2,4,9,9,4], index: 0, kind: input, shape index: {}]   ;;  %s3460_s2 = inlined_call_operand.vmem [shape: f32[2,8,8,8], index: 2, kind: output, shape index: {}]  }
   0x1   :  { %v2048_v0 = vld [vmem:[%s3458_s1 + $0x2] sm:$0x3]  ;;  %v2059_v1 = vld [vmem:[%s3459_s0 + $0x68] sm:$0xf]  ;;  %v2458_v2 = vld [vmem:[%s3459_s0 + $0x6c] sm:$0xf0] }
   0x2   :  { %v115_v3 = vsel %vm113_vm0, %v2048_v0, 0  ;;  %v2060_v4 = vor.u32 %v2458_v2, %v2059_v1  ;;  %v2067_v5 = vld [vmem:[%s3459_s0 + $0x168] sm:$0xf]  ;;  %v2460_v6 = vld [vmem:[%s3459_s0 + $0x16c] sm:$0xf0]  ;;  %vm2618_vm4 = vmor %vm314_vm2, %vm315_vm3  ;;  %vm2011_vm5 = vcmask 64512  }
   0x3   :  { %2496 = vmatpush.bf16.msra.mxu1 %v115_v3  ;;  %2497 = vmatpush.bf16.msra.mxu2 %v115_v3  ;;  %v2068_v7 = vor.u32 %v2460_v6, %v2067_v5  ;;  %v2075_v8 = vld [vmem:[%s3459_s0 + $0x188] sm:$0xf]  ;;  %v2462_v9 = vld [vmem:[%s3459_s0 + $0x18c] sm:$0xf0]  ;;  %v2129_v10 = vld [vmem:[%s3458_s1 + $0x4] sm:$0x3] }
   0x4   :  { %2498 = vmatpush.bf16.msra.mxu3 %v115_v3  ;;  %124 = vmatpush.bf16.msra.mxu0 %v115_v3  ;;  %v2076_v11 = vor.u32 %v2462_v9, %v2075_v8  ;;  %v592_v12 = vsel %vm113_vm0, %v2129_v10, 0  ;;  %v2051_v13 = vld [vmem:[%s3459_s0 + $0x48] sm:$0xf]  ;;  %v2456_v14 = vld [vmem:[%s3459_s0 + $0x4c] sm:$0xf0] }
   0x5   :  { %v2052_v15 = vor.u32 %v2456_v14, %v2051_v13  ;;  %v2154_v16 = vld [vmem:[%s3458_s1 + $0x6] sm:$0x3]  ;;  %v28_v17 = vld [vmem:[%s3458_s1] sm:$0x3]  ;;  %v2211_v18 = vld [vmem:[%s3458_s1 + $0x8] sm:$0x3] }
   0x6   :  { %2083 = vmatmul.msk.bf16.vlgmr.msra.gmra.mxu1 %vm88_vm1, %v2060_v4  ;;  %2085 = vmatmul.msk.bf16.vlgmr.msra.gmra.mxu2 %vm88_vm1, %v2068_v7  ;;  %v743_v19 = vsel %vm113_vm0, %v2154_v16, 0  ;;  %v231_v20 = vsel %vm113_vm0, %v28_v17, 0  ;;  %v894_v21 = vsel %vm113_vm0, %v2211_v18, 0  ;;  %v282_v22 = vld [vmem:[%s3459_s0] sm:$0xf] }
   0x7   :  { %601 = vmatpush.bf16.msrb.mxu2 %v592_v12  ;;  %2087 = vmatmul.msk.bf16.vlgmr.msra.gmra.mxu3 %vm88_vm1, %v2076_v11  ;;  %v284_v23 = vld [vmem:[%s3459_s0 + $0x8] sm:$0xf]  ;;  %v318_v24 = vshrl.u32 %v282_v22, 16  ;;  %v321_v25 = vshll.u32 %v282_v22, 16  ;;  %v2063_v28 = vld [vmem:[%s3459_s0 + $0x78] sm:$0xf] }
   0x8   :  { %2081 = vmatmul.msk.bf16.vlgmr.msra.gmra.mxu0 %vm88_vm1, %v2052_v15  ;;  %752 = vmatpush.bf16.msrb.mxu3 %v743_v19  ;;  %v332_v26 = vshrl.u32 %v284_v23, 16  ;;  %v335_v27 = vshll.u32 %v284_v23, 16  ;;  %v2459_v29 = vld [vmem:[%s3459_s0 + $0x7c] sm:$0xf0]  ;;  %v2071_v30 = vld [vmem:[%s3459_s0 + $0x178] sm:$0xf] }
   0x9   :  { %240 = vmatpush.bf16.msrb.mxu1 %v231_v20  ;;  %903 = vmatpush.bf16.msrb.mxu0 %v894_v21  ;;  %v2461_v31 = vld [vmem:[%s3459_s0 + $0x17c] sm:$0xf0]  ;;  %v2309_v32 = vld [vmem:[%s3458_s1 + $0xc] sm:$0x3]  ;;  %v2079_v33 = vld [vmem:[%s3459_s0 + $0x198] sm:$0xf]  ;;  %v2064_v50 = vor.u32 %v2459_v29, %v2063_v28 }
   0xa   :  { %v2463_v34 = vld [vmem:[%s3459_s0 + $0x19c] sm:$0xf0]  ;;  %v2055_v35 = vld [vmem:[%s3459_s0 + $0x58] sm:$0xf]  ;;  %v283_v37 = vld [vmem:[%s3459_s0 + $0x4] sm:$0x1]  ;;  %v2072_v51 = vor.u32 %v2461_v31, %v2071_v30 }
   0xb   :  { %v2457_v36 = vld [vmem:[%s3459_s0 + $0x5c] sm:$0xf0]  ;;  %v320_v38 = vrot.slane %v318_v24, 4  ;;  %v323_v39 = vrot.slane %v321_v25, 5  ;;  %v1419_v40 = vsel %vm113_vm0, %v2309_v32, 0  ;;  %v334_v41 = vrot.slane %v332_v26, 4 }
   0xc   :  { %v337_v42 = vrot.slane %v335_v27, 5  ;;  %1428 = vmatpush.bf16.msra.mxu2 %v1419_v40  ;;  %v2366_v43 = vld [vmem:[%s3458_s1 + $0xe] sm:$0x3]  ;;  %v2284_v44 = vld [vmem:[%s3458_s1 + $0xa] sm:$0x3]  ;;  %v327_v53 = vshll.u32 %v283_v37, 16  ;;  %v2080_v54 = vor.u32 %v2463_v34, %v2079_v33  ;;  %v2056_v55 = vor.u32 %v2457_v36, %v2055_v35 }
   0xd   :  { %v285_v45 = vld [vmem:[%s3459_s0 + $0xc] sm:$0x1]  ;;  %v1570_v46 = vsel %vm113_vm0, %v2366_v43, 0  ;;  %v1268_v47 = vsel %vm113_vm0, %v2284_v44, 0  ;;  %v2439_v48 = vld [vmem:[%s3458_s1 + $0x10] sm:$0x3]  ;;  %v324_v52 = vor.u32 %v323_v39, %v320_v38 }
   0xe   :  { %1579 = vmatpush.bf16.msra.mxu3 %v1570_v46  ;;  %1277 = vmatpush.bf16.msra.mxu1 %v1268_v47  ;;  %v1944_v49 = vsel %vm113_vm0, %v2439_v48, 0  ;;  %v338_v56 = vor.u32 %v337_v42, %v334_v41  ;;  %v341_v57 = vshll.u32 %v285_v45, 16  ;;  %v329_v59 = vrot.slane %v327_v53, 5  ;;  %v286_v63 = vld [vmem:[%s3459_s0 + $0x10] sm:$0xf] }
   0xf   :  { %1953 = vmatpush.bf16.msra.mxu0 %v1944_v49  ;;  %v325_v58 = vrot.slane %v324_v52, 4  ;;  %v288_v0 = vld [vmem:[%s3459_s0 + $0x18] sm:$0xf]  ;;  %v346_v2 = vshrl.u32 %v286_v63, 16  ;;  %v349_v4 = vshll.u32 %v286_v63, 16 }
  0x10   :  { %v339_v61 = vrot.slane %v338_v56, 4  ;;  %v343_v62 = vrot.slane %v341_v57, 5  ;;  %v360_v5 = vshrl.u32 %v288_v0, 16  ;;  %v363_v6 = vshll.u32 %v288_v0, 16  ;;  %v2091_v7 = vld [vmem:[%s3459_s0] sm:$0xf] }
  0x11   :  { %v330_v1 = vsel %vm2618_vm4, %v325_v58, %v329_v59  ;;  %v2448_v8 = vld [vmem:[%s3459_s0 + $0x4] sm:$0xf0]  ;;  %v2157_v11 = vld [vmem:[%s3459_s0 + $0x90] sm:$0xf]  ;;  %v2464_v12 = vld [vmem:[%s3459_s0 + $0x94] sm:$0xf0] }
  0x12   :  { %v344_v3 = vsel %vm2618_vm4, %v339_v61, %v343_v62  ;;  %v543_v9 = vunpack.c.l.b16 %v330_v1  ;;  %v2214_v13 = vld [vmem:[%s3459_s0 + $0xd8] sm:$0xf]  ;;  %v2472_v14 = vld [vmem:[%s3459_s0 + $0xdc] sm:$0xf0]  ;;  %v348_v15 = vrot.slane %v346_v2, 4  ;;  %v351_v16 = vrot.slane %v349_v4, 5 }
  0x13   :  { %v544_v10 = vunpack.c.l.b16 %v344_v3  ;;  %v362_v17 = vrot.slane %v360_v5, 4  ;;  %v365_v18 = vrot.slane %v363_v6, 5  ;;  %v287_v19 = vld [vmem:[%s3459_s0 + $0x14] sm:$0x1]  ;;  %v289_v20 = vld [vmem:[%s3459_s0 + $0x1c] sm:$0x1]  ;;  %v2092_v21 = vor.u32 %v2448_v8, %v2091_v7 }
  0x14   :  { %v2158_v23 = vor.u32 %v2464_v12, %v2157_v11  ;;  %v2215_v24 = vor.u32 %v2472_v14, %v2214_v13  ;;  %v352_v25 = vor.u32 %v351_v16, %v348_v15  ;;  %v355_v26 = vshll.u32 %v287_v19, 16  ;;  %v290_v33 = vld [vmem:[%s3459_s0 + $0x20] sm:$0xf]  ;;  %v292_v34 = vld [vmem:[%s3459_s0 + $0x28] sm:$0xf] }
  0x15   :  { %v559_v22 = vpack.c.b16 %v544_v10, %v543_v9  ;;  %v366_v27 = vor.u32 %v365_v18, %v362_v17  ;;  %v369_v28 = vshll.u32 %v289_v20, 16  ;;  %v374_v35 = vshrl.u32 %v290_v33, 16  ;;  %v2095_v41 = vld [vmem:[%s3459_s0 + $0x10] sm:$0xf]  ;;  %v2449_v42 = vld [vmem:[%s3459_s0 + $0x14] sm:$0xf0] }
  0x16   :  { %2084 = vmatmul.msk.bf16.gmra.mxu1 %vm88_vm1, %v2064_v50  ;;  %2086 = vmatmul.msk.bf16.gmra.mxu2 %vm88_vm1, %v2072_v51  ;;  %v353_v29 = vrot.slane %v352_v25, 4  ;;  %v357_v30 = vrot.slane %v355_v26, 5  ;;  %v377_v36 = vshll.u32 %v290_v33, 16  ;;  %v388_v39 = vshrl.u32 %v292_v34, 16  ;;  %v2161_v45 = vld [vmem:[%s3459_s0 + $0xa0] sm:$0xf] }
  0x17   :  { %2088 = vmatmul.msk.bf16.gmra.mxu3 %vm88_vm1, %v2080_v54  ;;  %v367_v31 = vrot.slane %v366_v27, 4  ;;  %v371_v32 = vrot.slane %v369_v28, 5  ;;  %v391_v40 = vshll.u32 %v292_v34, 16  ;;  %v2465_v46 = vld [vmem:[%s3459_s0 + $0xa4] sm:$0xf0]  ;;  %v376_v49 = vrot.slane %v374_v35, 4 }
  0x18   :  { %2082 = vmatmul.msk.bf16.gmra.mxu0 %vm88_vm1, %v2056_v55  ;;  %v358_v37 = vsel %vm2618_vm4, %v353_v29, %v357_v30  ;;  %v2218_v47 = vld [vmem:[%s3459_s0 + $0xe8] sm:$0xf]  ;;  %v2473_v48 = vld [vmem:[%s3459_s0 + $0xec] sm:$0xf0]  ;;  %v379_v50 = vrot.slane %v377_v36, 5  ;;  %v390_v51 = vrot.slane %v388_v39, 4  ;;  %v2096_v55 = vor.u32 %v2449_v42, %v2095_v41 }
  0x19   :  { %v372_v38 = vsel %vm2618_vm4, %v367_v31, %v371_v32  ;;  %v545_v43 = vunpack.c.l.b16 %v358_v37  ;;  %v393_v52 = vrot.slane %v391_v40, 5  ;;  %v291_v53 = vld [vmem:[%s3459_s0 + $0x24] sm:$0x1]  ;;  %v293_v54 = vld [vmem:[%s3459_s0 + $0x2c] sm:$0x1]  ;;  %v2162_v57 = vor.u32 %v2465_v46, %v2161_v45 }
  0x1a   :  { %v546_v44 = vunpack.c.l.b16 %v372_v38  ;;  %v2219_v58 = vor.u32 %v2473_v48, %v2218_v47  ;;  %v380_v59 = vor.u32 %v379_v50, %v376_v49  ;;  %v383_v61 = vshll.u32 %v291_v53, 16  ;;  %v294_v0 = vld [vmem:[%s3459_s0 + $0x30] sm:$0xf]  ;;  %v296_v1 = vld [vmem:[%s3459_s0 + $0x38] sm:$0xf] }
  0x1b   :  { %v394_v62 = vor.u32 %v393_v52, %v390_v51  ;;  %v397_v63 = vshll.u32 %v293_v54, 16  ;;  %v402_v6 = vshrl.u32 %v294_v0, 16  ;;  %v405_v7 = vshll.u32 %v294_v0, 16  ;;  %v295_v18 = vld [vmem:[%s3459_s0 + $0x34] sm:$0x1] }
  0x1c   :  { %v560_v56 = vpack.c.b16 %v546_v44, %v545_v43  ;;  %v381_v2 = vrot.slane %v380_v59, 4  ;;  %v385_v3 = vrot.slane %v383_v61, 5  ;;  %v416_v8 = vshrl.u32 %v296_v1, 16  ;;  %v297_v19 = vld [vmem:[%s3459_s0 + $0x3c] sm:$0x1] }
  0x1d   :  { %v395_v4 = vrot.slane %v394_v62, 4  ;;  %v399_v5 = vrot.slane %v397_v63, 5  ;;  %v419_v9 = vshll.u32 %v296_v1, 16  ;;  %v404_v12 = vrot.slane %v402_v6, 4  ;;  %v2099_v20 = vld [vmem:[%s3459_s0 + $0x20] sm:$0xf] }
  0x1e   :  { %v386_v10 = vsel %vm2618_vm4, %v381_v2, %v385_v3  ;;  %v407_v13 = vrot.slane %v405_v7, 5  ;;  %v418_v14 = vrot.slane %v416_v8, 4  ;;  %v2474_v25 = vld [vmem:[%s3459_s0 + $0xfc] sm:$0xf0]  ;;  %v411_v27 = vshll.u32 %v295_v18, 16 }
  0x1f   :  { %v400_v11 = vsel %vm2618_vm4, %v395_v4, %v399_v5  ;;  %v421_v15 = vrot.slane %v419_v9, 5  ;;  %v547_v16 = vunpack.c.l.b16 %v386_v10  ;;  %v425_v29 = vshll.u32 %v297_v19, 16  ;;  %v298_v38 = vld [vmem:[%s3459_s0 + $0x120] sm:$0xf]  ;;  %v300_v39 = vld [vmem:[%s3459_s0 + $0x128] sm:$0xf] }
  0x20   :  { %v548_v17 = vunpack.c.l.b16 %v400_v11  ;;  %v408_v26 = vor.u32 %v407_v13, %v404_v12  ;;  %v413_v35 = vrot.slane %v411_v27, 5  ;;  %v430_v42 = vshrl.u32 %v298_v38, 16  ;;  %v2103_v46 = vld [vmem:[%s3459_s0 + $0x30] sm:$0xf]  ;;  %v2451_v49 = vld [vmem:[%s3459_s0 + $0x34] sm:$0xf0] }
  0x21   :  { %v422_v28 = vor.u32 %v421_v15, %v418_v14  ;;  %v427_v37 = vrot.slane %v425_v29, 5  ;;  %v433_v43 = vshll.u32 %v298_v38, 16  ;;  %v444_v44 = vshrl.u32 %v300_v39, 16  ;;  %v2169_v54 = vld [vmem:[%s3459_s0 + $0xc0] sm:$0xf] }
  0x22   :  { %v561_v31 = vpack.c.b16 %v548_v17, %v547_v16  ;;  %v409_v34 = vrot.slane %v408_v26, 4  ;;  %v447_v45 = vshll.u32 %v300_v39, 16  ;;  %v432_v50 = vrot.slane %v430_v42, 4  ;;  %v2475_v59 = vld [vmem:[%s3459_s0 + $0x10c] sm:$0xf0] }
  0x23   :  { %v423_v36 = vrot.slane %v422_v28, 4  ;;  %v435_v51 = vrot.slane %v433_v43, 5  ;;  %v446_v52 = vrot.slane %v444_v44, 4  ;;  %v2104_v61 = vor.u32 %v2451_v49, %v2103_v46  ;;  %v302_v9 = vld [vmem:[%s3459_s0 + $0x130] sm:$0xf] }
  0x24   :  { %v414_v40 = vsel %vm2618_vm4, %v409_v34, %v413_v35  ;;  %v449_v53 = vrot.slane %v447_v45, 5  ;;  %v304_v10 = vld [vmem:[%s3459_s0 + $0x138] sm:$0xf]  ;;  %v458_v13 = vshrl.u32 %v302_v9, 16  ;;  %v461_v14 = vshll.u32 %v302_v9, 16 }
  0x25   :  { %v428_v41 = vsel %vm2618_vm4, %v423_v36, %v427_v37  ;;  %v549_v47 = vunpack.c.l.b16 %v414_v40  ;;  %v436_v63 = vor.u32 %v435_v51, %v432_v50  ;;  %v472_v15 = vshrl.u32 %v304_v10, 16  ;;  %v2107_v17 = vld [vmem:[%s3459_s0 + $0x120] sm:$0xf]  ;;  %v2452_v18 = vld [vmem:[%s3459_s0 + $0x124] sm:$0xf0] }
  0x26   :  { %2121 = vmatmul.msk.bf16.vlgmr.msrb.gmra.mxu1 %vm88_vm1, %v2092_v21  ;;  %2130 = vmatmul.msk.bf16.vlgmr.msrb.gmra.mxu2 %vm88_vm1, %v559_v22  ;;  %v2450_v21 = vld [vmem:[%s3459_s0 + $0x24] sm:$0xf0]  ;;  %v2165_v22 = vld [vmem:[%s3459_s0 + $0xb0] sm:$0xf]  ;;  %v550_v48 = vunpack.c.l.b16 %v428_v41  ;;  %v450_v1 = vor.u32 %v449_v53, %v446_v52  ;;  %v475_v16 = vshll.u32 %v304_v10, 16  ;;  %v463_v26 = vrot.slane %v461_v14, 5 }
  0x27   :  { %2187 = vmatmul.msk.bf16.vlgmr.msrb.gmra.mxu3 %vm88_vm1, %v2158_v23  ;;  %v2466_v23 = vld [vmem:[%s3459_s0 + $0xb4] sm:$0xf0]  ;;  %v2100_v30 = vor.u32 %v2450_v21, %v2099_v20  ;;  %v437_v5 = vrot.slane %v436_v63, 4  ;;  %v2173_v21 = vld [vmem:[%s3459_s0 + $0x1b0] sm:$0xf]  ;;  %v474_v27 = vrot.slane %v472_v15, 4 }
  0x28   :  { %2244 = vmatmul.msk.bf16.vlgmr.msrb.gmra.mxu0 %vm88_vm1, %v2215_v24  ;;  %v2222_v24 = vld [vmem:[%s3459_s0 + $0xf8] sm:$0xf]  ;;  %v2166_v32 = vor.u32 %v2466_v23, %v2165_v22  ;;  %v562_v62 = vpack.c.b16 %v550_v48, %v549_v47  ;;  %v451_v7 = vrot.slane %v450_v1, 4  ;;  %v477_v28 = vrot.slane %v475_v16, 5  ;;  %v303_v29 = vld [vmem:[%s3459_s0 + $0x134] sm:$0x1] }
  0x29   :  { %v2223_v33 = vor.u32 %v2474_v25, %v2222_v24  ;;  %v2468_v22 = vld [vmem:[%s3459_s0 + $0x1b4] sm:$0xf0]  ;;  %v2476_v24 = vld [vmem:[%s3459_s0 + $0x1fc] sm:$0xf0]  ;;  %v460_v25 = vrot.slane %v458_v13, 4  ;;  %v467_v36 = vshll.u32 %v303_v29, 16 }
  0x2a   :  { %v2230_v23 = vld [vmem:[%s3459_s0 + $0x1f8] sm:$0xf]  ;;  %v478_v37 = vor.u32 %v477_v28, %v474_v27  ;;  %v306_v39 = vld [vmem:[%s3459_s0 + $0x140] sm:$0xf]  ;;  %v308_v40 = vld [vmem:[%s3459_s0 + $0x148] sm:$0xf] }
  0x2b   :  { %v2231_v34 = vor.u32 %v2476_v24, %v2230_v23  ;;  %v464_v35 = vor.u32 %v463_v26, %v460_v25  ;;  %v469_v42 = vrot.slane %v467_v36, 5  ;;  %v486_v45 = vshrl.u32 %v306_v39, 16  ;;  %v2469_v63 = vld [vmem:[%s3459_s0 + $0x1c4] sm:$0xf0]  ;;  %v2477_v1 = vld [vmem:[%s3459_s0 + $0x20c] sm:$0xf0] }
  0x2c   :  { %v479_v43 = vrot.slane %v478_v37, 4  ;;  %v489_v46 = vshll.u32 %v306_v39, 16  ;;  %v500_v47 = vshrl.u32 %v308_v40, 16  ;;  %v503_v48 = vshll.u32 %v308_v40, 16  ;;  %v310_v14 = vld [vmem:[%s3459_s0 + $0x150] sm:$0xf] }
  0x2d   :  { %v465_v41 = vrot.slane %v464_v35, 4  ;;  %v488_v51 = vrot.slane %v486_v45, 4  ;;  %v312_v15 = vld [vmem:[%s3459_s0 + $0x158] sm:$0xf]  ;;  %v2454_v25 = vld [vmem:[%s3459_s0 + $0x144] sm:$0xf0] }
  0x2e   :  { %v491_v52 = vrot.slane %v489_v46, 5  ;;  %v502_v53 = vrot.slane %v500_v47, 4  ;;  %v2478_v35 = vld [vmem:[%s3459_s0 + $0x21c] sm:$0xf0] }
  0x2f   :  { %v470_v49 = vsel %vm2618_vm4, %v465_v41, %v469_v42  ;;  %v2397_v60 = vld [vmem:[%s3459_s0 + $0x1a0] sm:$0xf] }
  0x36   :  { %2122 = vmatmul.msk.bf16.gmra.mxu1 %vm88_vm1, %v2096_v55  ;;  %2131 = vmatmul.msk.bf16.gmra.mxu2 %vm88_vm1, %v560_v56  ;;  %v299_v55 = vld [vmem:[%s3459_s0 + $0x124] sm:$0x1]  ;;  %v301_v56 = vld [vmem:[%s3459_s0 + $0x12c] sm:$0x1] }
  0x37   :  { %2188 = vmatmul.msk.bf16.gmra.mxu3 %vm88_vm1, %v2162_v57  ;;  %v2467_v57 = vld [vmem:[%s3459_s0 + $0xc4] sm:$0xf0]  ;;  %v439_v0 = vshll.u32 %v299_v55, 16  ;;  %v453_v2 = vshll.u32 %v301_v56, 16  ;;  %v553_v55 = vunpack.c.l.b16 %v470_v49 }
  0x38   :  { %2245 = vmatmul.msk.bf16.gmra.mxu0 %vm88_vm1, %v2219_v58  ;;  %v2226_v58 = vld [vmem:[%s3459_s0 + $0x108] sm:$0xf]  ;;  %v2170_v3 = vor.u32 %v2467_v57, %v2169_v54  ;;  %v505_v54 = vrot.slane %v503_v48, 5  ;;  %v307_v57 = vld [vmem:[%s3459_s0 + $0x144] sm:$0x1] }
  0x39   :  { %v2227_v4 = vor.u32 %v2475_v59, %v2226_v58  ;;  %v441_v6 = vrot.slane %v439_v0, 5  ;;  %v455_v8 = vrot.slane %v453_v2, 5  ;;  %v309_v58 = vld [vmem:[%s3459_s0 + $0x14c] sm:$0x1]  ;;  %v2111_v59 = vld [vmem:[%s3459_s0 + $0x130] sm:$0xf]  ;;  %v492_v2 = vor.u32 %v491_v52, %v488_v51 }
  0x3a   :  { %v2234_v0 = vld [vmem:[%s3459_s0 + $0x208] sm:$0xf]  ;;  %v2254_v51 = vld [vmem:[%s3459_s0 + $0x98] sm:$0xf] }
  0x3b   :  { %v442_v11 = vsel %vm2618_vm4, %v437_v5, %v441_v6  ;;  %v456_v12 = vsel %vm2618_vm4, %v451_v7, %v455_v8  ;;  %v509_v5 = vshll.u32 %v309_v58, 16  ;;  %v2235_v9 = vor.u32 %v2477_v1, %v2234_v0 }
  0x3c   :  { %v551_v19 = vunpack.c.l.b16 %v442_v11  ;;  %v552_v20 = vunpack.c.l.b16 %v456_v12  ;;  %v493_v10 = vrot.slane %v492_v2, 4 }
  0x3d   :  { %v511_v13 = vrot.slane %v509_v5, 5  ;;  %v2119_v5 = vld [vmem:[%s3459_s0 + $0x150] sm:$0xf] }
  0x46   :  { %2123 = vmatmul.msk.bf16.gmra.mxu1 %vm88_vm1, %v2100_v30  ;;  %2132 = vmatmul.msk.bf16.gmra.mxu2 %vm88_vm1, %v561_v31  ;;  %v305_v30 = vld [vmem:[%s3459_s0 + $0x13c] sm:$0x1]  ;;  %v2108_v31 = vor.u32 %v2452_v18, %v2107_v17  ;;  %v514_v18 = vshrl.u32 %v310_v14, 16 }
  0x47   :  { %2189 = vmatmul.msk.bf16.gmra.mxu3 %vm88_vm1, %v2166_v32  ;;  %v563_v32 = vpack.c.b16 %v552_v20, %v551_v19  ;;  %v481_v38 = vshll.u32 %v305_v30, 16  ;;  %v517_v19 = vshll.u32 %v310_v14, 16  ;;  %v528_v20 = vshrl.u32 %v312_v15, 16  ;;  %v2181_v30 = vld [vmem:[%s3459_s0 + $0x1d0] sm:$0xf] }
  0x48   :  { %2246 = vmatmul.msk.bf16.gmra.mxu0 %vm88_vm1, %v2223_v33  ;;  %v2174_v33 = vor.u32 %v2468_v22, %v2173_v21  ;;  %v531_v21 = vshll.u32 %v312_v15, 16  ;;  %v2115_v22 = vld [vmem:[%s3459_s0 + $0x140] sm:$0xf]  ;;  %v516_v26 = vrot.slane %v514_v18, 4  ;;  %v2255_v18 = vld [vmem:[%s3459_s0 + $0x9c] sm:$0x1] }
  0x49   :  { %v483_v44 = vrot.slane %v481_v38, 5  ;;  %v519_v27 = vrot.slane %v517_v19, 5  ;;  %v530_v28 = vrot.slane %v528_v20, 4  ;;  %v2116_v36 = vor.u32 %v2454_v25, %v2115_v22  ;;  %v2410_v25 = vld [vmem:[%s3459_s0 + $0x14] sm:$0x1] }
  0x4a   :  { %v533_v29 = vrot.slane %v531_v21, 5 }
  0x4b   :  { %v484_v50 = vsel %vm2618_vm4, %v479_v43, %v483_v44  ;;  %v520_v38 = vor.u32 %v519_v27, %v516_v26 }
  0x4c   :  { %v554_v56 = vunpack.c.l.b16 %v484_v50  ;;  %v534_v40 = vor.u32 %v533_v29, %v530_v28  ;;  %v2252_v50 = vld [vmem:[%s3459_s0 + $0x90] sm:$0xf] }
  0x4d   :  { %v521_v46 = vrot.slane %v520_v38, 4 }
  0x4e   :  { %v564_v7 = vpack.c.b16 %v554_v56, %v553_v55  ;;  %v535_v48 = vrot.slane %v534_v40, 4  ;;  %v1693_v40 = vshll.u32 %v2410_v25, 16 }
  0x56   :  { %2124 = vmatmul.msk.bf16.gmra.mxu1 %vm88_vm1, %v2104_v61  ;;  %2133 = vmatmul.msk.bf16.gmra.mxu2 %vm88_vm1, %v562_v62  ;;  %v2453_v61 = vld [vmem:[%s3459_s0 + $0x134] sm:$0xf0]  ;;  %v2177_v62 = vld [vmem:[%s3459_s0 + $0x1c0] sm:$0xf] }
  0x57   :  { %2190 = vmatmul.msk.bf16.gmra.mxu3 %vm88_vm1, %v2170_v3  ;;  %v495_v3 = vshll.u32 %v307_v57, 16  ;;  %v2112_v6 = vor.u32 %v2453_v61, %v2111_v59  ;;  %v2178_v8 = vor.u32 %v2469_v63, %v2177_v62  ;;  %v994_v59 = vshrl.u32 %v2252_v50, 16 }
  0x58   :  { %2247 = vmatmul.msk.bf16.gmra.mxu0 %vm88_vm1, %v2227_v4  ;;  %v506_v4 = vor.u32 %v505_v54, %v502_v53  ;;  %v2407_v53 = vld [vmem:[%s3459_s0 + $0x8] sm:$0xf]  ;;  %v2409_v54 = vld [vmem:[%s3459_s0 + $0x10] sm:$0xf]  ;;  %v997_v61 = vshll.u32 %v2252_v50, 16  ;;  %v1008_v62 = vshrl.u32 %v2254_v51, 16 }
  0x59   :  { %v497_v11 = vrot.slane %v495_v3, 5  ;;  %v1011_v63 = vshll.u32 %v2254_v51, 16  ;;  %v1670_v1 = vshrl.u32 %v2407_v53, 16  ;;  %v1673_v2 = vshll.u32 %v2407_v53, 16 }
  0x5a   :  { %v507_v12 = vrot.slane %v506_v4, 4  ;;  %v1684_v3 = vshrl.u32 %v2409_v54, 16  ;;  %v1687_v4 = vshll.u32 %v2409_v54, 16  ;;  %v996_v14 = vrot.slane %v994_v59, 4 }
  0x5b   :  { %v498_v16 = vsel %vm2618_vm4, %v493_v10, %v497_v11  ;;  %v2471_v10 = vld [vmem:[%s3459_s0 + $0x1e4] sm:$0xf0]  ;;  %v999_v15 = vrot.slane %v997_v61, 5  ;;  %v1672_v19 = vrot.slane %v1670_v1, 4  ;;  %v1675_v20 = vrot.slane %v1673_v2, 5 }
  0x5c   :  { %v512_v17 = vsel %vm2618_vm4, %v507_v12, %v511_v13  ;;  %v555_v23 = vunpack.c.l.b16 %v498_v16  ;;  %v2242_v11 = vld [vmem:[%s3459_s0 + $0x228] sm:$0xf]  ;;  %v2479_v12 = vld [vmem:[%s3459_s0 + $0x22c] sm:$0xf0]  ;;  %v2253_v13 = vld [vmem:[%s3459_s0 + $0x94] sm:$0x1] }
  0x5d   :  { %v556_v24 = vunpack.c.l.b16 %v512_v17  ;;  %v1010_v16 = vrot.slane %v1008_v62, 4  ;;  %v1013_v17 = vrot.slane %v1011_v63, 5  ;;  %v1686_v21 = vrot.slane %v1684_v3, 4 }
  0x5e   :  { %v1689_v22 = vrot.slane %v1687_v4, 5  ;;  %v1695_v54 = vrot.slane %v1693_v40, 5 }
  0x5f   :  { %v565_v37 = vpack.c.b16 %v556_v24, %v555_v23  ;;  %v2408_v24 = vld [vmem:[%s3459_s0 + $0xc] sm:$0x1] }
  0x60   :  { %v1679_v38 = vshll.u32 %v2408_v24, 16  ;;  %v2480_v24 = vld [vmem:[%s3459_s0 + $0xc] sm:$0xf0] }
  0x62   :  { %v1681_v51 = vrot.slane %v1679_v38, 5 }
  0x66   :  { %2125 = vmatmul.msk.bf16.gmra.mxu1 %vm88_vm1, %v2108_v31  ;;  %2134 = vmatmul.msk.bf16.gmra.mxu2 %vm88_vm1, %v563_v32  ;;  %v311_v31 = vld [vmem:[%s3459_s0 + $0x154] sm:$0x1]  ;;  %v313_v32 = vld [vmem:[%s3459_s0 + $0x15c] sm:$0x1] }
  0x67   :  { %2191 = vmatmul.msk.bf16.gmra.mxu3 %vm88_vm1, %v2174_v33  ;;  %v2470_v33 = vld [vmem:[%s3459_s0 + $0x1d4] sm:$0xf0]  ;;  %v523_v39 = vshll.u32 %v311_v31, 16  ;;  %v537_v41 = vshll.u32 %v313_v32, 16  ;;  %v1000_v32 = vor.u32 %v999_v15, %v996_v14 }
  0x68   :  { %2248 = vmatmul.msk.bf16.gmra.mxu0 %vm88_vm1, %v2231_v34  ;;  %v2238_v34 = vld [vmem:[%s3459_s0 + $0x218] sm:$0xf]  ;;  %v2182_v43 = vor.u32 %v2470_v33, %v2181_v30  ;;  %v2243_v30 = vor.u32 %v2479_v12, %v2242_v11  ;;  %v1003_v33 = vshll.u32 %v2253_v13, 16  ;;  %v2312_v12 = vld [vmem:[%s3459_s0 + $0x8] sm:$0xf] }
  0x69   :  { %v2239_v44 = vor.u32 %v2478_v35, %v2238_v34  ;;  %v525_v47 = vrot.slane %v523_v39, 5  ;;  %v539_v49 = vrot.slane %v537_v41, 5  ;;  %v1014_v34 = vor.u32 %v1013_v17, %v1010_v16  ;;  %v2256_v41 = vld [vmem:[%s3459_s0 + $0xa0] sm:$0xf] }
  0x6a   :  { %v1017_v35 = vshll.u32 %v2255_v18, 16  ;;  %v1690_v39 = vor.u32 %v1689_v22, %v1686_v21  ;;  %v1022_v59 = vshrl.u32 %v2256_v41, 16  ;;  %v1025_v61 = vshll.u32 %v2256_v41, 16 }
  0x6b   :  { %v526_v56 = vsel %vm2618_vm4, %v521_v46, %v525_v47  ;;  %v540_v57 = vsel %vm2618_vm4, %v535_v48, %v539_v49  ;;  %v1005_v46 = vrot.slane %v1003_v33, 5  ;;  %v1015_v47 = vrot.slane %v1014_v34, 4  ;;  %v2411_v49 = vld [vmem:[%s3459_s0 + $0x18] sm:$0xf]  ;;  %v2414_v34 = vld [vmem:[%s3459_s0 + $0x24] sm:$0x1] }
  0x6c   :  { %v1019_v48 = vrot.slane %v1017_v35, 5  ;;  %v1691_v53 = vrot.slane %v1690_v39, 4  ;;  %v1698_v2 = vshrl.u32 %v2411_v49, 16  ;;  %v1701_v3 = vshll.u32 %v2411_v49, 16  ;;  %v2488_v33 = vld [vmem:[%s3459_s0 + $0x54] sm:$0xf0] }
  0x6d   :  { %v1024_v13 = vrot.slane %v1022_v59, 4  ;;  %v1027_v14 = vrot.slane %v1025_v61, 5  ;;  %v2260_v59 = vld [vmem:[%s3459_s0 + $0xb0] sm:$0xf] }
  0x6e   :  { %v1696_v11 = vsel %vm2618_vm4, %v1691_v53, %v1695_v54  ;;  %v1700_v21 = vrot.slane %v1698_v2, 4  ;;  %v1703_v22 = vrot.slane %v1701_v3, 5  ;;  %v1721_v53 = vshll.u32 %v2414_v34, 16  ;;  %v2262_v3 = vld [vmem:[%s3459_s0 + $0xb8] sm:$0xf] }
  0x76   :  { %2126 = vmatmul.msk.bf16.gmra.mxu1 %vm88_vm1, %v2112_v6  ;;  %2135 = vmatmul.msk.bf16.gmra.mxu2 %vm88_vm1, %v564_v7  ;;  %v2455_v6 = vld [vmem:[%s3459_s0 + $0x154] sm:$0xf0]  ;;  %v2185_v7 = vld [vmem:[%s3459_s0 + $0x1e0] sm:$0xf] }
  0x77   :  { %2192 = vmatmul.msk.bf16.gmra.mxu3 %vm88_vm1, %v2178_v8  ;;  %v557_v8 = vunpack.c.l.b16 %v526_v56  ;;  %v2120_v27 = vor.u32 %v2455_v6, %v2119_v5  ;;  %v2186_v29 = vor.u32 %v2471_v10, %v2185_v7  ;;  %v2413_v56 = vld [vmem:[%s3459_s0 + $0x20] sm:$0xf]  ;;  %v1020_v6 = vsel %vm2618_vm4, %v1015_v47, %v1019_v48 }
  0x78   :  { %2249 = vmatmul.msk.bf16.gmra.mxu0 %vm88_vm1, %v2235_v9  ;;  %v558_v9 = vunpack.c.l.b16 %v540_v57  ;;  %v1712_v7 = vshrl.u32 %v2413_v56, 16  ;;  %v1220_v18 = vunpack.c.l.b16 %v1020_v6 }
  0x7a   :  { %v566_v28 = vpack.c.b16 %v558_v9, %v557_v8  ;;  %v1715_v8 = vshll.u32 %v2413_v56, 16 }
  0x83   :  { %v2884_v42 = vpop.f32.mrf.mxu1 }
  0x85   :  { %v2886_v45 = vpop.f32.mrf.mxu0 }
  0x86   :  { %2127 = vmatmul.msk.bf16.gmra.mxu1 %vm88_vm1, %v2116_v36  ;;  %2136 = vmatmul.msk.bf16.gmra.mxu2 %vm88_vm1, %v565_v37  ;;  %v1676_v37 = vor.u32 %v1675_v20, %v1672_v19  ;;  %v2257_v19 = vld [vmem:[%s3459_s0 + $0xa4] sm:$0x1]  ;;  %v2259_v20 = vld [vmem:[%s3459_s0 + $0xac] sm:$0x1] }
  0x87   :  { %2193 = vmatmul.msk.bf16.gmra.mxu3 %vm88_vm1, %v2182_v43  ;;  %v2258_v43 = vld [vmem:[%s3459_s0 + $0xa8] sm:$0xf]  ;;  %v1031_v38 = vshll.u32 %v2257_v19, 16  ;;  %v1045_v40 = vshll.u32 %v2259_v20, 16 }
  0x88   :  { %2250 = vmatmul.msk.bf16.gmra.mxu0 %vm88_vm1, %v2239_v44  ;;  %v1001_v44 = vrot.slane %v1000_v32, 4  ;;  %v1677_v50 = vrot.slane %v1676_v37, 4  ;;  %v1036_v62 = vshrl.u32 %v2258_v43, 16  ;;  %v1039_v63 = vshll.u32 %v2258_v43, 16  ;;  %v2369_v32 = vld [vmem:[%s3459_s0 + $0x50] sm:$0xf] }
  0x89   :  { %v2898_v52 = vpop.f32.mrf.mxu2  ;;  %v1028_v37 = vor.u32 %v1027_v14, %v1024_v13  ;;  %v2370_v49 = vor.u32 %v2488_v33, %v2369_v32  ;;  %v1047_v2 = vrot.slane %v1045_v40, 5  ;;  %v1064_v13 = vshrl.u32 %v2262_v3, 16  ;;  %v2263_v40 = vld [vmem:[%s3459_s0 + $0xbc] sm:$0x1] }
  0x8a   :  { %v2906_v55 = vpop.f32.mrf.mxu3  ;;  %v1006_v5 = vsel %vm2618_vm4, %v1001_v44, %v1005_v46  ;;  %v1682_v10 = vsel %vm2618_vm4, %v1677_v50, %v1681_v51  ;;  %v1038_v15 = vrot.slane %v1036_v62, 4  ;;  %v1041_v16 = vrot.slane %v1039_v63, 5 }
  0x8b   :  { %v2912_v58 = vpop.f32.mrf.mxu1  ;;  %v1219_v17 = vunpack.c.l.b16 %v1006_v5  ;;  %v1895_v25 = vunpack.c.l.b16 %v1682_v10  ;;  %v2313_v44 = vor.u32 %v2480_v24, %v2312_v12  ;;  %v1704_v46 = vor.u32 %v1703_v22, %v1700_v21 }
  0x8c   :  { %v1042_v39 = vor.u32 %v1041_v16, %v1038_v15  ;;  %v1029_v61 = vrot.slane %v1028_v37, 4  ;;  %v1033_v62 = vrot.slane %v1031_v38, 5  ;;  %v1723_v10 = vrot.slane %v1721_v53, 5  ;;  %v2261_v37 = vld [vmem:[%s3459_s0 + $0xb4] sm:$0x1] }
  0x8d   :  { %v2914_v0 = vpop.f32.mrf.mxu0  ;;  %v1235_v43 = vpack.c.b16 %v1220_v18, %v1219_v17  ;;  %v1705_v5 = vrot.slane %v1704_v46, 4  ;;  %v1053_v12 = vshll.u32 %v2260_v59, 16  ;;  %v1067_v14 = vshll.u32 %v2262_v3, 16  ;;  %v2316_v53 = vld [vmem:[%s3459_s0 + $0x18] sm:$0xf] }
  0x8e   :  { %v1043_v63 = vrot.slane %v1042_v39, 4  ;;  %v1034_v22 = vsel %vm2618_vm4, %v1029_v61, %v1033_v62  ;;  %v1066_v38 = vrot.slane %v1064_v13, 4  ;;  %v1059_v62 = vshll.u32 %v2261_v37, 16  ;;  %v2489_v3 = vld [vmem:[%s3459_s0 + $0x64] sm:$0xf0] }
  0x8f   :  { %v1069_v39 = vrot.slane %v1067_v14, 5  ;;  %v2419_v37 = vld [vmem:[%s3459_s0 + $0x38] sm:$0xf] }
  0x90   :  { %v1048_v24 = vsel %vm2618_vm4, %v1043_v63, %v1047_v2  ;;  %v2373_v2 = vld [vmem:[%s3459_s0 + $0x60] sm:$0xf] }
  0x91   :  { %v2940_v23 = vpop.f32.mrf.mxu2 }
  0x92   :  { %v2948_v26 = vpop.f32.mrf.mxu3 }
  0x93   :  { %v2950_v31 = vpop.f32.mrf.mxu1 }
  0x95   :  { %v2952_v36 = vpop.f32.mrf.mxu0 }
  0x96   :  { %2128 = vmatmul.msk.bf16.gmra.mxu1 %vm88_vm1, %v2120_v27  ;;  %2137 = vmatmul.msk.bf16.gmra.mxu2 %vm88_vm1, %v566_v28  ;;  %v1896_v27 = vunpack.c.l.b16 %v1696_v11  ;;  %v2412_v28 = vld [vmem:[%s3459_s0 + $0x1c] sm:$0x1]  ;;  %v1050_v11 = vshrl.u32 %v2260_v59, 16 }
  0x97   :  { %2194 = vmatmul.msk.bf16.gmra.mxu3 %vm88_vm1, %v2186_v29  ;;  %v1714_v29 = vrot.slane %v1712_v7, 4  ;;  %v1707_v47 = vshll.u32 %v2412_v28, 16  ;;  %v2417_v7 = vld [vmem:[%s3459_s0 + $0x30] sm:$0xf] }
  0x98   :  { %2251 = vmatmul.msk.bf16.gmra.mxu0 %vm88_vm1, %v2243_v30  ;;  %v1717_v30 = vrot.slane %v1715_v8, 5  ;;  %v1911_v50 = vpack.c.b16 %v1896_v27, %v1895_v25  ;;  %v1740_v18 = vshrl.u32 %v2417_v7, 16  ;;  %v1743_v19 = vshll.u32 %v2417_v7, 16 }
  0x99   :  { %v2970_v57 = vpop.f32.mrf.mxu2  ;;  %v1709_v6 = vrot.slane %v1707_v47, 5 }
  0x9a   :  { %v2972_v1 = vpop.f32.mrf.mxu3  ;;  %v1718_v51 = vor.u32 %v1717_v30, %v1714_v29  ;;  %v1052_v29 = vrot.slane %v1050_v11, 4  ;;  %v1055_v30 = vrot.slane %v1053_v12, 5  ;;  %v1742_v46 = vrot.slane %v1740_v18, 4 }
  0x9b   :  { %v2974_v4 = vpop.f32.mrf.mxu1  ;;  %v1710_v27 = vsel %vm2618_vm4, %v1705_v5, %v1709_v6  ;;  %v1745_v47 = vrot.slane %v1743_v19, 5  ;;  %v1070_v5 = vor.u32 %v1069_v39, %v1066_v38  ;;  %v1073_v6 = vshll.u32 %v2263_v40, 16 }
  0x9c   :  { %v1719_v8 = vrot.slane %v1718_v51, 4  ;;  %v2418_v51 = vld [vmem:[%s3459_s0 + $0x34] sm:$0x1]  ;;  %v1056_v61 = vor.u32 %v1055_v30, %v1052_v29  ;;  %v1061_v19 = vrot.slane %v1059_v62, 5 }
  0x9d   :  { %v2980_v9 = vpop.f32.mrf.mxu0  ;;  %v1749_v11 = vshll.u32 %v2418_v51, 16  ;;  %v1754_v51 = vshrl.u32 %v2419_v37, 16 }
  0x9e   :  { %v1724_v28 = vsel %vm2618_vm4, %v1719_v8, %v1723_v10  ;;  %v1746_v10 = vor.u32 %v1745_v47, %v1742_v46  ;;  %v1057_v18 = vrot.slane %v1056_v61, 4 }
  0x9f   :  { %v1898_v59 = vunpack.c.l.b16 %v1724_v28  ;;  %v1751_v30 = vrot.slane %v1749_v11, 5 }
  0xa0   :  { %v1747_v29 = vrot.slane %v1746_v10, 4  ;;  %v1062_v38 = vsel %vm2618_vm4, %v1057_v18, %v1061_v19  ;;  %v2490_v10 = vld [vmem:[%s3459_s0 + $0x74] sm:$0xf0] }
  0xa1   :  { %v3010_v35 = vpop.f32.mrf.mxu2 }
  0xa2   :  { %v3012_v41 = vpop.f32.mrf.mxu3 }
  0xa3   :  { %v242_v48 = vpop.f32.mrf.mxu1 }
  0xa4   :  { %v243_v54 = vadd.f32 %v242_v48, %v2886_v45  ;;  %v2415_v45 = vld [vmem:[%s3459_s0 + $0x28] sm:$0xf]  ;;  %v1221_v48 = vunpack.c.l.b16 %v1034_v22 }
  0xa5   :  { %v905_v56 = vpop.f32.mrf.mxu0  ;;  %v1726_v16 = vshrl.u32 %v2415_v45, 16  ;;  %v1729_v17 = vshll.u32 %v2415_v45, 16 }
  0xa6   :  { %2285 = vmatmul.msk.bf16.vlgmr.msra.gmra.mxu1 %vm88_vm1, %v1235_v43  ;;  %2342 = vmatmul.msk.bf16.vlgmr.msra.gmra.mxu2 %vm88_vm1, %v2313_v44 }
  0xa7   :  { %2399 = vmatmul.msk.bf16.vlgmr.msra.gmra.mxu3 %vm88_vm1, %v2370_v49  ;;  %v1728_v43 = vrot.slane %v1726_v16, 4  ;;  %v1731_v44 = vrot.slane %v1729_v17, 5  ;;  %v1222_v49 = vunpack.c.l.b16 %v1048_v24  ;;  %v2374_v16 = vor.u32 %v2489_v3, %v2373_v2 }
  0xa8   :  { %2440 = vmatmul.msk.bf16.vlgmr.msra.gmra.mxu0 %vm88_vm1, %v1911_v50  ;;  %v1897_v50 = vunpack.c.l.b16 %v1710_v27  ;;  %v1071_v24 = vrot.slane %v1070_v5, 4  ;;  %v1223_v5 = vunpack.c.l.b16 %v1062_v38 }
  0xa9   :  { %v603_v15 = vpop.f32.mrf.mxu2  ;;  %v1732_v7 = vor.u32 %v1731_v44, %v1728_v43  ;;  %v1236_v14 = vpack.c.b16 %v1222_v49, %v1221_v48  ;;  %v1752_v44 = vsel %vm2618_vm4, %v1747_v29, %v1751_v30 }
  0xaa   :  { %v643_v20 = vadd.f32 %v603_v15, %v243_v54  ;;  %v754_v21 = vpop.f32.mrf.mxu3  ;;  %v2481_v54 = vld [vmem:[%s3459_s0 + $0x1c] sm:$0xf0]  ;;  %v1912_v17 = vpack.c.b16 %v1898_v59, %v1897_v50  ;;  %v1900_v11 = vunpack.c.l.b16 %v1752_v44 }
  0xab   :  { %v244_v25 = vpop.f32.mrf.mxu1  ;;  %v1733_v27 = vrot.slane %v1732_v7, 4  ;;  %v2377_v7 = vld [vmem:[%s3459_s0 + $0x70] sm:$0xf] }
  0xac   :  { %v794_v32 = vadd.f32 %v754_v21, %v643_v20  ;;  %v245_v33 = vadd.f32 %v244_v25, %v2914_v0  ;;  %v2416_v0 = vld [vmem:[%s3459_s0 + $0x2c] sm:$0x1]  ;;  %v1075_v25 = vrot.slane %v1073_v6, 5  ;;  %v2320_v6 = vld [vmem:[%s3459_s0 + $0x28] sm:$0xf]  ;;  %v2378_v30 = vor.u32 %v2490_v10, %v2377_v7 }
  0xad   :  { %v907_v34 = vpop.f32.mrf.mxu0  ;;  %v1735_v8 = vshll.u32 %v2416_v0, 16  ;;  %v2425_v7 = vld [vmem:[%s3459_s0 + $0x130] sm:$0xf] }
  0xae   :  { %v3058_v63 = vadd.f32 %v905_v56, %v794_v32  ;;  %v2317_v56 = vor.u32 %v2481_v54, %v2316_v53  ;;  %v2264_v32 = vld [vmem:[%s3459_s0 + $0xc0] sm:$0xf]  ;;  %v1076_v39 = vsel %vm2618_vm4, %v1071_v24, %v1075_v25  ;;  %v1757_v54 = vshll.u32 %v2419_v37, 16  ;;  %v2420_v25 = vld [vmem:[%s3459_s0 + $0x3c] sm:$0x1] }
  0xaf   :  { %v1737_v28 = vrot.slane %v1735_v8, 5  ;;  %v1078_v46 = vshrl.u32 %v2264_v32, 16  ;;  %v1081_v47 = vshll.u32 %v2264_v32, 16  ;;  %v1224_v8 = vunpack.c.l.b16 %v1076_v39 }
  0xb0   :  { %v1759_v18 = vrot.slane %v1757_v54, 5  ;;  %v1763_v44 = vshll.u32 %v2420_v25, 16 }
  0xb1   :  { %v605_v45 = vpop.f32.mrf.mxu2  ;;  %v1738_v43 = vsel %vm2618_vm4, %v1733_v27, %v1737_v28  ;;  %v2422_v27 = vld [vmem:[%s3459_s0 + $0x44] sm:$0x1]  ;;  %v1237_v29 = vpack.c.b16 %v1224_v8, %v1223_v5 }
  0xb2   :  { %v644_v12 = vadd.f32 %v605_v45, %v245_v33  ;;  %v756_v13 = vpop.f32.mrf.mxu3  ;;  %v2482_v45 = vld [vmem:[%s3459_s0 + $0x2c] sm:$0xf0]  ;;  %v1765_v5 = vrot.slane %v1763_v44, 5  ;;  %v2424_v44 = vld [vmem:[%s3459_s0 + $0x12c] sm:$0x1] }
  0xb3   :  { %v247_v15 = vpop.f32.mrf.mxu1  ;;  %v2321_v24 = vor.u32 %v2482_v45, %v2320_v6 }
  0xb4   :  { %v795_v20 = vadd.f32 %v756_v13, %v644_v12  ;;  %v248_v21 = vadd.f32 %v247_v15, %v2952_v36  ;;  %v2266_v36 = vld [vmem:[%s3459_s0 + $0xc8] sm:$0xf]  ;;  %v2265_v12 = vld [vmem:[%s3459_s0 + $0xc4] sm:$0x1]  ;;  %v1080_v13 = vrot.slane %v1078_v46, 4 }
  0xb5   :  { %v910_v22 = vpop.f32.mrf.mxu0  ;;  %v1092_v50 = vshrl.u32 %v2266_v36, 16  ;;  %v1095_v0 = vshll.u32 %v2266_v36, 16  ;;  %v1087_v32 = vshll.u32 %v2265_v12, 16 }
  0xb6   :  { %2286 = vmatmul.msk.bf16.gmra.mxu1 %vm88_vm1, %v1236_v14  ;;  %2343 = vmatmul.msk.bf16.gmra.mxu2 %vm88_vm1, %v2317_v56  ;;  %v3072_v33 = vadd.f32 %v907_v34, %v795_v20  ;;  %v2421_v34 = vld [vmem:[%s3459_s0 + $0x40] sm:$0xf]  ;;  %v2267_v14 = vld [vmem:[%s3459_s0 + $0xcc] sm:$0x1]  ;;  %v1083_v56 = vrot.slane %v1081_v47, 5  ;;  %v1777_v47 = vshll.u32 %v2422_v27, 16 }
  0xb7   :  { %2400 = vmatmul.msk.bf16.gmra.mxu3 %vm88_vm1, %v2374_v16  ;;  %v1768_v59 = vshrl.u32 %v2421_v34, 16  ;;  %v1771_v61 = vshll.u32 %v2421_v34, 16  ;;  %v1094_v15 = vrot.slane %v1092_v50, 4  ;;  %v1097_v16 = vrot.slane %v1095_v0, 5 }
  0xb8   :  { %2441 = vmatmul.msk.bf16.gmra.mxu0 %vm88_vm1, %v1912_v17  ;;  %v1756_v17 = vrot.slane %v1754_v51, 4  ;;  %v1101_v36 = vshll.u32 %v2267_v14, 16  ;;  %v1084_v34 = vor.u32 %v1083_v56, %v1080_v13  ;;  %v1089_v0 = vrot.slane %v1087_v32, 5  ;;  %v2269_v32 = vld [vmem:[%s3459_s0 + $0x1b4] sm:$0x1] }
  0xb9   :  { %v608_v40 = vpop.f32.mrf.mxu2  ;;  %v1770_v19 = vrot.slane %v1768_v59, 4  ;;  %v1773_v20 = vrot.slane %v1771_v61, 5  ;;  %v2270_v61 = vld [vmem:[%s3459_s0 + $0x1b8] sm:$0xf]  ;;  %v1779_v45 = vrot.slane %v1777_v47, 5 }
  0xba   :  { %v645_v48 = vadd.f32 %v608_v40, %v248_v21  ;;  %v759_v49 = vpop.f32.mrf.mxu3  ;;  %v1103_v51 = vrot.slane %v1101_v36, 5  ;;  %v1085_v54 = vrot.slane %v1084_v34, 4  ;;  %v1123_v12 = vshll.u32 %v2270_v61, 16 }
  0xbb   :  { %v249_v53 = vpop.f32.mrf.mxu1  ;;  %v1774_v46 = vor.u32 %v1773_v20, %v1770_v19  ;;  %v2324_v20 = vld [vmem:[%s3459_s0 + $0x38] sm:$0xf] }
  0xbc   :  { %v796_v62 = vadd.f32 %v759_v49, %v645_v48  ;;  %v250_v2 = vadd.f32 %v249_v53, %v2980_v9  ;;  %v1899_v9 = vunpack.c.l.b16 %v1738_v43  ;;  %v1760_v43 = vor.u32 %v1759_v18, %v1756_v17  ;;  %v2268_v53 = vld [vmem:[%s3459_s0 + $0x1b0] sm:$0xf] }
  0xbd   :  { %v912_v3 = vpop.f32.mrf.mxu0  ;;  %v1775_v6 = vrot.slane %v1774_v46, 4  ;;  %v1106_v8 = vshrl.u32 %v2268_v53, 16  ;;  %v1109_v10 = vshll.u32 %v2268_v53, 16  ;;  %v1090_v18 = vsel %vm2618_vm4, %v1085_v54, %v1089_v0  ;;  %v2426_v0 = vld [vmem:[%s3459_s0 + $0x134] sm:$0x1] }
  0xbe   :  { %v3112_v21 = vadd.f32 %v910_v22, %v796_v62  ;;  %v1913_v39 = vpack.c.b16 %v1900_v11, %v1899_v9  ;;  %v1098_v22 = vor.u32 %v1097_v16, %v1094_v15  ;;  %v1120_v11 = vshrl.u32 %v2270_v61, 16  ;;  %v2381_v54 = vld [vmem:[%s3459_s0 + $0x80] sm:$0xf] }
  0xbf   :  { %v1796_v15 = vshrl.u32 %v2425_v7, 16  ;;  %v1799_v16 = vshll.u32 %v2425_v7, 16  ;;  %v1780_v25 = vsel %vm2618_vm4, %v1775_v6, %v1779_v45  ;;  %v1108_v36 = vrot.slane %v1106_v8, 4 }
  0xc0   :  { %v1099_v59 = vrot.slane %v1098_v22, 4  ;;  %v1125_v34 = vrot.slane %v1123_v12, 5  ;;  %v1115_v61 = vshll.u32 %v2269_v32, 16  ;;  %v1791_v7 = vshll.u32 %v2424_v44, 16 }
  0xc1   :  { %v610_v28 = vpop.f32.mrf.mxu2  ;;  %v1798_v46 = vrot.slane %v1796_v15, 4  ;;  %v1801_v47 = vrot.slane %v1799_v16, 5 }
  0xc2   :  { %v646_v37 = vadd.f32 %v610_v28, %v250_v2  ;;  %v761_v38 = vpop.f32.mrf.mxu3  ;;  %v1761_v2 = vrot.slane %v1760_v43, 4  ;;  %v1104_v19 = vsel %vm2618_vm4, %v1099_v59, %v1103_v51  ;;  %v2491_v59 = vld [vmem:[%s3459_s0 + $0x84] sm:$0xf0]  ;;  %v1117_v16 = vrot.slane %v1115_v61, 5 }
  0xc3   :  { %v252_v40 = vpop.f32.mrf.mxu1  ;;  %v1226_v43 = vunpack.c.l.b16 %v1104_v19 }
  0xc4   :  { %v797_v48 = vadd.f32 %v761_v38, %v646_v37  ;;  %v253_v49 = vadd.f32 %v252_v40, %v2884_v42  ;;  %v2423_v42 = vld [vmem:[%s3459_s0 + $0x128] sm:$0xf]  ;;  %v1111_v37 = vrot.slane %v1109_v10, 5  ;;  %v2271_v38 = vld [vmem:[%s3459_s0 + $0x1bc] sm:$0x1] }
  0xc5   :  { %v915_v50 = vpop.f32.mrf.mxu0  ;;  %v1782_v13 = vshrl.u32 %v2423_v42, 16 }
  0xc6   :  { %2287 = vmatmul.msk.bf16.gmra.mxu1 %vm88_vm1, %v1237_v29  ;;  %2344 = vmatmul.msk.bf16.gmra.mxu2 %vm88_vm1, %v2321_v24  ;;  %v3132_v62 = vadd.f32 %v912_v3, %v797_v48  ;;  %v1785_v3 = vshll.u32 %v2423_v42, 16  ;;  %v1766_v24 = vsel %vm2618_vm4, %v1761_v2, %v1765_v5  ;;  %v1129_v42 = vshll.u32 %v2271_v38, 16 }
  0xc7   :  { %2401 = vmatmul.msk.bf16.gmra.mxu3 %vm88_vm1, %v2378_v30  ;;  %v2483_v30 = vld [vmem:[%s3459_s0 + $0x3c] sm:$0xf0]  ;;  %v1784_v22 = vrot.slane %v1782_v13, 4  ;;  %v1901_v48 = vunpack.c.l.b16 %v1766_v24  ;;  %v1112_v5 = vor.u32 %v1111_v37, %v1108_v36  ;;  %v2382_v13 = vor.u32 %v2491_v59, %v2381_v54  ;;  %v2427_v37 = vld [vmem:[%s3459_s0 + $0x138] sm:$0xf] }
  0xc8   :  { %2442 = vmatmul.msk.bf16.gmra.mxu0 %vm88_vm1, %v1913_v39  ;;  %v1122_v39 = vrot.slane %v1120_v11, 4  ;;  %v1787_v40 = vrot.slane %v1785_v3, 5  ;;  %v2325_v53 = vor.u32 %v2483_v30, %v2324_v20  ;;  %v1805_v11 = vshll.u32 %v2426_v0, 16 }
  0xc9   :  { %v613_v9 = vpop.f32.mrf.mxu2  ;;  %v1113_v19 = vrot.slane %v1112_v5, 4  ;;  %v1813_v54 = vshll.u32 %v2427_v37, 16 }
  0xca   :  { %v647_v14 = vadd.f32 %v613_v9, %v253_v49  ;;  %v764_v56 = vpop.f32.mrf.mxu3  ;;  %v1902_v49 = vunpack.c.l.b16 %v1780_v25  ;;  %v1126_v6 = vor.u32 %v1125_v34, %v1122_v39  ;;  %v1788_v45 = vor.u32 %v1787_v40, %v1784_v22  ;;  %v2429_v22 = vld [vmem:[%s3459_s0 + $0x140] sm:$0xf] }
  0xcb   :  { %v254_v17 = vpop.f32.mrf.mxu1  ;;  %v1802_v9 = vor.u32 %v1801_v47, %v1798_v46  ;;  %v1793_v25 = vrot.slane %v1791_v7, 5  ;;  %v1118_v39 = vsel %vm2618_vm4, %v1113_v19, %v1117_v16  ;;  %v1827_v5 = vshll.u32 %v2429_v22, 16  ;;  %v2328_v7 = vld [vmem:[%s3459_s0 + $0x128] sm:$0xf] }
  0xcc   :  { %v798_v27 = vadd.f32 %v764_v56, %v647_v14  ;;  %v255_v28 = vadd.f32 %v254_v17, %v2912_v58  ;;  %v1225_v58 = vunpack.c.l.b16 %v1090_v18  ;;  %v1914_v3 = vpack.c.b16 %v1902_v49, %v1901_v48  ;;  %v2272_v18 = vld [vmem:[%s3459_s0 + $0x1c0] sm:$0xf]  ;;  %v2273_v48 = vld [vmem:[%s3459_s0 + $0x1c4] sm:$0x1] }
  0xcd   :  { %v917_v29 = vpop.f32.mrf.mxu0  ;;  %v1131_v17 = vrot.slane %v1129_v42, 5  ;;  %v1127_v20 = vrot.slane %v1126_v6, 4  ;;  %v1789_v24 = vrot.slane %v1788_v45, 4  ;;  %v1134_v32 = vshrl.u32 %v2272_v18, 16 }
  0xce   :  { %v3166_v51 = vadd.f32 %v915_v50, %v798_v27  ;;  %v1238_v50 = vpack.c.b16 %v1226_v43, %v1225_v58  ;;  %v1803_v27 = vrot.slane %v1802_v9, 4  ;;  %v1137_v36 = vshll.u32 %v2272_v18, 16  ;;  %v2428_v18 = vld [vmem:[%s3459_s0 + $0x13c] sm:$0x1] }
  0xcf   :  { %v1794_v34 = vsel %vm2618_vm4, %v1789_v24, %v1793_v25  ;;  %v1136_v49 = vrot.slane %v1134_v32, 4  ;;  %v1227_v6 = vunpack.c.l.b16 %v1118_v39 }
  0xd0   :  { %v1139_v0 = vrot.slane %v1137_v36, 5 }
  0xd1   :  { %v615_v2 = vpop.f32.mrf.mxu2 }
  0xd2   :  { %v648_v8 = vadd.f32 %v615_v2, %v255_v28  ;;  %v766_v10 = vpop.f32.mrf.mxu3  ;;  %v1807_v28 = vrot.slane %v1805_v11, 5  ;;  %v1824_v2 = vshrl.u32 %v2429_v22, 16  ;;  %v1143_v11 = vshll.u32 %v2273_v48, 16  ;;  %v2278_v48 = vld [vmem:[%s3459_s0 + $0x1d8] sm:$0xf] }
  0xd3   :  { %v257_v12 = vpop.f32.mrf.mxu1  ;;  %v1819_v22 = vshll.u32 %v2428_v18, 16 }
  0xd4   :  { %v799_v14 = vadd.f32 %v766_v10, %v648_v8  ;;  %v258_v56 = vadd.f32 %v257_v12, %v2950_v31  ;;  %v2274_v31 = vld [vmem:[%s3459_s0 + $0x1c8] sm:$0xf]  ;;  %v1808_v43 = vsel %vm2618_vm4, %v1803_v27, %v1807_v28  ;;  %v2484_v8 = vld [vmem:[%s3459_s0 + $0x12c] sm:$0xf0]  ;;  %v1826_v19 = vrot.slane %v1824_v2, 4 }
  0xd5   :  { %v920_v15 = vpop.f32.mrf.mxu0  ;;  %v1148_v44 = vshrl.u32 %v2274_v31, 16  ;;  %v1151_v46 = vshll.u32 %v2274_v31, 16  ;;  %v2385_v10 = vld [vmem:[%s3459_s0 + $0x170] sm:$0xf]  ;;  %v1904_v9 = vunpack.c.l.b16 %v1808_v43  ;;  %v2329_v25 = vor.u32 %v2484_v8, %v2328_v7  ;;  %v2430_v28 = vld [vmem:[%s3459_s0 + $0x144] sm:$0x1] }
  0xd6   :  { %2288 = vmatmul.msk.bf16.gmra.mxu1 %vm88_vm1, %v1238_v50  ;;  %2345 = vmatmul.msk.bf16.gmra.mxu2 %vm88_vm1, %v2325_v53  ;;  %v3180_v30 = vadd.f32 %v917_v29, %v799_v14  ;;  %v1132_v29 = vsel %vm2618_vm4, %v1127_v20, %v1131_v17  ;;  %v1810_v53 = vshrl.u32 %v2427_v37, 16  ;;  %v1903_v50 = vunpack.c.l.b16 %v1794_v34 }
  0xd7   :  { %2402 = vmatmul.msk.bf16.gmra.mxu3 %vm88_vm1, %v2382_v13  ;;  %v1228_v45 = vunpack.c.l.b16 %v1132_v29  ;;  %v1150_v12 = vrot.slane %v1148_v44, 4  ;;  %v2275_v13 = vld [vmem:[%s3459_s0 + $0x1cc] sm:$0x1]  ;;  %v1140_v17 = vor.u32 %v1139_v0, %v1136_v49  ;;  %v1829_v20 = vrot.slane %v1827_v5, 5 }
  0xd8   :  { %2443 = vmatmul.msk.bf16.gmra.mxu0 %vm88_vm1, %v1914_v3  ;;  %v1153_v3 = vrot.slane %v1151_v46, 5  ;;  %v1812_v14 = vrot.slane %v1810_v53, 4  ;;  %v1915_v37 = vpack.c.b16 %v1904_v9, %v1903_v50  ;;  %v1145_v39 = vrot.slane %v1143_v11, 5 }
  0xd9   :  { %v618_v38 = vpop.f32.mrf.mxu2  ;;  %v1239_v36 = vpack.c.b16 %v1228_v45, %v1227_v6  ;;  %v1141_v43 = vrot.slane %v1140_v17, 4  ;;  %v1830_v44 = vor.u32 %v1829_v20, %v1826_v19  ;;  %v1833_v46 = vshll.u32 %v2430_v28, 16  ;;  %v2433_v45 = vld [vmem:[%s3459_s0 + $0x150] sm:$0xf] }
  0xda   :  { %v649_v40 = vadd.f32 %v618_v38, %v258_v56  ;;  %v769_v58 = vpop.f32.mrf.mxu3  ;;  %v1815_v56 = vrot.slane %v1813_v54, 5  ;;  %v1154_v29 = vor.u32 %v1153_v3, %v1150_v12  ;;  %v1179_v50 = vshll.u32 %v2278_v48, 16 }
  0xdb   :  { %v259_v47 = vpop.f32.mrf.mxu1  ;;  %v1146_v5 = vsel %vm2618_vm4, %v1141_v43, %v1145_v39  ;;  %v1831_v6 = vrot.slane %v1830_v44, 4  ;;  %v1855_v17 = vshll.u32 %v2433_v45, 16  ;;  %v2279_v39 = vld [vmem:[%s3459_s0 + $0x1dc] sm:$0x1] }
  0xdc   :  { %v800_v59 = vadd.f32 %v769_v58, %v649_v40  ;;  %v260_v61 = vadd.f32 %v259_v47, %v2974_v4  ;;  %v2492_v4 = vld [vmem:[%s3459_s0 + $0x174] sm:$0xf0]  ;;  %v1816_v34 = vor.u32 %v1815_v56, %v1812_v14  ;;  %v2276_v47 = vld [vmem:[%s3459_s0 + $0x1d0] sm:$0xf]  ;;  %v1155_v0 = vrot.slane %v1154_v29, 4 }
  0xdd   :  { %v922_v42 = vpop.f32.mrf.mxu0  ;;  %v2386_v27 = vor.u32 %v2492_v4, %v2385_v10  ;;  %v1162_v8 = vshrl.u32 %v2276_v47, 16  ;;  %v1165_v10 = vshll.u32 %v2276_v47, 16  ;;  %v1176_v4 = vshrl.u32 %v2278_v48, 16 }
  0xde   :  { %v3220_v16 = vadd.f32 %v920_v15, %v800_v59  ;;  %v1157_v15 = vshll.u32 %v2275_v13, 16  ;;  %v1817_v54 = vrot.slane %v1816_v34, 4  ;;  %v1821_v59 = vrot.slane %v1819_v22, 5 }
  0xdf   :  { %v1852_v56 = vshrl.u32 %v2433_v45, 16  ;;  %v1229_v20 = vunpack.c.l.b16 %v1146_v5  ;;  %v1164_v28 = vrot.slane %v1162_v8, 4  ;;  %v1857_v44 = vrot.slane %v1855_v17, 5 }
  0xe0   :  { %v1159_v53 = vrot.slane %v1157_v15, 5  ;;  %v1822_v14 = vsel %vm2618_vm4, %v1817_v54, %v1821_v59  ;;  %v2434_v54 = vld [vmem:[%s3459_s0 + $0x154] sm:$0x1]  ;;  %v1185_v5 = vshll.u32 %v2279_v39, 16 }
  0xe1   :  { %v620_v24 = vpop.f32.mrf.mxu2  ;;  %v1905_v15 = vunpack.c.l.b16 %v1822_v14  ;;  %v1854_v43 = vrot.slane %v1852_v56, 4 }
  0xe2   :  { %v650_v31 = vadd.f32 %v620_v24, %v260_v61  ;;  %v771_v32 = vpop.f32.mrf.mxu3  ;;  %v2431_v61 = vld [vmem:[%s3459_s0 + $0x148] sm:$0xf]  ;;  %v2332_v24 = vld [vmem:[%s3459_s0 + $0x138] sm:$0xf]  ;;  %v1187_v14 = vrot.slane %v1185_v5, 5 }
  0xe3   :  { %v262_v38 = vpop.f32.mrf.mxu1  ;;  %v1838_v12 = vshrl.u32 %v2431_v61, 16  ;;  %v1841_v13 = vshll.u32 %v2431_v61, 16  ;;  %v2393_v5 = vld [vmem:[%s3459_s0 + $0x190] sm:$0xf] }
  0xe4   :  { %v801_v40 = vadd.f32 %v771_v32, %v650_v31  ;;  %v263_v2 = vadd.f32 %v262_v38, %v2898_v52  ;;  %v1160_v52 = vsel %vm2618_vm4, %v1155_v0, %v1159_v53  ;;  %v1167_v31 = vrot.slane %v1165_v10, 5  ;;  %v2277_v38 = vld [vmem:[%s3459_s0 + $0x1d4] sm:$0x1]  ;;  %v2389_v0 = vld [vmem:[%s3459_s0 + $0x180] sm:$0xf] }
  0xe5   :  { %v925_v58 = vpop.f32.mrf.mxu0  ;;  %v1178_v32 = vrot.slane %v1176_v4, 4  ;;  %v1840_v29 = vrot.slane %v1838_v12, 4  ;;  %v1843_v34 = vrot.slane %v1841_v13, 5  ;;  %v2493_v53 = vld [vmem:[%s3459_s0 + $0x184] sm:$0xf0] }
  0xe6   :  { %2289 = vmatmul.msk.bf16.gmra.mxu1 %vm88_vm1, %v1239_v36  ;;  %2346 = vmatmul.msk.bf16.gmra.mxu2 %vm88_vm1, %v2329_v25  ;;  %v3236_v49 = vadd.f32 %v922_v42, %v801_v40  ;;  %v1835_v42 = vrot.slane %v1833_v46, 5  ;;  %v1181_v36 = vrot.slane %v1179_v50, 5  ;;  %v2432_v40 = vld [vmem:[%s3459_s0 + $0x14c] sm:$0x1]  ;;  %v1168_v61 = vor.u32 %v1167_v31, %v1164_v28  ;;  %v2282_v28 = vld [vmem:[%s3459_s0 + $0x1e8] sm:$0xf] }
  0xe7   :  { %2403 = vmatmul.msk.bf16.gmra.mxu3 %vm88_vm1, %v2386_v27  ;;  %v2485_v27 = vld [vmem:[%s3459_s0 + $0x13c] sm:$0xf0]  ;;  %v1844_v45 = vor.u32 %v1843_v34, %v1840_v29  ;;  %v2390_v10 = vor.u32 %v2493_v53, %v2389_v0  ;;  %v1858_v50 = vor.u32 %v1857_v44, %v1854_v43  ;;  %v1207_v43 = vshll.u32 %v2282_v28, 16 }
  0xe8   :  { %2444 = vmatmul.msk.bf16.gmra.mxu0 %vm88_vm1, %v1915_v37  ;;  %v1836_v25 = vsel %vm2618_vm4, %v1831_v6, %v1835_v42  ;;  %v1230_v37 = vunpack.c.l.b16 %v1160_v52  ;;  %v2333_v48 = vor.u32 %v2485_v27, %v2332_v24  ;;  %v1169_v13 = vrot.slane %v1168_v61, 4 }
  0xe9   :  { %v623_v7 = vpop.f32.mrf.mxu2  ;;  %v1906_v22 = vunpack.c.l.b16 %v1836_v25  ;;  %v1845_v56 = vrot.slane %v1844_v45, 4  ;;  %v2280_v25 = vld [vmem:[%s3459_s0 + $0x1e0] sm:$0xf]  ;;  %v2281_v45 = vld [vmem:[%s3459_s0 + $0x1e4] sm:$0x1] }
  0xea   :  { %v651_v9 = vadd.f32 %v623_v7, %v263_v2  ;;  %v774_v11 = vpop.f32.mrf.mxu3  ;;  %v1171_v2 = vshll.u32 %v2277_v38, 16  ;;  %v1240_v42 = vpack.c.b16 %v1230_v37, %v1229_v20  ;;  %v1847_v7 = vshll.u32 %v2432_v40, 16  ;;  %v2437_v37 = vld [vmem:[%s3459_s0 + $0x160] sm:$0xf] }
  0xeb   :  { %v264_v3 = vpop.f32.mrf.mxu1  ;;  %v1916_v4 = vpack.c.b16 %v1906_v22, %v1905_v15  ;;  %v1859_v20 = vrot.slane %v1858_v50, 4  ;;  %v1190_v39 = vshrl.u32 %v2280_v25, 16  ;;  %v1193_v29 = vshll.u32 %v2280_v25, 16 }
  0xec   :  { %v802_v18 = vadd.f32 %v774_v11, %v651_v9  ;;  %v265_v47 = vadd.f32 %v264_v3, %v2940_v23  ;;  %v1861_v9 = vshll.u32 %v2434_v54, 16  ;;  %v1173_v3 = vrot.slane %v1171_v2, 5  ;;  %v2336_v2 = vld [vmem:[%s3459_s0 + $0x148] sm:$0xf] }
  0xed   :  { %v927_v19 = vpop.f32.mrf.mxu0  ;;  %v1849_v17 = vrot.slane %v1847_v7, 5  ;;  %v1204_v40 = vshrl.u32 %v2282_v28, 16  ;;  %v1880_v53 = vshrl.u32 %v2437_v37, 16  ;;  %v1883_v54 = vshll.u32 %v2437_v37, 16 }
  0xee   :  { %v3270_v46 = vadd.f32 %v925_v58, %v802_v18  ;;  %v1182_v58 = vor.u32 %v1181_v36, %v1178_v32  ;;  %v1863_v24 = vrot.slane %v1861_v9, 5  ;;  %v1174_v32 = vsel %vm2618_vm4, %v1169_v13, %v1173_v3  ;;  %v2436_v3 = vld [vmem:[%s3459_s0 + $0x15c] sm:$0x1] }
  0xef   :  { %v1850_v38 = vsel %vm2618_vm4, %v1845_v56, %v1849_v17  ;;  %v1192_v7 = vrot.slane %v1190_v39, 4  ;;  %v1206_v50 = vrot.slane %v1204_v40, 4  ;;  %v1209_v9 = vrot.slane %v1207_v43, 5 }
  0xf0   :  { %v1183_v52 = vrot.slane %v1182_v58, 4  ;;  %v1864_v22 = vsel %vm2618_vm4, %v1859_v20, %v1863_v24  ;;  %v2486_v58 = vld [vmem:[%s3459_s0 + $0x14c] sm:$0xf0]  ;;  %v1885_v56 = vrot.slane %v1883_v54, 5  ;;  %v2438_v24 = vld [vmem:[%s3459_s0 + $0x164] sm:$0x1] }
  0xf1   :  { %v625_v59 = vpop.f32.mrf.mxu2 }
  0xf2   :  { %v652_v6 = vadd.f32 %v625_v59, %v265_v47  ;;  %v776_v23 = vpop.f32.mrf.mxu3  ;;  %v1188_v36 = vsel %vm2618_vm4, %v1183_v52, %v1187_v14  ;;  %v1231_v59 = vunpack.c.l.b16 %v1174_v32  ;;  %v1882_v14 = vrot.slane %v1880_v53, 4 }
  0xf3   :  { %v267_v8 = vpop.f32.mrf.mxu1  ;;  %v1232_v61 = vunpack.c.l.b16 %v1188_v36  ;;  %v1210_v36 = vor.u32 %v1209_v9, %v1206_v50  ;;  %v2340_v9 = vld [vmem:[%s3459_s0 + $0x158] sm:$0xf] }
  0xf4   :  { %v803_v11 = vadd.f32 %v776_v23, %v652_v6  ;;  %v268_v27 = vadd.f32 %v267_v8, %v2970_v57  ;;  %v2494_v6 = vld [vmem:[%s3459_s0 + $0x194] sm:$0xf0]  ;;  %v1907_v23 = vunpack.c.l.b16 %v1850_v38 }
  0xf5   :  { %v930_v12 = vpop.f32.mrf.mxu0  ;;  %v2394_v20 = vor.u32 %v2494_v6, %v2393_v5  ;;  %v1241_v28 = vpack.c.b16 %v1232_v61, %v1231_v59 }
  0xf6   :  { %2290 = vmatmul.msk.bf16.gmra.mxu1 %vm88_vm1, %v1240_v42  ;;  %2347 = vmatmul.msk.bf16.gmra.mxu2 %vm88_vm1, %v2333_v48  ;;  %v3284_v18 = vadd.f32 %v927_v19, %v803_v11  ;;  %v2435_v19 = vld [vmem:[%s3459_s0 + $0x158] sm:$0xf]  ;;  %v1908_v42 = vunpack.c.l.b16 %v1864_v22 }
  0xf7   :  { %2404 = vmatmul.msk.bf16.gmra.mxu3 %vm88_vm1, %v2390_v10  ;;  %v1866_v44 = vshrl.u32 %v2435_v19, 16  ;;  %v1869_v0 = vshll.u32 %v2435_v19, 16  ;;  %v2283_v10 = vld [vmem:[%s3459_s0 + $0x1ec] sm:$0x1] }
  0xf8   :  { %2445 = vmatmul.msk.bf16.gmra.mxu0 %vm88_vm1, %v1916_v4  ;;  %v1195_v4 = vrot.slane %v1193_v29, 5  ;;  %v1917_v19 = vpack.c.b16 %v1908_v42, %v1907_v23  ;;  %v1213_v37 = vshll.u32 %v2283_v10, 16  ;;  %v1886_v29 = vor.u32 %v1885_v56, %v1882_v14  ;;  %v2495_v14 = vld [vmem:[%s3459_s0 + $0x1a4] sm:$0xf0] }
  0xf9   :  { %v628_v31 = vpop.f32.mrf.mxu2  ;;  %v1868_v11 = vrot.slane %v1866_v44, 4  ;;  %v1871_v52 = vrot.slane %v1869_v0, 5  ;;  %v1211_v44 = vrot.slane %v1210_v36, 4 }
  0xfa   :  { %v653_v57 = vadd.f32 %v628_v31, %v268_v27  ;;  %v779_v15 = vpop.f32.mrf.mxu3  ;;  %v1199_v31 = vshll.u32 %v2281_v45, 16  ;;  %v1196_v32 = vor.u32 %v1195_v4, %v1192_v7  ;;  %v1887_v59 = vrot.slane %v1886_v29, 4 }
  0xfb   :  { %v269_v34 = vpop.f32.mrf.mxu1  ;;  %v1872_v39 = vor.u32 %v1871_v52, %v1868_v11  ;;  %v2487_v11 = vld [vmem:[%s3459_s0 + $0x15c] sm:$0xf0] }
  0xfc   :  { %v804_v47 = vadd.f32 %v779_v15, %v653_v57  ;;  %v270_v13 = vadd.f32 %v269_v34, %v3010_v35  ;;  %v1875_v57 = vshll.u32 %v2436_v3, 16  ;;  %v1889_v34 = vshll.u32 %v2438_v24, 16 }
  0xfd   :  { %v932_v48 = vpop.f32.mrf.mxu0  ;;  %v1201_v22 = vrot.slane %v1199_v31, 5  ;;  %v1197_v43 = vrot.slane %v1196_v32, 4  ;;  %v1873_v54 = vrot.slane %v1872_v39, 4  ;;  %v2341_v24 = vor.u32 %v2487_v11, %v2340_v9 }
  0xfe   :  { %v3324_v8 = vadd.f32 %v930_v12, %v804_v47  ;;  %v2337_v12 = vor.u32 %v2486_v58, %v2336_v2  ;;  %v1215_v47 = vrot.slane %v1213_v37, 5  ;;  %v1877_v0 = vrot.slane %v1875_v57, 5 }
  0xff   :  { %v1891_v61 = vrot.slane %v1889_v34, 5 }
 0x100   :  { %v1216_v23 = vsel %vm2618_vm4, %v1211_v44, %v1215_v47  ;;  %v1878_v7 = vsel %vm2618_vm4, %v1873_v54, %v1877_v0 }
 0x101   :  { %v630_v17 = vpop.f32.mrf.mxu2  ;;  %v1234_v4 = vunpack.c.l.b16 %v1216_v23 }
 0x102   :  { %v654_v25 = vadd.f32 %v630_v17, %v270_v13  ;;  %v781_v27 = vpop.f32.mrf.mxu3  ;;  %v1909_v13 = vunpack.c.l.b16 %v1878_v7 }
 0x103   :  { %v272_v35 = vpop.f32.mrf.mxu1 }
 0x104   :  { %v805_v15 = vadd.f32 %v781_v27, %v654_v25  ;;  %v273_v53 = vadd.f32 %v272_v35, %v2906_v55  ;;  %v1892_v55 = vsel %vm2618_vm4, %v1887_v59, %v1891_v61  ;;  %v2398_v27 = vor.u32 %v2495_v14, %v2397_v60 }
 0x105   :  { %v935_v38 = vpop.f32.mrf.mxu0  ;;  %v1910_v3 = vunpack.c.l.b16 %v1892_v55 }
 0x106   :  { %2291 = vmatmul.msk.bf16.gmra.mxu1 %vm88_vm1, %v1241_v28  ;;  %2348 = vmatmul.msk.bf16.gmra.mxu2 %vm88_vm1, %v2337_v12  ;;  %v3338_v40 = vadd.f32 %v932_v48, %v805_v15  ;;  %v1202_v48 = vsel %vm2618_vm4, %v1197_v43, %v1201_v22 }
 0x107   :  { %2405 = vmatmul.msk.bf16.gmra.mxu3 %vm88_vm1, %v2394_v20  ;;  %v1233_v10 = vunpack.c.l.b16 %v1202_v48  ;;  %v1918_v28 = vpack.c.b16 %v1910_v3, %v1909_v13 }
 0x108   :  { %2446 = vmatmul.msk.bf16.gmra.mxu0 %vm88_vm1, %v1917_v19 }
 0x109   :  { %v633_v2 = vpop.f32.mrf.mxu2  ;;  %v1242_v20 = vpack.c.b16 %v1234_v4, %v1233_v10 }
 0x10a   :  { %v655_v58 = vadd.f32 %v633_v2, %v273_v53  ;;  %v784_v5 = vpop.f32.mrf.mxu3 }
 0x10b   :  { %v274_v6 = vpop.f32.mrf.mxu1 }
 0x10c   :  { %v806_v42 = vadd.f32 %v784_v5, %v655_v58  ;;  %v275_v52 = vadd.f32 %v274_v6, %v2948_v26 }
 0x10d   :  { %v937_v45 = vpop.f32.mrf.mxu0 }
 0x10e   :  { %v3351_v50 = vadd.f32 %v935_v38, %v806_v42 }
 0x111   :  { %v635_v56 = vpop.f32.mrf.mxu2 }
 0x112   :  { %v656_v17 = vadd.f32 %v635_v56, %v275_v52  ;;  %v786_v12 = vpop.f32.mrf.mxu3 }
 0x113   :  { %v277_v25 = vpop.f32.mrf.mxu1 }
 0x114   :  { %v807_v19 = vadd.f32 %v786_v12, %v656_v17  ;;  %v278_v35 = vadd.f32 %v277_v25, %v2972_v1 }
 0x115   :  { %v940_v31 = vpop.f32.mrf.mxu0 }
 0x116   :  { %2292 = vmatmul.msk.bf16.gmra.mxu1 %vm88_vm1, %v1242_v20  ;;  %2349 = vmatmul.msk.bf16.gmra.mxu2 %vm88_vm1, %v2341_v24  ;;  %v3368_v26 = vadd.f32 %v937_v45, %v807_v19 }
 0x117   :  { %2406 = vmatmul.msk.bf16.gmra.mxu3 %vm88_vm1, %v2398_v27 }
 0x118   :  { %2447 = vmatmul.msk.bf16.gmra.mxu0 %vm88_vm1, %v1918_v28 }
 0x119   :  { %v638_v32 = vpop.f32.mrf.mxu2 }
 0x11a   :  { %v657_v36 = vadd.f32 %v638_v32, %v278_v35  ;;  %v789_v37 = vpop.f32.mrf.mxu3 }
 0x11b   :  { %v279_v57 = vpop.f32.mrf.mxu1 }
 0x11c   :  { %v808_v15 = vadd.f32 %v789_v37, %v657_v36  ;;  %v280_v29 = vadd.f32 %v279_v57, %v3012_v41 }
 0x11d   :  { %v942_v38 = vpop.f32.mrf.mxu0 }
 0x11e   :  { %v3373_v39 = vadd.f32 %v940_v31, %v808_v15 }
 0x121   :  { %v640_v34 = vpop.f32.mrf.mxu2 }
 0x122   :  { %v658_v22 = vadd.f32 %v640_v34, %v280_v29  ;;  %v791_v43 = vpop.f32.mrf.mxu3 }
 0x123   :  { %v1279_v44 = vpop.f32.mrf.mxu1 }
 0x124   :  { %v809_v47 = vadd.f32 %v791_v43, %v658_v22  ;;  %v1319_v1 = vadd.f32 %v1279_v44, %v3058_v63 }
 0x125   :  { %v1955_v0 = vpop.f32.mrf.mxu0 }
 0x126   :  { %v3376_v53 = vadd.f32 %v942_v38, %v809_v47 }
 0x129   :  { %v1430_v54 = vpop.f32.mrf.mxu2 }
 0x12a   :  { %v1470_v59 = vadd.f32 %v1430_v54, %v1319_v1  ;;  %v1581_v61 = vpop.f32.mrf.mxu3 }
 0x12b   :  { %v1281_v2 = vpop.f32.mrf.mxu1 }
 0x12c   :  { %v1621_v58 = vadd.f32 %v1581_v61, %v1470_v59  ;;  %v1320_v41 = vadd.f32 %v1281_v2, %v3072_v33 }
 0x12d   :  { %v1957_v5 = vpop.f32.mrf.mxu0 }
 0x12e   :  { %v1995_v6 = vadd.f32 %v1955_v0, %v1621_v58 }
 0x130   :  { %2012 = vst.msk [vmem:[%s3460_s2] sm:$0xff] %vm2011_vm5, %v1995_v6 }
 0x131   :  { %v1432_v48 = vpop.f32.mrf.mxu2 }
 0x132   :  { %v1471_v23 = vadd.f32 %v1432_v48, %v1320_v41  ;;  %v1583_v42 = vpop.f32.mrf.mxu3 }
 0x133   :  { %v1284_v45 = vpop.f32.mrf.mxu1 }
 0x134   :  { %v1622_v63 = vadd.f32 %v1583_v42, %v1471_v23  ;;  %v1321_v10 = vadd.f32 %v1284_v45, %v3112_v21 }
 0x135   :  { %v1960_v7 = vpop.f32.mrf.mxu0 }
 0x136   :  { %v1996_v55 = vadd.f32 %v1957_v5, %v1622_v63 }
 0x138   :  { %2013 = vst.msk [vmem:[%s3460_s2 + $0x8] sm:$0xff] %vm2011_vm5, %v1996_v55 }
 0x139   :  { %v1435_v4 = vpop.f32.mrf.mxu2 }
 0x13a   :  { %v1472_v9 = vadd.f32 %v1435_v4, %v1321_v10  ;;  %v1586_v11 = vpop.f32.mrf.mxu3 }
 0x13b   :  { %v1286_v13 = vpop.f32.mrf.mxu1 }
 0x13c   :  { %v1623_v3 = vadd.f32 %v1586_v11, %v1472_v9  ;;  %v1322_v60 = vadd.f32 %v1286_v13, %v3132_v62 }
 0x13d   :  { %v1962_v33 = vpop.f32.mrf.mxu0 }
 0x13e   :  { %v1997_v52 = vadd.f32 %v1960_v7, %v1623_v3 }
 0x140   :  { %2014 = vst.msk [vmem:[%s3460_s2 + $0x10] sm:$0xff] %vm2011_vm5, %v1997_v52 }
 0x141   :  { %v1437_v14 = vpop.f32.mrf.mxu2 }
 0x142   :  { %v1473_v56 = vadd.f32 %v1437_v14, %v1322_v60  ;;  %v1588_v17 = vpop.f32.mrf.mxu3 }
 0x143   :  { %v1289_v12 = vpop.f32.mrf.mxu1 }
 0x144   :  { %v1624_v20 = vadd.f32 %v1588_v17, %v1473_v56  ;;  %v1323_v25 = vadd.f32 %v1289_v12, %v3166_v51 }
 0x145   :  { %v1965_v21 = vpop.f32.mrf.mxu0 }
 0x146   :  { %v1998_v24 = vadd.f32 %v1962_v33, %v1624_v20 }
 0x148   :  { %2015 = vst.msk [vmem:[%s3460_s2 + $0x18] sm:$0xff] %vm2011_vm5, %v1998_v24 }
 0x149   :  { %v1440_v27 = vpop.f32.mrf.mxu2 }
 0x14a   :  { %v1474_v28 = vadd.f32 %v1440_v27, %v1323_v25  ;;  %v1591_v19 = vpop.f32.mrf.mxu3 }
 0x14b   :  { %v1291_v31 = vpop.f32.mrf.mxu1 }
 0x14c   :  { %v1625_v35 = vadd.f32 %v1591_v19, %v1474_v28  ;;  %v1324_v36 = vadd.f32 %v1291_v31, %v3180_v30 }
 0x14d   :  { %v1967_v62 = vpop.f32.mrf.mxu0 }
 0x14e   :  { %v1999_v32 = vadd.f32 %v1965_v21, %v1625_v35 }
 0x150   :  { %2016 = vst.msk [vmem:[%s3460_s2 + $0x20] sm:$0xff] %vm2011_vm5, %v1999_v32 }
 0x151   :  { %v1442_v37 = vpop.f32.mrf.mxu2 }
 0x152   :  { %v1475_v57 = vadd.f32 %v1442_v37, %v1324_v36  ;;  %v1593_v15 = vpop.f32.mrf.mxu3 }
 0x153   :  { %v1294_v38 = vpop.f32.mrf.mxu1 }
 0x154   :  { %v1626_v29 = vadd.f32 %v1593_v15, %v1475_v57  ;;  %v1325_v22 = vadd.f32 %v1294_v38, %v3220_v16 }
 0x155   :  { %v1970_v51 = vpop.f32.mrf.mxu0 }
 0x156   :  { %v2000_v34 = vadd.f32 %v1967_v62, %v1626_v29 }
 0x158   :  { %2017 = vst.msk [vmem:[%s3460_s2 + $0x28] sm:$0xff] %vm2011_vm5, %v2000_v34 }
 0x159   :  { %v1445_v43 = vpop.f32.mrf.mxu2 }
 0x15a   :  { %v1476_v44 = vadd.f32 %v1445_v43, %v1325_v22  ;;  %v1596_v47 = vpop.f32.mrf.mxu3 }
 0x15b   :  { %v1296_v0 = vpop.f32.mrf.mxu1 }
 0x15c   :  { %v1627_v1 = vadd.f32 %v1596_v47, %v1476_v44  ;;  %v1326_v59 = vadd.f32 %v1296_v0, %v3236_v49 }
 0x15d   :  { %v1972_v30 = vpop.f32.mrf.mxu0 }
 0x15e   :  { %v2001_v54 = vadd.f32 %v1970_v51, %v1627_v1 }
 0x160   :  { %2018 = vst.msk [vmem:[%s3460_s2 + $0x30] sm:$0xff] %vm2011_vm5, %v2001_v54 }
 0x161   :  { %v1447_v61 = vpop.f32.mrf.mxu2 }
 0x162   :  { %v1477_v2 = vadd.f32 %v1447_v61, %v1326_v59  ;;  %v1598_v58 = vpop.f32.mrf.mxu3 }
 0x163   :  { %v1299_v5 = vpop.f32.mrf.mxu1 }
 0x164   :  { %v1628_v6 = vadd.f32 %v1598_v58, %v1477_v2  ;;  %v1327_v48 = vadd.f32 %v1299_v5, %v3270_v46 }
 0x165   :  { %v1975_v16 = vpop.f32.mrf.mxu0 }
 0x166   :  { %v2002_v41 = vadd.f32 %v1972_v30, %v1628_v6 }
 0x168   :  { %2019 = vst.msk [vmem:[%s3460_s2 + $0x38] sm:$0xff] %vm2011_vm5, %v2002_v41 }
 0x169   :  { %v1450_v23 = vpop.f32.mrf.mxu2 }
 0x16a   :  { %v1478_v42 = vadd.f32 %v1450_v23, %v1327_v48  ;;  %v1601_v45 = vpop.f32.mrf.mxu3 }
 0x16b   :  { %v1301_v63 = vpop.f32.mrf.mxu1 }
 0x16c   :  { %v1629_v7 = vadd.f32 %v1601_v45, %v1478_v42  ;;  %v1328_v10 = vadd.f32 %v1301_v63, %v3284_v18 }
 0x16d   :  { %v1977_v49 = vpop.f32.mrf.mxu0 }
 0x16e   :  { %v2003_v55 = vadd.f32 %v1975_v16, %v1629_v7 }
 0x170   :  { %2020 = vst.msk [vmem:[%s3460_s2 + $0x40] sm:$0xff] %vm2011_vm5, %v2003_v55 }
 0x171   :  { %v1452_v4 = vpop.f32.mrf.mxu2 }
 0x172   :  { %v1479_v9 = vadd.f32 %v1452_v4, %v1328_v10  ;;  %v1603_v11 = vpop.f32.mrf.mxu3 }
 0x173   :  { %v1304_v13 = vpop.f32.mrf.mxu1 }
 0x174   :  { %v1630_v3 = vadd.f32 %v1603_v11, %v1479_v9  ;;  %v1329_v52 = vadd.f32 %v1304_v13, %v3324_v8 }
 0x175   :  { %v1980_v46 = vpop.f32.mrf.mxu0 }
 0x176   :  { %v2004_v33 = vadd.f32 %v1977_v49, %v1630_v3 }
 0x178   :  { %2021 = vst.msk [vmem:[%s3460_s2 + $0x48] sm:$0xff] %vm2011_vm5, %v2004_v33 }
 0x179   :  { %v1455_v60 = vpop.f32.mrf.mxu2 }
 0x17a   :  { %v1480_v14 = vadd.f32 %v1455_v60, %v1329_v52  ;;  %v1606_v56 = vpop.f32.mrf.mxu3 }
 0x17b   :  { %v1306_v17 = vpop.f32.mrf.mxu1 }
 0x17c   :  { %v1631_v12 = vadd.f32 %v1606_v56, %v1480_v14  ;;  %v1330_v21 = vadd.f32 %v1306_v17, %v3338_v40 }
 0x17d   :  { %v1982_v18 = vpop.f32.mrf.mxu0 }
 0x17e   :  { %v2005_v20 = vadd.f32 %v1980_v46, %v1631_v12 }
 0x180   :  { %2022 = vst.msk [vmem:[%s3460_s2 + $0x50] sm:$0xff] %vm2011_vm5, %v2005_v20 }
 0x181   :  { %v1457_v24 = vpop.f32.mrf.mxu2 }
 0x182   :  { %v1481_v25 = vadd.f32 %v1457_v24, %v1330_v21  ;;  %v1608_v27 = vpop.f32.mrf.mxu3 }
 0x183   :  { %v1309_v28 = vpop.f32.mrf.mxu1 }
 0x184   :  { %v1632_v19 = vadd.f32 %v1608_v27, %v1481_v25  ;;  %v1331_v35 = vadd.f32 %v1309_v28, %v3351_v50 }
 0x185   :  { %v1985_v31 = vpop.f32.mrf.mxu0 }
 0x186   :  { %v2006_v8 = vadd.f32 %v1982_v18, %v1632_v19 }
 0x188   :  { %2023 = vst.msk [vmem:[%s3460_s2 + $0x58] sm:$0xff] %vm2011_vm5, %v2006_v8 }
 0x189   :  { %v1460_v62 = vpop.f32.mrf.mxu2 }
 0x18a   :  { %v1482_v32 = vadd.f32 %v1460_v62, %v1331_v35  ;;  %v1611_v36 = vpop.f32.mrf.mxu3 }
 0x18b   :  { %v1311_v37 = vpop.f32.mrf.mxu1 }
 0x18c   :  { %v1633_v57 = vadd.f32 %v1611_v36, %v1482_v32  ;;  %v1332_v15 = vadd.f32 %v1311_v37, %v3368_v26 }
 0x18d   :  { %v1987_v38 = vpop.f32.mrf.mxu0 }
 0x18e   :  { %v2007_v40 = vadd.f32 %v1985_v31, %v1633_v57 }
 0x190   :  { %2024 = vst.msk [vmem:[%s3460_s2 + $0x60] sm:$0xff] %vm2011_vm5, %v2007_v40 }
 0x191   :  { %v1462_v29 = vpop.f32.mrf.mxu2 }
 0x192   :  { %v1483_v51 = vadd.f32 %v1462_v29, %v1332_v15  ;;  %v1613_v34 = vpop.f32.mrf.mxu3 }
 0x193   :  { %v1314_v22 = vpop.f32.mrf.mxu1 }
 0x194   :  { %v1634_v43 = vadd.f32 %v1613_v34, %v1483_v51  ;;  %v1333_v44 = vadd.f32 %v1314_v22, %v3373_v39 }
 0x195   :  { %v1990_v30 = vpop.f32.mrf.mxu0 }
 0x196   :  { %v2008_v50 = vadd.f32 %v1987_v38, %v1634_v43 }
 0x198   :  { %2025 = vst.msk [vmem:[%s3460_s2 + $0x68] sm:$0xff] %vm2011_vm5, %v2008_v50 }
 0x199   :  { %v1465_v47 = vpop.f32.mrf.mxu2 }
 0x19a   :  { %v1484_v0 = vadd.f32 %v1465_v47, %v1333_v44  ;;  %v1616_v1 = vpop.f32.mrf.mxu3 }
 0x19b   :  { %v1316_v26 = vpop.f32.mrf.mxu1 }
 0x19c   :  { %v1635_v54 = vadd.f32 %v1616_v1, %v1484_v0  ;;  %v1334_v61 = vadd.f32 %v1316_v26, %v3376_v53 }
 0x19d   :  { %v1992_v16 = vpop.f32.mrf.mxu0 }
 0x19e   :  { %v2009_v59 = vadd.f32 %v1990_v30, %v1635_v54 }
 0x1a0   :  { %2026 = vst.msk [vmem:[%s3460_s2 + $0x70] sm:$0xff] %vm2011_vm5, %v2009_v59 }
 0x1a1   :  { %v1467_v2 = vpop.f32.mrf.mxu2 }
 0x1a2   :  { %v1485_v58 = vadd.f32 %v1467_v2, %v1334_v61  ;;  %v1618_v5 = vpop.f32.mrf.mxu3 }
 0x1a4   :  { %v1636_v6 = vadd.f32 %v1618_v5, %v1485_v58 }
 0x1a6   :  { %v2010_v39 = vadd.f32 %v1992_v16, %v1636_v6 }
 0x1a8   :  { %2027 = vst.msk [vmem:[%s3460_s2 + $0x78] sm:$0xff] %vm2011_vm5, %v2010_v39 }

</bundles_post_ra>
